<compile_context>
chip_gen: v7x
topology: tpu7x:2x2x1
jax: 0.10.0
libtpu: 0.0.40
codegen_flags: <defaults>
</compile_context>

<pallas_src>
import functools
import math

import jax
import jax.numpy as jnp
from jax.experimental import pallas as pl
from jax.experimental.pallas import tpu as pltpu

# ------------------------------ configuration -------------------------------
IMG = 16            # spatial size
IN_CHANS = 4        # input channels
PATCH = 8           # patch size  -> (16/8)^2 = 4 patches
NUM_PATCHES = (IMG // PATCH) ** 2
CPP = IN_CHANS * PATCH * PATCH          # flattened patch length (256)
EMBED_DIM = 32      # ViT embed dim
DEPTH = 2           # transformer blocks
VIT_HEADS = 2       # ViT self-attention heads
MLP_RATIO = 4
NUM_CLASSES = 10
N_UNSUP = 6         # n_unsup_concepts
N_CONCEPTS = 5      # n_concepts
N_SPATIAL = 7       # n_spatial_concepts
CT_HEADS = 4        # classifier CrossAttention heads
SEQ = NUM_PATCHES + 1

OUT_ROWS = 4 + NUM_PATCHES              # packed-output rows per batch (= 8)
OUT_W = 128                             # lane-dense packed-output width


# ------------------------------- param packing --------------------------------
class _RowPacker:
    """Packs 2-D params as 8-row-aligned row groups of a single [rows,128] slab."""
    WIDTH = 128

    def __init__(self, dtype):
        self.dtype = dtype
        self.chunks = []
        self.layout = {}
        self.off = 0

    def add(self, name, arr):
        arr = jnp.asarray(arr, jnp.float32)
        r, c = arr.shape
        assert c <= self.WIDTH, name
        rp = (-r) % 8                               # keep row offsets 8-aligned
        self.layout[name] = (self.off, r, c)
        self.chunks.append(jnp.pad(arr, ((0, rp), (0, self.WIDTH - c))))
        self.off += r + rp

    def finalize(self):
        slab = jnp.concatenate(self.chunks, axis=0).astype(self.dtype)
        return slab, dict(self.layout)


def pack_params(p):
    """Concatenate every live parameter into one bf16 weight slab + one f32 slab."""
    D = EMBED_DIM
    wp = _RowPacker(jnp.bfloat16)   # matmul weights (MXU operands)
    sp = _RowPacker(jnp.float32)    # biases / LN / pos / slots / concepts

    vit, clf = p['vit'], p['clf']
    wp.add('patch_w', vit['patch_w'])
    sp.add('patch_b', vit['patch_b'])
    sp.add('cls', vit['cls_token'])
    sp.add('pos', vit['pos_embed'])
    for i, blk in enumerate(vit['blocks']):
        pre = f'b{i}_'
        wp.add(pre + 'qkv_w', blk['qkv_w'])
        wp.add(pre + 'proj_w', blk['proj_w'])
        wp.add(pre + 'fc1_w', blk['fc1_w'])
        wp.add(pre + 'fc2_w', blk['fc2_w'])
        sp.add(pre + 'n1_g', blk['norm1_g']); sp.add(pre + 'n1_b', blk['norm1_b'])
        sp.add(pre + 'qkv_b', blk['qkv_b']);  sp.add(pre + 'proj_b', blk['proj_b'])
        sp.add(pre + 'n2_g', blk['norm2_g']); sp.add(pre + 'n2_b', blk['norm2_b'])
        sp.add(pre + 'fc1_b', blk['fc1_b']);  sp.add(pre + 'fc2_b', blk['fc2_b'])
    sp.add('norm_g', vit['norm_g']); sp.add('norm_b', vit['norm_b'])

    for pref, sa, pos in (('u_', clf['unsup_sa'], clf['unsup_slot_pos']),
                          ('c_', clf['concept_sa'], clf['concept_slot_pos'])):
        # Only the v projection of the slot attention is live when Ni == 1
        # (q/k/norm_slots feed a softmax that collapses to all-ones weights).
        wp.add(pref + 'v_w', sa['kv_w'][:, D:])
        wp.add(pref + 'gru_w_ih', sa['gru_w_ih'])
        wp.add(pref + 'gru_w_hh', sa['gru_w_hh'])
        wp.add(pref + 'mlp1_w', sa['mlp1_w'])
        wp.add(pref + 'mlp2_w', sa['mlp2_w'])
        sp.add(pref + 'slots', sa['slots_init'])
        sp.add(pref + 'nin_g', sa['norm_in_g']); sp.add(pref + 'nin_b', sa['norm_in_b'])
        sp.add(pref + 'gru_b_ih', sa['gru_b_ih']); sp.add(pref + 'gru_b_hh', sa['gru_b_hh'])
        sp.add(pref + 'nmlp_g', sa['norm_mlp_g']); sp.add(pref + 'nmlp_b', sa['norm_mlp_b'])
        sp.add(pref + 'mlp1_b', sa['mlp1_b']); sp.add(pref + 'mlp2_b', sa['mlp2_b'])
        sp.add(pref + 'pos', pos[0])                       # [S, D]

    for pref, ct in (('ct_', clf['concept_ct']), ('sp_', clf['spatial_ct'])):
        wp.add(pref + 'q_w', ct['q_w'])
        wp.add(pref + 'kv_w', ct['kv_w'])
        wp.add(pref + 'proj_w', ct['proj_w'])
        sp.add(pref + 'proj_b', ct['proj_b'])
    sp.add('sp_concepts', clf['spatial_concepts'][0])      # [n_spatial, D]

    warr, wlay = wp.finalize()
    sarr, slay = sp.finalize()
    return dict(w=warr, s=sarr), dict(w=wlay, s=slay)


# --------------------------------- the kernel ---------------------------------
def _slot_cvit_kernel(patches_ref, w_ref, s_ref, out_ref, *, layout):
    D = EMBED_DIM
    dh_v = D // VIT_HEADS
    dh_c = D // CT_HEADS
    wlay, slay = layout['w'], layout['s']

    def W(name):                       # bf16 weight slice (static offsets -> free)
        off, r, c = wlay[name]
        return w_ref[off:off + r, :c]

    def S(name):                       # f32 small-param slice
        off, r, c = slay[name]
        return s_ref[off:off + r, :c]

    def mm(a, b):                      # bf16 MXU operands, f32 accumulation
        return jnp.dot(a.astype(jnp.bfloat16), b.astype(jnp.bfloat16),
                       preferred_element_type=jnp.float32)

    def mm_t(a, b):                    # a @ b.T (contract last dims)
        return jnp.einsum('nd,md->nm', a.astype(jnp.bfloat16),
                          b.astype(jnp.bfloat16),
                          preferred_element_type=jnp.float32)

    def ln(x, g, b, eps):
        mu = jnp.mean(x, axis=-1, keepdims=True)
        var = jnp.mean(jnp.square(x - mu), axis=-1, keepdims=True)
        return (x - mu) * jax.lax.rsqrt(var + eps) * g + b

    def softmax_lastdim(s):
        s = s - jnp.max(s, axis=-1, keepdims=True)
        e = jnp.exp(s)
        return e * pl.reciprocal(jnp.sum(e, axis=-1, keepdims=True), approx=True)

    def sigmoid(x):                    # exp + approx reciprocal: both on the EUP
        return pl.reciprocal(1.0 + jnp.exp(-x), approx=True)

    def gelu_tanh(x):
        # TODO(synk): timm's exact-erf GELU approximated with the tanh variant.
        c = 0.7978845608028654         # sqrt(2/pi)
        return 0.5 * x * (1.0 + jnp.tanh(c * (x + 0.044715 * x * x * x)))

    # ---------------------- ViT trunk (one batch element) ----------------------
    patches = patches_ref[0]                                   # [Np, CPP]
    tok = mm(patches, W('patch_w')) + S('patch_b')             # [Np, D]
    x = jnp.concatenate([S('cls'), tok], axis=0) + S('pos')    # [1+Np, D], in regs

    for i in range(DEPTH):
        pre = f'b{i}_'
        h = ln(x, S(pre + 'n1_g'), S(pre + 'n1_b'), 1e-6)
        qkv = mm(h, W(pre + 'qkv_w')) + S(pre + 'qkv_b')       # [N, 3D]
        proj_w = W(pre + 'proj_w')
        attn_out = jnp.zeros((SEQ, D), jnp.float32)
        for hd in range(VIT_HEADS):                            # short static loop
            q = qkv[:, hd * dh_v:(hd + 1) * dh_v]
            k = qkv[:, D + hd * dh_v:D + (hd + 1) * dh_v]
            v = qkv[:, 2 * D + hd * dh_v:2 * D + (hd + 1) * dh_v]
            s = mm_t(q, k) * (dh_v ** -0.5)
            p = softmax_lastdim(s)
            o = mm(p, v)                                       # [N, dh]
            # fold this head's slice of the output projection into the loop
            attn_out = attn_out + mm(o, proj_w[hd * dh_v:(hd + 1) * dh_v, :])
        x = x + attn_out + S(pre + 'proj_b')
        h = ln(x, S(pre + 'n2_g'), S(pre + 'n2_b'), 1e-6)
        h = gelu_tanh(mm(h, W(pre + 'fc1_w')) + S(pre + 'fc1_b'))
        x = x + mm(h, W(pre + 'fc2_w')) + S(pre + 'fc2_b')

    x = ln(x, S('norm_g'), S('norm_b'), 1e-6)
    x_cls = x[0:1, :]                                          # [1, D]
    x_pat = x[1:, :]                                           # [Np, D]

    # ---------------- ConceptSlotAttention (1 iteration, Ni == 1) --------------
    def slot_attention(pref):
        # With a single input token, softmax-over-slots followed by the
        # renormalisation over inputs yields all-ones weights, so the slot
        # update is the v-projection of the normalised cls token broadcast to
        # every slot (q/k projections are dead compute and omitted).
        xn = ln(x_cls, S(pref + 'nin_g'), S(pref + 'nin_b'), 1e-5)
        v = mm(xn, W(pref + 'v_w'))                            # [1, D]
        slots0 = S(pref + 'slots')                             # [S, D]
        # GRU slot update (torch.nn.GRUCell gate order r|z|n)
        gi = mm(v, W(pref + 'gru_w_ih')) + S(pref + 'gru_b_ih')        # [1, 3D]
        gh = mm(slots0, W(pref + 'gru_w_hh')) + S(pref + 'gru_b_hh')   # [S, 3D]
        r = sigmoid(gi[:, :D] + gh[:, :D])
        z = sigmoid(gi[:, D:2 * D] + gh[:, D:2 * D])
        n = jnp.tanh(gi[:, 2 * D:] + r * gh[:, 2 * D:])
        slots = (1.0 - z) * n + z * slots0
        # residual MLP
        h = ln(slots, S(pref + 'nmlp_g'), S(pref + 'nmlp_b'), 1e-5)
        h = jnp.maximum(mm(h, W(pref + 'mlp1_w')) + S(pref + 'mlp1_b'), 0.0)
        h = mm(h, W(pref + 'mlp2_w')) + S(pref + 'mlp2_b')
        return slots + h + S(pref + 'pos')                     # slot pos added here

    def load_ct(pref):                 # hoist (shared concept_ct used twice)
        return (W(pref + 'q_w'), W(pref + 'kv_w'),
                W(pref + 'proj_w'), S(pref + 'proj_b'))

    def cross_attn(xq, y, ct):
        """Concept-Transformer CrossAttention; returns (out, head-mean attn)."""
        q_w, kv_w, proj_w, proj_b = ct
        nx, ny = xq.shape[0], y.shape[0]
        q = mm(xq, q_w)                                        # [Nx, D]
        kv = mm(y, kv_w)                                       # [Ny, 2D]
        k, v = kv[:, :D], kv[:, D:]
        scale = dh_c ** -0.5                                   # per-head scale
        out = jnp.zeros((nx, NUM_CLASSES), jnp.float32)
        attn_sum = jnp.zeros((nx, ny), jnp.float32)
        for hd in range(CT_HEADS):
            lo, hi = hd * dh_c, (hd + 1) * dh_c
            s = mm_t(q[:, lo:hi], k[:, lo:hi]) * scale
            p = softmax_lastdim(s)
            attn_sum = attn_sum + p
            o = mm(p, v[:, lo:hi])
            out = out + mm(o, proj_w[lo:hi, :])
        return out + proj_b, attn_sum * (1.0 / CT_HEADS)

    ct_concept = load_ct('ct_')
    ct_spatial = load_ct('sp_')

    u_slots = slot_attention('u_')                             # [n_unsup, D]
    c_slots = slot_attention('c_')                             # [n_concepts, D]
    # Reference forward routes the unsupervised branch through concept_tranformer.
    out_u, attn_u = cross_attn(x_cls, u_slots, ct_concept)
    out_c, attn_c = cross_attn(x_cls, c_slots, ct_concept)
    out_s, attn_s = cross_attn(x_pat, S('sp_concepts'), ct_spatial)

    logits = out_u + out_c + jnp.mean(out_s, axis=0, keepdims=True)    # [1, 10]

    # ---- single lane-dense packed output block per batch element (1 DMA) ----
    out_ref[...] = jnp.zeros_like(out_ref)
    out_ref[0, 0:1, 0:NUM_CLASSES] = logits
    out_ref[0, 1:2, 0:N_UNSUP] = attn_u
    out_ref[0, 2:3, 0:N_CONCEPTS] = attn_c
    out_ref[0, 4:4 + NUM_PATCHES, 0:N_SPATIAL] = attn_s


# ------------------------------ full forward ---------------------------------
def slot_cvit_forward(packed, x, layout):
    """SlotCVIT.forward.  x: NCHW [B, C, H, W]."""
    B, C, H, Wd = x.shape
    hp, wp = H // PATCH, Wd // PATCH
    # Patch extraction is pure layout glue; the conv matmul runs in the kernel.
    patches = (x.reshape(B, C, hp, PATCH, wp, PATCH)
                 .transpose(0, 2, 4, 1, 3, 5)
                 .reshape(B, hp * wp, C * PATCH * PATCH))
    out_packed = pl.pallas_call(
        functools.partial(_slot_cvit_kernel, layout=layout),
        grid=(B,),
        out_shape=jax.ShapeDtypeStruct((B, OUT_ROWS, OUT_W), jnp.float32),
        in_specs=[
            pl.BlockSpec((1, NUM_PATCHES, CPP), lambda b: (b, 0, 0)),
            pl.BlockSpec(packed['w'].shape, lambda b: (0, 0)),   # resident weights
            pl.BlockSpec(packed['s'].shape, lambda b: (0, 0)),   # resident smalls
        ],
        out_specs=pl.BlockSpec((1, OUT_ROWS, OUT_W), lambda b: (b, 0, 0)),
        compiler_params=pltpu.CompilerParams(
            dimension_semantics=("parallel",)),   # both TCs on v7x; benign elsewhere
    )(patches, packed['w'], packed['s'])
    logits = out_packed[:, 0, :NUM_CLASSES]
    unsup_attn = out_packed[:, 1:2, :N_UNSUP]
    concept_attn = out_packed[:, 2:3, :N_CONCEPTS]
    spatial_attn = out_packed[:, 4:4 + NUM_PATCHES, :N_SPATIAL]
    return logits, unsup_attn, concept_attn, spatial_attn


# --------------------------------- parameters --------------------------------
# Linear weights are stored pre-transposed ([in, out]) and biases as [1, out].
def init_params(key):
    it = iter(jax.random.split(key, 512))
    D = EMBED_DIM

    def nrm(shape, scale=0.02):
        return (scale * jax.random.normal(next(it), shape)).astype(jnp.float32)

    def ones(shape):
        return jnp.ones(shape, jnp.float32)

    def zeros(shape):
        return jnp.zeros(shape, jnp.float32)

    def init_block():
        return dict(
            norm1_g=ones((1, D)), norm1_b=zeros((1, D)),
            qkv_w=nrm((D, 3 * D)), qkv_b=nrm((1, 3 * D)),
            proj_w=nrm((D, D)), proj_b=nrm((1, D)),
            norm2_g=ones((1, D)), norm2_b=zeros((1, D)),
            fc1_w=nrm((D, MLP_RATIO * D)), fc1_b=nrm((1, MLP_RATIO * D)),
            fc2_w=nrm((MLP_RATIO * D, D)), fc2_b=nrm((1, D)),
        )

    def init_slot_attention(S):
        s = 1.0 / math.sqrt(D)
        return dict(
            slots_init=nrm((S, D), s),
            norm_in_g=ones((1, D)), norm_in_b=zeros((1, D)),
            norm_slots_g=ones((1, D)), norm_slots_b=zeros((1, D)),   # unused w/ Ni=1
            q_w=nrm((D, D), s),                                      # unused w/ Ni=1
            kv_w=nrm((D, 2 * D), s),          # concatenated k_w|v_w (bias-free)
            gru_w_ih=nrm((D, 3 * D), s), gru_b_ih=nrm((1, 3 * D)),
            gru_w_hh=nrm((D, 3 * D), s), gru_b_hh=nrm((1, 3 * D)),
            norm_mlp_g=ones((1, D)), norm_mlp_b=zeros((1, D)),
            mlp1_w=nrm((D, D), s), mlp1_b=nrm((1, D)),
            mlp2_w=nrm((D, D), s), mlp2_b=nrm((1, D)),
        )

    def init_cross_attn():
        s = 1.0 / math.sqrt(D)
        return dict(q_w=nrm((D, D), s), kv_w=nrm((D, 2 * D), s),
                    proj_w=nrm((D, NUM_CLASSES), s), proj_b=nrm((1, NUM_CLASSES)))

    vit = dict(
        # ViT feature extractor (deterministic init; no timm checkpoint loaded)
        patch_w=nrm((IN_CHANS * PATCH * PATCH, D)),
        patch_b=nrm((1, D)),
        cls_token=nrm((1, D)),
        pos_embed=nrm((1 + NUM_PATCHES, D)),
        blocks=[init_block() for _ in range(DEPTH)],
        norm_g=ones((1, D)), norm_b=zeros((1, D)),
    )
    clf = dict(
        unsup_sa=init_slot_attention(N_UNSUP),
        unsup_slot_pos=zeros((1, N_UNSUP, EMBED_DIM)),
        unsup_ct=init_cross_attn(),   # created in __init__, unused in forward (mirrors reference)
        concept_sa=init_slot_attention(N_CONCEPTS),
        concept_slot_pos=zeros((1, N_CONCEPTS, EMBED_DIM)),
        concept_ct=init_cross_attn(),
        spatial_concepts=nrm((1, N_SPATIAL, EMBED_DIM), 1.0 / math.sqrt(EMBED_DIM)),
        spatial_ct=init_cross_attn(),
    )
    return dict(vit=vit, clf=clf)


# ------------------------------------ main ------------------------------------
if __name__ == "__main__":
    key = jax.random.PRNGKey(0)
    pkey, xkey = jax.random.split(key)
    params = init_params(pkey)
    packed, layout = pack_params(params)        # one-time packing (2 HBM slabs)
    x = jax.random.normal(xkey, (2, IN_CHANS, IMG, IMG), jnp.float32)

    fwd = jax.jit(functools.partial(slot_cvit_forward, layout=layout))
    out, unsup_attn, concept_attn, spatial_attn = fwd(packed, x)
    jax.block_until_ready((out, unsup_attn, concept_attn, spatial_attn))

    assert out.shape == (2, NUM_CLASSES)
    assert unsup_attn.shape == (2, 1, N_UNSUP)
    assert concept_attn.shape == (2, 1, N_CONCEPTS)
    assert spatial_attn.shape == (2, NUM_PATCHES, N_SPATIAL)
    assert jnp.all(jnp.isfinite(out))
    assert jnp.all(jnp.isfinite(spatial_attn))
    print("KERNEL_OK")
</pallas_src>

<mosaic_0001>
module attributes {stable_mosaic.version = 11 : i64} {
  func.func @_slot_cvit_kernel(%arg0: i32, %arg1: memref<1x4x256xf32, #tpu.memory_space<vmem>>, %arg2: memref<1216x128xbf16, #tpu.memory_space<vmem>>, %arg3: memref<352x128xf32, #tpu.memory_space<vmem>>, %arg4: memref<1x8x128xf32, #tpu.memory_space<vmem>>) attributes {dimension_semantics = [#tpu.dimension_semantics<parallel>], iteration_bounds = array<i64: 2>, scalar_prefetch = 0 : i64, scratch_operands = 0 : i64, tpu.core_type = #tpu.core_type<tc>, window_params = [{transform_indices = @transform_0, window_bounds = array<i64: 1, 4, 256>}, {pipeline_mode = #tpu.pipeline_mode<synchronous>, transform_indices = @transform_1, window_bounds = array<i64: 1216, 128>}, {pipeline_mode = #tpu.pipeline_mode<synchronous>, transform_indices = @transform_2, window_bounds = array<i64: 352, 128>}, {transform_indices = @transform_3, window_bounds = array<i64: 1, 8, 128>}]} {
    %c0 = arith.constant 0 : index
    %c0_0 = arith.constant 0 : index
    %c0_1 = arith.constant 0 : index
    %0 = vector.load %arg1[%c0, %c0_0, %c0_1] : memref<1x4x256xf32, #tpu.memory_space<vmem>>, vector<1x4x256xf32>
    %1 = vector.shape_cast %0 : vector<1x4x256xf32> to vector<4x256xf32>
    %c0_2 = arith.constant 0 : index
    %c0_3 = arith.constant 0 : index
    %2 = vector.load %arg2[%c0_2, %c0_3] : memref<1216x128xbf16, #tpu.memory_space<vmem>>, vector<256x32xbf16>
    %3 = arith.truncf %1 : vector<4x256xf32> to vector<4x256xbf16>
    %cst = arith.constant dense<0.000000e+00> : vector<4x32xf32>
    %4 = tpu.matmul %3, %2, %cst {dimension_numbers = #tpu.dot_dimension_numbers<[1], [0], [0], [1], [0, 0, 1, 1], [], []>} : vector<4x256xbf16>, vector<256x32xbf16>, vector<4x32xf32> -> vector<4x32xf32>
    %c0_4 = arith.constant 0 : index
    %c0_5 = arith.constant 0 : index
    %5 = vector.load %arg3[%c0_4, %c0_5] : memref<352x128xf32, #tpu.memory_space<vmem>>, vector<1x32xf32>
    %6 = vector.broadcast %5 : vector<1x32xf32> to vector<4x32xf32>
    %7 = arith.addf %4, %6 : vector<4x32xf32>
    %c8 = arith.constant 8 : index
    %c0_6 = arith.constant 0 : index
    %8 = vector.load %arg3[%c8, %c0_6] : memref<352x128xf32, #tpu.memory_space<vmem>>, vector<1x32xf32>
    %9 = tpu.concatenate %8, %7 in 0 : vector<1x32xf32>, vector<4x32xf32> -> vector<5x32xf32>
    %c16 = arith.constant 16 : index
    %c0_7 = arith.constant 0 : index
    %10 = vector.load %arg3[%c16, %c0_7] : memref<352x128xf32, #tpu.memory_space<vmem>>, vector<5x32xf32>
    %11 = arith.addf %9, %10 : vector<5x32xf32>
    %c24 = arith.constant 24 : index
    %c0_8 = arith.constant 0 : index
    %12 = vector.load %arg3[%c24, %c0_8] : memref<352x128xf32, #tpu.memory_space<vmem>>, vector<1x32xf32>
    %c32 = arith.constant 32 : index
    %c0_9 = arith.constant 0 : index
    %13 = vector.load %arg3[%c32, %c0_9] : memref<352x128xf32, #tpu.memory_space<vmem>>, vector<1x32xf32>
    %cst_10 = arith.constant dense<0.000000e+00> : vector<5xf32>
    %14 = vector.multi_reduction <add>, %11, %cst_10 [1] : vector<5x32xf32> to vector<5xf32>
    %15 = vector.shape_cast %14 : vector<5xf32> to vector<5x1xf32>
    %cst_11 = arith.constant 3.200000e+01 : f32
    %16 = vector.broadcast %cst_11 : f32 to vector<5x1xf32>
    %17 = arith.divf %15, %16 : vector<5x1xf32>
    %18 = vector.broadcast %17 : vector<5x1xf32> to vector<5x32xf32>
    %19 = arith.subf %11, %18 : vector<5x32xf32>
    %20 = arith.mulf %19, %19 : vector<5x32xf32>
    %cst_12 = arith.constant dense<0.000000e+00> : vector<5xf32>
    %21 = vector.multi_reduction <add>, %20, %cst_12 [1] : vector<5x32xf32> to vector<5xf32>
    %22 = vector.shape_cast %21 : vector<5xf32> to vector<5x1xf32>
    %cst_13 = arith.constant 3.200000e+01 : f32
    %23 = vector.broadcast %cst_13 : f32 to vector<5x1xf32>
    %24 = arith.divf %22, %23 : vector<5x1xf32>
    %25 = vector.broadcast %17 : vector<5x1xf32> to vector<5x32xf32>
    %26 = arith.subf %11, %25 : vector<5x32xf32>
    %cst_14 = arith.constant 9.99999997E-7 : f32
    %27 = vector.broadcast %cst_14 : f32 to vector<5x1xf32>
    %28 = arith.addf %24, %27 : vector<5x1xf32>
    %29 = math.rsqrt %28 : vector<5x1xf32>
    %30 = vector.broadcast %29 : vector<5x1xf32> to vector<5x32xf32>
    %31 = arith.mulf %26, %30 : vector<5x32xf32>
    %32 = vector.broadcast %12 : vector<1x32xf32> to vector<5x32xf32>
    %33 = arith.mulf %31, %32 : vector<5x32xf32>
    %34 = vector.broadcast %13 : vector<1x32xf32> to vector<5x32xf32>
    %35 = arith.addf %33, %34 : vector<5x32xf32>
    %c256 = arith.constant 256 : index
    %c0_15 = arith.constant 0 : index
    %36 = vector.load %arg2[%c256, %c0_15] : memref<1216x128xbf16, #tpu.memory_space<vmem>>, vector<32x96xbf16>
    %37 = arith.truncf %35 : vector<5x32xf32> to vector<5x32xbf16>
    %cst_16 = arith.constant dense<0.000000e+00> : vector<5x96xf32>
    %38 = tpu.matmul %37, %36, %cst_16 {dimension_numbers = #tpu.dot_dimension_numbers<[1], [0], [0], [1], [0, 0, 1, 1], [], []>} : vector<5x32xbf16>, vector<32x96xbf16>, vector<5x96xf32> -> vector<5x96xf32>
    %c40 = arith.constant 40 : index
    %c0_17 = arith.constant 0 : index
    %39 = vector.load %arg3[%c40, %c0_17] : memref<352x128xf32, #tpu.memory_space<vmem>>, vector<1x96xf32>
    %40 = vector.broadcast %39 : vector<1x96xf32> to vector<5x96xf32>
    %41 = arith.addf %38, %40 : vector<5x96xf32>
    %c288 = arith.constant 288 : index
    %c0_18 = arith.constant 0 : index
    %42 = vector.load %arg2[%c288, %c0_18] : memref<1216x128xbf16, #tpu.memory_space<vmem>>, vector<32x32xbf16>
    %cst_19 = arith.constant 0.000000e+00 : f32
    %43 = vector.broadcast %cst_19 : f32 to vector<5x32xf32>
    %44 = vector.extract_strided_slice %41 {offsets = [0, 0], sizes = [5, 16], strides = [1, 1]} : vector<5x96xf32> to vector<5x16xf32>
    %45 = vector.extract_strided_slice %41 {offsets = [0, 32], sizes = [5, 16], strides = [1, 1]} : vector<5x96xf32> to vector<5x16xf32>
    %46 = vector.extract_strided_slice %41 {offsets = [0, 64], sizes = [5, 16], strides = [1, 1]} : vector<5x96xf32> to vector<5x16xf32>
    %47 = arith.truncf %44 : vector<5x16xf32> to vector<5x16xbf16>
    %48 = arith.truncf %45 : vector<5x16xf32> to vector<5x16xbf16>
    "tpu.trace_start"() <{level = 10 : i32, message = "nd,md->nm"}> : () -> ()
    %cst_20 = arith.constant dense<0.000000e+00> : vector<5x5xf32>
    %49 = tpu.matmul %47, %48, %cst_20 {dimension_numbers = #tpu.dot_dimension_numbers<[1], [1], [0], [0], [0, 0, 1, 0], [], []>} : vector<5x16xbf16>, vector<5x16xbf16>, vector<5x5xf32> -> vector<5x5xf32>
    "tpu.trace_stop"() : () -> ()
    %cst_21 = arith.constant 2.500000e-01 : f32
    %50 = vector.broadcast %cst_21 : f32 to vector<5x5xf32>
    %51 = arith.mulf %49, %50 : vector<5x5xf32>
    %cst_22 = arith.constant dense<0xFF800000> : vector<5xf32>
    %52 = vector.multi_reduction <maximumf>, %51, %cst_22 [1] : vector<5x5xf32> to vector<5xf32>
    %53 = vector.shape_cast %52 : vector<5xf32> to vector<5x1xf32>
    %54 = vector.broadcast %53 : vector<5x1xf32> to vector<5x5xf32>
    %55 = arith.subf %51, %54 : vector<5x5xf32>
    %56 = math.exp %55 : vector<5x5xf32>
    %cst_23 = arith.constant dense<0.000000e+00> : vector<5xf32>
    %57 = vector.multi_reduction <add>, %56, %cst_23 [1] : vector<5x5xf32> to vector<5xf32>
    %58 = vector.shape_cast %57 : vector<5xf32> to vector<5x1xf32>
    %59 = tpu.reciprocal %58 {approx = true} : vector<5x1xf32> -> vector<5x1xf32>
    %60 = vector.broadcast %59 : vector<5x1xf32> to vector<5x5xf32>
    %61 = arith.mulf %56, %60 : vector<5x5xf32>
    %62 = arith.truncf %61 : vector<5x5xf32> to vector<5x5xbf16>
    %63 = arith.truncf %46 : vector<5x16xf32> to vector<5x16xbf16>
    %cst_24 = arith.constant dense<0.000000e+00> : vector<5x16xf32>
    %64 = tpu.matmul %62, %63, %cst_24 {dimension_numbers = #tpu.dot_dimension_numbers<[1], [0], [0], [1], [0, 0, 1, 1], [], []>} : vector<5x5xbf16>, vector<5x16xbf16>, vector<5x16xf32> -> vector<5x16xf32>
    %65 = vector.extract_strided_slice %42 {offsets = [0, 0], sizes = [16, 32], strides = [1, 1]} : vector<32x32xbf16> to vector<16x32xbf16>
    %66 = arith.truncf %64 : vector<5x16xf32> to vector<5x16xbf16>
    %cst_25 = arith.constant dense<0.000000e+00> : vector<5x32xf32>
    %67 = tpu.matmul %66, %65, %cst_25 {dimension_numbers = #tpu.dot_dimension_numbers<[1], [0], [0], [1], [0, 0, 1, 1], [], []>} : vector<5x16xbf16>, vector<16x32xbf16>, vector<5x32xf32> -> vector<5x32xf32>
    %68 = arith.addf %43, %67 : vector<5x32xf32>
    %69 = vector.extract_strided_slice %41 {offsets = [0, 16], sizes = [5, 16], strides = [1, 1]} : vector<5x96xf32> to vector<5x16xf32>
    %70 = vector.extract_strided_slice %41 {offsets = [0, 48], sizes = [5, 16], strides = [1, 1]} : vector<5x96xf32> to vector<5x16xf32>
    %71 = vector.extract_strided_slice %41 {offsets = [0, 80], sizes = [5, 16], strides = [1, 1]} : vector<5x96xf32> to vector<5x16xf32>
    %72 = arith.truncf %69 : vector<5x16xf32> to vector<5x16xbf16>
    %73 = arith.truncf %70 : vector<5x16xf32> to vector<5x16xbf16>
    "tpu.trace_start"() <{level = 10 : i32, message = "nd,md->nm"}> : () -> ()
    %cst_26 = arith.constant dense<0.000000e+00> : vector<5x5xf32>
    %74 = tpu.matmul %72, %73, %cst_26 {dimension_numbers = #tpu.dot_dimension_numbers<[1], [1], [0], [0], [0, 0, 1, 0], [], []>} : vector<5x16xbf16>, vector<5x16xbf16>, vector<5x5xf32> -> vector<5x5xf32>
    "tpu.trace_stop"() : () -> ()
    %cst_27 = arith.constant 2.500000e-01 : f32
    %75 = vector.broadcast %cst_27 : f32 to vector<5x5xf32>
    %76 = arith.mulf %74, %75 : vector<5x5xf32>
    %cst_28 = arith.constant dense<0xFF800000> : vector<5xf32>
    %77 = vector.multi_reduction <maximumf>, %76, %cst_28 [1] : vector<5x5xf32> to vector<5xf32>
    %78 = vector.shape_cast %77 : vector<5xf32> to vector<5x1xf32>
    %79 = vector.broadcast %78 : vector<5x1xf32> to vector<5x5xf32>
    %80 = arith.subf %76, %79 : vector<5x5xf32>
    %81 = math.exp %80 : vector<5x5xf32>
    %cst_29 = arith.constant dense<0.000000e+00> : vector<5xf32>
    %82 = vector.multi_reduction <add>, %81, %cst_29 [1] : vector<5x5xf32> to vector<5xf32>
    %83 = vector.shape_cast %82 : vector<5xf32> to vector<5x1xf32>
    %84 = tpu.reciprocal %83 {approx = true} : vector<5x1xf32> -> vector<5x1xf32>
    %85 = vector.broadcast %84 : vector<5x1xf32> to vector<5x5xf32>
    %86 = arith.mulf %81, %85 : vector<5x5xf32>
    %87 = arith.truncf %86 : vector<5x5xf32> to vector<5x5xbf16>
    %88 = arith.truncf %71 : vector<5x16xf32> to vector<5x16xbf16>
    %cst_30 = arith.constant dense<0.000000e+00> : vector<5x16xf32>
    %89 = tpu.matmul %87, %88, %cst_30 {dimension_numbers = #tpu.dot_dimension_numbers<[1], [0], [0], [1], [0, 0, 1, 1], [], []>} : vector<5x5xbf16>, vector<5x16xbf16>, vector<5x16xf32> -> vector<5x16xf32>
    %90 = vector.extract_strided_slice %42 {offsets = [16, 0], sizes = [16, 32], strides = [1, 1]} : vector<32x32xbf16> to vector<16x32xbf16>
    %91 = arith.truncf %89 : vector<5x16xf32> to vector<5x16xbf16>
    %cst_31 = arith.constant dense<0.000000e+00> : vector<5x32xf32>
    %92 = tpu.matmul %91, %90, %cst_31 {dimension_numbers = #tpu.dot_dimension_numbers<[1], [0], [0], [1], [0, 0, 1, 1], [], []>} : vector<5x16xbf16>, vector<16x32xbf16>, vector<5x32xf32> -> vector<5x32xf32>
    %93 = arith.addf %68, %92 : vector<5x32xf32>
    %94 = arith.addf %11, %93 : vector<5x32xf32>
    %c48 = arith.constant 48 : index
    %c0_32 = arith.constant 0 : index
    %95 = vector.load %arg3[%c48, %c0_32] : memref<352x128xf32, #tpu.memory_space<vmem>>, vector<1x32xf32>
    %96 = vector.broadcast %95 : vector<1x32xf32> to vector<5x32xf32>
    %97 = arith.addf %94, %96 : vector<5x32xf32>
    %c56 = arith.constant 56 : index
    %c0_33 = arith.constant 0 : index
    %98 = vector.load %arg3[%c56, %c0_33] : memref<352x128xf32, #tpu.memory_space<vmem>>, vector<1x32xf32>
    %c64 = arith.constant 64 : index
    %c0_34 = arith.constant 0 : index
    %99 = vector.load %arg3[%c64, %c0_34] : memref<352x128xf32, #tpu.memory_space<vmem>>, vector<1x32xf32>
    %cst_35 = arith.constant dense<0.000000e+00> : vector<5xf32>
    %100 = vector.multi_reduction <add>, %97, %cst_35 [1] : vector<5x32xf32> to vector<5xf32>
    %101 = vector.shape_cast %100 : vector<5xf32> to vector<5x1xf32>
    %cst_36 = arith.constant 3.200000e+01 : f32
    %102 = vector.broadcast %cst_36 : f32 to vector<5x1xf32>
    %103 = arith.divf %101, %102 : vector<5x1xf32>
    %104 = vector.broadcast %103 : vector<5x1xf32> to vector<5x32xf32>
    %105 = arith.subf %97, %104 : vector<5x32xf32>
    %106 = arith.mulf %105, %105 : vector<5x32xf32>
    %cst_37 = arith.constant dense<0.000000e+00> : vector<5xf32>
    %107 = vector.multi_reduction <add>, %106, %cst_37 [1] : vector<5x32xf32> to vector<5xf32>
    %108 = vector.shape_cast %107 : vector<5xf32> to vector<5x1xf32>
    %cst_38 = arith.constant 3.200000e+01 : f32
    %109 = vector.broadcast %cst_38 : f32 to vector<5x1xf32>
    %110 = arith.divf %108, %109 : vector<5x1xf32>
    %111 = vector.broadcast %103 : vector<5x1xf32> to vector<5x32xf32>
    %112 = arith.subf %97, %111 : vector<5x32xf32>
    %cst_39 = arith.constant 9.99999997E-7 : f32
    %113 = vector.broadcast %cst_39 : f32 to vector<5x1xf32>
    %114 = arith.addf %110, %113 : vector<5x1xf32>
    %115 = math.rsqrt %114 : vector<5x1xf32>
    %116 = vector.broadcast %115 : vector<5x1xf32> to vector<5x32xf32>
    %117 = arith.mulf %112, %116 : vector<5x32xf32>
    %118 = vector.broadcast %98 : vector<1x32xf32> to vector<5x32xf32>
    %119 = arith.mulf %117, %118 : vector<5x32xf32>
    %120 = vector.broadcast %99 : vector<1x32xf32> to vector<5x32xf32>
    %121 = arith.addf %119, %120 : vector<5x32xf32>
    %c320 = arith.constant 320 : index
    %c0_40 = arith.constant 0 : index
    %122 = vector.load %arg2[%c320, %c0_40] : memref<1216x128xbf16, #tpu.memory_space<vmem>>, vector<32x128xbf16>
    %123 = arith.truncf %121 : vector<5x32xf32> to vector<5x32xbf16>
    %cst_41 = arith.constant dense<0.000000e+00> : vector<5x128xf32>
    %124 = tpu.matmul %123, %122, %cst_41 {dimension_numbers = #tpu.dot_dimension_numbers<[1], [0], [0], [1], [0, 0, 1, 1], [], []>} : vector<5x32xbf16>, vector<32x128xbf16>, vector<5x128xf32> -> vector<5x128xf32>
    %c72 = arith.constant 72 : index
    %c0_42 = arith.constant 0 : index
    %125 = vector.load %arg3[%c72, %c0_42] : memref<352x128xf32, #tpu.memory_space<vmem>>, vector<1x128xf32>
    %126 = vector.broadcast %125 : vector<1x128xf32> to vector<5x128xf32>
    %127 = arith.addf %124, %126 : vector<5x128xf32>
    %cst_43 = arith.constant 5.000000e-01 : f32
    %128 = vector.broadcast %cst_43 : f32 to vector<5x128xf32>
    %129 = arith.mulf %128, %127 : vector<5x128xf32>
    %cst_44 = arith.constant 4.471500e-02 : f32
    %130 = vector.broadcast %cst_44 : f32 to vector<5x128xf32>
    %131 = arith.mulf %130, %127 : vector<5x128xf32>
    %132 = arith.mulf %131, %127 : vector<5x128xf32>
    %133 = arith.mulf %132, %127 : vector<5x128xf32>
    %134 = arith.addf %127, %133 : vector<5x128xf32>
    %cst_45 = arith.constant 0.797884583 : f32
    %135 = vector.broadcast %cst_45 : f32 to vector<5x128xf32>
    %136 = arith.mulf %135, %134 : vector<5x128xf32>
    %137 = math.tanh %136 : vector<5x128xf32>
    %cst_46 = arith.constant 1.000000e+00 : f32
    %138 = vector.broadcast %cst_46 : f32 to vector<5x128xf32>
    %139 = arith.addf %138, %137 : vector<5x128xf32>
    %140 = arith.mulf %129, %139 : vector<5x128xf32>
    %c352 = arith.constant 352 : index
    %c0_47 = arith.constant 0 : index
    %141 = vector.load %arg2[%c352, %c0_47] : memref<1216x128xbf16, #tpu.memory_space<vmem>>, vector<128x32xbf16>
    %142 = arith.truncf %140 : vector<5x128xf32> to vector<5x128xbf16>
    %cst_48 = arith.constant dense<0.000000e+00> : vector<5x32xf32>
    %143 = tpu.matmul %142, %141, %cst_48 {dimension_numbers = #tpu.dot_dimension_numbers<[1], [0], [0], [1], [0, 0, 1, 1], [], []>} : vector<5x128xbf16>, vector<128x32xbf16>, vector<5x32xf32> -> vector<5x32xf32>
    %144 = arith.addf %97, %143 : vector<5x32xf32>
    %c80 = arith.constant 80 : index
    %c0_49 = arith.constant 0 : index
    %145 = vector.load %arg3[%c80, %c0_49] : memref<352x128xf32, #tpu.memory_space<vmem>>, vector<1x32xf32>
    %146 = vector.broadcast %145 : vector<1x32xf32> to vector<5x32xf32>
    %147 = arith.addf %144, %146 : vector<5x32xf32>
    %c88 = arith.constant 88 : index
    %c0_50 = arith.constant 0 : index
    %148 = vector.load %arg3[%c88, %c0_50] : memref<352x128xf32, #tpu.memory_space<vmem>>, vector<1x32xf32>
    %c96 = arith.constant 96 : index
    %c0_51 = arith.constant 0 : index
    %149 = vector.load %arg3[%c96, %c0_51] : memref<352x128xf32, #tpu.memory_space<vmem>>, vector<1x32xf32>
    %cst_52 = arith.constant dense<0.000000e+00> : vector<5xf32>
    %150 = vector.multi_reduction <add>, %147, %cst_52 [1] : vector<5x32xf32> to vector<5xf32>
    %151 = vector.shape_cast %150 : vector<5xf32> to vector<5x1xf32>
    %cst_53 = arith.constant 3.200000e+01 : f32
    %152 = vector.broadcast %cst_53 : f32 to vector<5x1xf32>
    %153 = arith.divf %151, %152 : vector<5x1xf32>
    %154 = vector.broadcast %153 : vector<5x1xf32> to vector<5x32xf32>
    %155 = arith.subf %147, %154 : vector<5x32xf32>
    %156 = arith.mulf %155, %155 : vector<5x32xf32>
    %cst_54 = arith.constant dense<0.000000e+00> : vector<5xf32>
    %157 = vector.multi_reduction <add>, %156, %cst_54 [1] : vector<5x32xf32> to vector<5xf32>
    %158 = vector.shape_cast %157 : vector<5xf32> to vector<5x1xf32>
    %cst_55 = arith.constant 3.200000e+01 : f32
    %159 = vector.broadcast %cst_55 : f32 to vector<5x1xf32>
    %160 = arith.divf %158, %159 : vector<5x1xf32>
    %161 = vector.broadcast %153 : vector<5x1xf32> to vector<5x32xf32>
    %162 = arith.subf %147, %161 : vector<5x32xf32>
    %cst_56 = arith.constant 9.99999997E-7 : f32
    %163 = vector.broadcast %cst_56 : f32 to vector<5x1xf32>
    %164 = arith.addf %160, %163 : vector<5x1xf32>
    %165 = math.rsqrt %164 : vector<5x1xf32>
    %166 = vector.broadcast %165 : vector<5x1xf32> to vector<5x32xf32>
    %167 = arith.mulf %162, %166 : vector<5x32xf32>
    %168 = vector.broadcast %148 : vector<1x32xf32> to vector<5x32xf32>
    %169 = arith.mulf %167, %168 : vector<5x32xf32>
    %170 = vector.broadcast %149 : vector<1x32xf32> to vector<5x32xf32>
    %171 = arith.addf %169, %170 : vector<5x32xf32>
    %c480 = arith.constant 480 : index
    %c0_57 = arith.constant 0 : index
    %172 = vector.load %arg2[%c480, %c0_57] : memref<1216x128xbf16, #tpu.memory_space<vmem>>, vector<32x96xbf16>
    %173 = arith.truncf %171 : vector<5x32xf32> to vector<5x32xbf16>
    %cst_58 = arith.constant dense<0.000000e+00> : vector<5x96xf32>
    %174 = tpu.matmul %173, %172, %cst_58 {dimension_numbers = #tpu.dot_dimension_numbers<[1], [0], [0], [1], [0, 0, 1, 1], [], []>} : vector<5x32xbf16>, vector<32x96xbf16>, vector<5x96xf32> -> vector<5x96xf32>
    %c104 = arith.constant 104 : index
    %c0_59 = arith.constant 0 : index
    %175 = vector.load %arg3[%c104, %c0_59] : memref<352x128xf32, #tpu.memory_space<vmem>>, vector<1x96xf32>
    %176 = vector.broadcast %175 : vector<1x96xf32> to vector<5x96xf32>
    %177 = arith.addf %174, %176 : vector<5x96xf32>
    %c512 = arith.constant 512 : index
    %c0_60 = arith.constant 0 : index
    %178 = vector.load %arg2[%c512, %c0_60] : memref<1216x128xbf16, #tpu.memory_space<vmem>>, vector<32x32xbf16>
    %cst_61 = arith.constant 0.000000e+00 : f32
    %179 = vector.broadcast %cst_61 : f32 to vector<5x32xf32>
    %180 = vector.extract_strided_slice %177 {offsets = [0, 0], sizes = [5, 16], strides = [1, 1]} : vector<5x96xf32> to vector<5x16xf32>
    %181 = vector.extract_strided_slice %177 {offsets = [0, 32], sizes = [5, 16], strides = [1, 1]} : vector<5x96xf32> to vector<5x16xf32>
    %182 = vector.extract_strided_slice %177 {offsets = [0, 64], sizes = [5, 16], strides = [1, 1]} : vector<5x96xf32> to vector<5x16xf32>
    %183 = arith.truncf %180 : vector<5x16xf32> to vector<5x16xbf16>
    %184 = arith.truncf %181 : vector<5x16xf32> to vector<5x16xbf16>
    "tpu.trace_start"() <{level = 10 : i32, message = "nd,md->nm"}> : () -> ()
    %cst_62 = arith.constant dense<0.000000e+00> : vector<5x5xf32>
    %185 = tpu.matmul %183, %184, %cst_62 {dimension_numbers = #tpu.dot_dimension_numbers<[1], [1], [0], [0], [0, 0, 1, 0], [], []>} : vector<5x16xbf16>, vector<5x16xbf16>, vector<5x5xf32> -> vector<5x5xf32>
    "tpu.trace_stop"() : () -> ()
    %cst_63 = arith.constant 2.500000e-01 : f32
    %186 = vector.broadcast %cst_63 : f32 to vector<5x5xf32>
    %187 = arith.mulf %185, %186 : vector<5x5xf32>
    %cst_64 = arith.constant dense<0xFF800000> : vector<5xf32>
    %188 = vector.multi_reduction <maximumf>, %187, %cst_64 [1] : vector<5x5xf32> to vector<5xf32>
    %189 = vector.shape_cast %188 : vector<5xf32> to vector<5x1xf32>
    %190 = vector.broadcast %189 : vector<5x1xf32> to vector<5x5xf32>
    %191 = arith.subf %187, %190 : vector<5x5xf32>
    %192 = math.exp %191 : vector<5x5xf32>
    %cst_65 = arith.constant dense<0.000000e+00> : vector<5xf32>
    %193 = vector.multi_reduction <add>, %192, %cst_65 [1] : vector<5x5xf32> to vector<5xf32>
    %194 = vector.shape_cast %193 : vector<5xf32> to vector<5x1xf32>
    %195 = tpu.reciprocal %194 {approx = true} : vector<5x1xf32> -> vector<5x1xf32>
    %196 = vector.broadcast %195 : vector<5x1xf32> to vector<5x5xf32>
    %197 = arith.mulf %192, %196 : vector<5x5xf32>
    %198 = arith.truncf %197 : vector<5x5xf32> to vector<5x5xbf16>
    %199 = arith.truncf %182 : vector<5x16xf32> to vector<5x16xbf16>
    %cst_66 = arith.constant dense<0.000000e+00> : vector<5x16xf32>
    %200 = tpu.matmul %198, %199, %cst_66 {dimension_numbers = #tpu.dot_dimension_numbers<[1], [0], [0], [1], [0, 0, 1, 1], [], []>} : vector<5x5xbf16>, vector<5x16xbf16>, vector<5x16xf32> -> vector<5x16xf32>
    %201 = vector.extract_strided_slice %178 {offsets = [0, 0], sizes = [16, 32], strides = [1, 1]} : vector<32x32xbf16> to vector<16x32xbf16>
    %202 = arith.truncf %200 : vector<5x16xf32> to vector<5x16xbf16>
    %cst_67 = arith.constant dense<0.000000e+00> : vector<5x32xf32>
    %203 = tpu.matmul %202, %201, %cst_67 {dimension_numbers = #tpu.dot_dimension_numbers<[1], [0], [0], [1], [0, 0, 1, 1], [], []>} : vector<5x16xbf16>, vector<16x32xbf16>, vector<5x32xf32> -> vector<5x32xf32>
    %204 = arith.addf %179, %203 : vector<5x32xf32>
    %205 = vector.extract_strided_slice %177 {offsets = [0, 16], sizes = [5, 16], strides = [1, 1]} : vector<5x96xf32> to vector<5x16xf32>
    %206 = vector.extract_strided_slice %177 {offsets = [0, 48], sizes = [5, 16], strides = [1, 1]} : vector<5x96xf32> to vector<5x16xf32>
    %207 = vector.extract_strided_slice %177 {offsets = [0, 80], sizes = [5, 16], strides = [1, 1]} : vector<5x96xf32> to vector<5x16xf32>
    %208 = arith.truncf %205 : vector<5x16xf32> to vector<5x16xbf16>
    %209 = arith.truncf %206 : vector<5x16xf32> to vector<5x16xbf16>
    "tpu.trace_start"() <{level = 10 : i32, message = "nd,md->nm"}> : () -> ()
    %cst_68 = arith.constant dense<0.000000e+00> : vector<5x5xf32>
    %210 = tpu.matmul %208, %209, %cst_68 {dimension_numbers = #tpu.dot_dimension_numbers<[1], [1], [0], [0], [0, 0, 1, 0], [], []>} : vector<5x16xbf16>, vector<5x16xbf16>, vector<5x5xf32> -> vector<5x5xf32>
    "tpu.trace_stop"() : () -> ()
    %cst_69 = arith.constant 2.500000e-01 : f32
    %211 = vector.broadcast %cst_69 : f32 to vector<5x5xf32>
    %212 = arith.mulf %210, %211 : vector<5x5xf32>
    %cst_70 = arith.constant dense<0xFF800000> : vector<5xf32>
    %213 = vector.multi_reduction <maximumf>, %212, %cst_70 [1] : vector<5x5xf32> to vector<5xf32>
    %214 = vector.shape_cast %213 : vector<5xf32> to vector<5x1xf32>
    %215 = vector.broadcast %214 : vector<5x1xf32> to vector<5x5xf32>
    %216 = arith.subf %212, %215 : vector<5x5xf32>
    %217 = math.exp %216 : vector<5x5xf32>
    %cst_71 = arith.constant dense<0.000000e+00> : vector<5xf32>
    %218 = vector.multi_reduction <add>, %217, %cst_71 [1] : vector<5x5xf32> to vector<5xf32>
    %219 = vector.shape_cast %218 : vector<5xf32> to vector<5x1xf32>
    %220 = tpu.reciprocal %219 {approx = true} : vector<5x1xf32> -> vector<5x1xf32>
    %221 = vector.broadcast %220 : vector<5x1xf32> to vector<5x5xf32>
    %222 = arith.mulf %217, %221 : vector<5x5xf32>
    %223 = arith.truncf %222 : vector<5x5xf32> to vector<5x5xbf16>
    %224 = arith.truncf %207 : vector<5x16xf32> to vector<5x16xbf16>
    %cst_72 = arith.constant dense<0.000000e+00> : vector<5x16xf32>
    %225 = tpu.matmul %223, %224, %cst_72 {dimension_numbers = #tpu.dot_dimension_numbers<[1], [0], [0], [1], [0, 0, 1, 1], [], []>} : vector<5x5xbf16>, vector<5x16xbf16>, vector<5x16xf32> -> vector<5x16xf32>
    %226 = vector.extract_strided_slice %178 {offsets = [16, 0], sizes = [16, 32], strides = [1, 1]} : vector<32x32xbf16> to vector<16x32xbf16>
    %227 = arith.truncf %225 : vector<5x16xf32> to vector<5x16xbf16>
    %cst_73 = arith.constant dense<0.000000e+00> : vector<5x32xf32>
    %228 = tpu.matmul %227, %226, %cst_73 {dimension_numbers = #tpu.dot_dimension_numbers<[1], [0], [0], [1], [0, 0, 1, 1], [], []>} : vector<5x16xbf16>, vector<16x32xbf16>, vector<5x32xf32> -> vector<5x32xf32>
    %229 = arith.addf %204, %228 : vector<5x32xf32>
    %230 = arith.addf %147, %229 : vector<5x32xf32>
    %c112 = arith.constant 112 : index
    %c0_74 = arith.constant 0 : index
    %231 = vector.load %arg3[%c112, %c0_74] : memref<352x128xf32, #tpu.memory_space<vmem>>, vector<1x32xf32>
    %232 = vector.broadcast %231 : vector<1x32xf32> to vector<5x32xf32>
    %233 = arith.addf %230, %232 : vector<5x32xf32>
    %c120 = arith.constant 120 : index
    %c0_75 = arith.constant 0 : index
    %234 = vector.load %arg3[%c120, %c0_75] : memref<352x128xf32, #tpu.memory_space<vmem>>, vector<1x32xf32>
    %c128 = arith.constant 128 : index
    %c0_76 = arith.constant 0 : index
    %235 = vector.load %arg3[%c128, %c0_76] : memref<352x128xf32, #tpu.memory_space<vmem>>, vector<1x32xf32>
    %cst_77 = arith.constant dense<0.000000e+00> : vector<5xf32>
    %236 = vector.multi_reduction <add>, %233, %cst_77 [1] : vector<5x32xf32> to vector<5xf32>
    %237 = vector.shape_cast %236 : vector<5xf32> to vector<5x1xf32>
    %cst_78 = arith.constant 3.200000e+01 : f32
    %238 = vector.broadcast %cst_78 : f32 to vector<5x1xf32>
    %239 = arith.divf %237, %238 : vector<5x1xf32>
    %240 = vector.broadcast %239 : vector<5x1xf32> to vector<5x32xf32>
    %241 = arith.subf %233, %240 : vector<5x32xf32>
    %242 = arith.mulf %241, %241 : vector<5x32xf32>
    %cst_79 = arith.constant dense<0.000000e+00> : vector<5xf32>
    %243 = vector.multi_reduction <add>, %242, %cst_79 [1] : vector<5x32xf32> to vector<5xf32>
    %244 = vector.shape_cast %243 : vector<5xf32> to vector<5x1xf32>
    %cst_80 = arith.constant 3.200000e+01 : f32
    %245 = vector.broadcast %cst_80 : f32 to vector<5x1xf32>
    %246 = arith.divf %244, %245 : vector<5x1xf32>
    %247 = vector.broadcast %239 : vector<5x1xf32> to vector<5x32xf32>
    %248 = arith.subf %233, %247 : vector<5x32xf32>
    %cst_81 = arith.constant 9.99999997E-7 : f32
    %249 = vector.broadcast %cst_81 : f32 to vector<5x1xf32>
    %250 = arith.addf %246, %249 : vector<5x1xf32>
    %251 = math.rsqrt %250 : vector<5x1xf32>
    %252 = vector.broadcast %251 : vector<5x1xf32> to vector<5x32xf32>
    %253 = arith.mulf %248, %252 : vector<5x32xf32>
    %254 = vector.broadcast %234 : vector<1x32xf32> to vector<5x32xf32>
    %255 = arith.mulf %253, %254 : vector<5x32xf32>
    %256 = vector.broadcast %235 : vector<1x32xf32> to vector<5x32xf32>
    %257 = arith.addf %255, %256 : vector<5x32xf32>
    %c544 = arith.constant 544 : index
    %c0_82 = arith.constant 0 : index
    %258 = vector.load %arg2[%c544, %c0_82] : memref<1216x128xbf16, #tpu.memory_space<vmem>>, vector<32x128xbf16>
    %259 = arith.truncf %257 : vector<5x32xf32> to vector<5x32xbf16>
    %cst_83 = arith.constant dense<0.000000e+00> : vector<5x128xf32>
    %260 = tpu.matmul %259, %258, %cst_83 {dimension_numbers = #tpu.dot_dimension_numbers<[1], [0], [0], [1], [0, 0, 1, 1], [], []>} : vector<5x32xbf16>, vector<32x128xbf16>, vector<5x128xf32> -> vector<5x128xf32>
    %c136 = arith.constant 136 : index
    %c0_84 = arith.constant 0 : index
    %261 = vector.load %arg3[%c136, %c0_84] : memref<352x128xf32, #tpu.memory_space<vmem>>, vector<1x128xf32>
    %262 = vector.broadcast %261 : vector<1x128xf32> to vector<5x128xf32>
    %263 = arith.addf %260, %262 : vector<5x128xf32>
    %cst_85 = arith.constant 5.000000e-01 : f32
    %264 = vector.broadcast %cst_85 : f32 to vector<5x128xf32>
    %265 = arith.mulf %264, %263 : vector<5x128xf32>
    %cst_86 = arith.constant 4.471500e-02 : f32
    %266 = vector.broadcast %cst_86 : f32 to vector<5x128xf32>
    %267 = arith.mulf %266, %263 : vector<5x128xf32>
    %268 = arith.mulf %267, %263 : vector<5x128xf32>
    %269 = arith.mulf %268, %263 : vector<5x128xf32>
    %270 = arith.addf %263, %269 : vector<5x128xf32>
    %cst_87 = arith.constant 0.797884583 : f32
    %271 = vector.broadcast %cst_87 : f32 to vector<5x128xf32>
    %272 = arith.mulf %271, %270 : vector<5x128xf32>
    %273 = math.tanh %272 : vector<5x128xf32>
    %cst_88 = arith.constant 1.000000e+00 : f32
    %274 = vector.broadcast %cst_88 : f32 to vector<5x128xf32>
    %275 = arith.addf %274, %273 : vector<5x128xf32>
    %276 = arith.mulf %265, %275 : vector<5x128xf32>
    %c576 = arith.constant 576 : index
    %c0_89 = arith.constant 0 : index
    %277 = vector.load %arg2[%c576, %c0_89] : memref<1216x128xbf16, #tpu.memory_space<vmem>>, vector<128x32xbf16>
    %278 = arith.truncf %276 : vector<5x128xf32> to vector<5x128xbf16>
    %cst_90 = arith.constant dense<0.000000e+00> : vector<5x32xf32>
    %279 = tpu.matmul %278, %277, %cst_90 {dimension_numbers = #tpu.dot_dimension_numbers<[1], [0], [0], [1], [0, 0, 1, 1], [], []>} : vector<5x128xbf16>, vector<128x32xbf16>, vector<5x32xf32> -> vector<5x32xf32>
    %280 = arith.addf %233, %279 : vector<5x32xf32>
    %c144 = arith.constant 144 : index
    %c0_91 = arith.constant 0 : index
    %281 = vector.load %arg3[%c144, %c0_91] : memref<352x128xf32, #tpu.memory_space<vmem>>, vector<1x32xf32>
    %282 = vector.broadcast %281 : vector<1x32xf32> to vector<5x32xf32>
    %283 = arith.addf %280, %282 : vector<5x32xf32>
    %c152 = arith.constant 152 : index
    %c0_92 = arith.constant 0 : index
    %284 = vector.load %arg3[%c152, %c0_92] : memref<352x128xf32, #tpu.memory_space<vmem>>, vector<1x32xf32>
    %c160 = arith.constant 160 : index
    %c0_93 = arith.constant 0 : index
    %285 = vector.load %arg3[%c160, %c0_93] : memref<352x128xf32, #tpu.memory_space<vmem>>, vector<1x32xf32>
    %cst_94 = arith.constant dense<0.000000e+00> : vector<5xf32>
    %286 = vector.multi_reduction <add>, %283, %cst_94 [1] : vector<5x32xf32> to vector<5xf32>
    %287 = vector.shape_cast %286 : vector<5xf32> to vector<5x1xf32>
    %cst_95 = arith.constant 3.200000e+01 : f32
    %288 = vector.broadcast %cst_95 : f32 to vector<5x1xf32>
    %289 = arith.divf %287, %288 : vector<5x1xf32>
    %290 = vector.broadcast %289 : vector<5x1xf32> to vector<5x32xf32>
    %291 = arith.subf %283, %290 : vector<5x32xf32>
    %292 = arith.mulf %291, %291 : vector<5x32xf32>
    %cst_96 = arith.constant dense<0.000000e+00> : vector<5xf32>
    %293 = vector.multi_reduction <add>, %292, %cst_96 [1] : vector<5x32xf32> to vector<5xf32>
    %294 = vector.shape_cast %293 : vector<5xf32> to vector<5x1xf32>
    %cst_97 = arith.constant 3.200000e+01 : f32
    %295 = vector.broadcast %cst_97 : f32 to vector<5x1xf32>
    %296 = arith.divf %294, %295 : vector<5x1xf32>
    %297 = vector.broadcast %289 : vector<5x1xf32> to vector<5x32xf32>
    %298 = arith.subf %283, %297 : vector<5x32xf32>
    %cst_98 = arith.constant 9.99999997E-7 : f32
    %299 = vector.broadcast %cst_98 : f32 to vector<5x1xf32>
    %300 = arith.addf %296, %299 : vector<5x1xf32>
    %301 = math.rsqrt %300 : vector<5x1xf32>
    %302 = vector.broadcast %301 : vector<5x1xf32> to vector<5x32xf32>
    %303 = arith.mulf %298, %302 : vector<5x32xf32>
    %304 = vector.broadcast %284 : vector<1x32xf32> to vector<5x32xf32>
    %305 = arith.mulf %303, %304 : vector<5x32xf32>
    %306 = vector.broadcast %285 : vector<1x32xf32> to vector<5x32xf32>
    %307 = arith.addf %305, %306 : vector<5x32xf32>
    %308 = vector.extract_strided_slice %307 {offsets = [0, 0], sizes = [1, 32], strides = [1, 1]} : vector<5x32xf32> to vector<1x32xf32>
    %309 = vector.extract_strided_slice %307 {offsets = [1, 0], sizes = [4, 32], strides = [1, 1]} : vector<5x32xf32> to vector<4x32xf32>
    %c1024 = arith.constant 1024 : index
    %c0_99 = arith.constant 0 : index
    %310 = vector.load %arg2[%c1024, %c0_99] : memref<1216x128xbf16, #tpu.memory_space<vmem>>, vector<32x32xbf16>
    %c1056 = arith.constant 1056 : index
    %c0_100 = arith.constant 0 : index
    %311 = vector.load %arg2[%c1056, %c0_100] : memref<1216x128xbf16, #tpu.memory_space<vmem>>, vector<32x64xbf16>
    %c1088 = arith.constant 1088 : index
    %c0_101 = arith.constant 0 : index
    %312 = vector.load %arg2[%c1088, %c0_101] : memref<1216x128xbf16, #tpu.memory_space<vmem>>, vector<32x10xbf16>
    %c328 = arith.constant 328 : index
    %c0_102 = arith.constant 0 : index
    %313 = vector.load %arg3[%c328, %c0_102] : memref<352x128xf32, #tpu.memory_space<vmem>>, vector<1x10xf32>
    %c1120 = arith.constant 1120 : index
    %c0_103 = arith.constant 0 : index
    %314 = vector.load %arg2[%c1120, %c0_103] : memref<1216x128xbf16, #tpu.memory_space<vmem>>, vector<32x32xbf16>
    %c1152 = arith.constant 1152 : index
    %c0_104 = arith.constant 0 : index
    %315 = vector.load %arg2[%c1152, %c0_104] : memref<1216x128xbf16, #tpu.memory_space<vmem>>, vector<32x64xbf16>
    %c1184 = arith.constant 1184 : index
    %c0_105 = arith.constant 0 : index
    %316 = vector.load %arg2[%c1184, %c0_105] : memref<1216x128xbf16, #tpu.memory_space<vmem>>, vector<32x10xbf16>
    %c336 = arith.constant 336 : index
    %c0_106 = arith.constant 0 : index
    %317 = vector.load %arg3[%c336, %c0_106] : memref<352x128xf32, #tpu.memory_space<vmem>>, vector<1x10xf32>
    %c176 = arith.constant 176 : index
    %c0_107 = arith.constant 0 : index
    %318 = vector.load %arg3[%c176, %c0_107] : memref<352x128xf32, #tpu.memory_space<vmem>>, vector<1x32xf32>
    %c184 = arith.constant 184 : index
    %c0_108 = arith.constant 0 : index
    %319 = vector.load %arg3[%c184, %c0_108] : memref<352x128xf32, #tpu.memory_space<vmem>>, vector<1x32xf32>
    %cst_109 = arith.constant dense<0.000000e+00> : vector<1xf32>
    %320 = vector.multi_reduction <add>, %308, %cst_109 [1] : vector<1x32xf32> to vector<1xf32>
    %321 = vector.shape_cast %320 : vector<1xf32> to vector<1x1xf32>
    %cst_110 = arith.constant 3.200000e+01 : f32
    %322 = vector.broadcast %cst_110 : f32 to vector<1x1xf32>
    %323 = arith.divf %321, %322 : vector<1x1xf32>
    %324 = vector.broadcast %323 : vector<1x1xf32> to vector<1x32xf32>
    %325 = arith.subf %308, %324 : vector<1x32xf32>
    %326 = arith.mulf %325, %325 : vector<1x32xf32>
    %cst_111 = arith.constant dense<0.000000e+00> : vector<1xf32>
    %327 = vector.multi_reduction <add>, %326, %cst_111 [1] : vector<1x32xf32> to vector<1xf32>
    %328 = vector.shape_cast %327 : vector<1xf32> to vector<1x1xf32>
    %cst_112 = arith.constant 3.200000e+01 : f32
    %329 = vector.broadcast %cst_112 : f32 to vector<1x1xf32>
    %330 = arith.divf %328, %329 : vector<1x1xf32>
    %331 = vector.broadcast %323 : vector<1x1xf32> to vector<1x32xf32>
    %332 = arith.subf %308, %331 : vector<1x32xf32>
    %cst_113 = arith.constant 9.99999974E-6 : f32
    %333 = vector.broadcast %cst_113 : f32 to vector<1x1xf32>
    %334 = arith.addf %330, %333 : vector<1x1xf32>
    %335 = math.rsqrt %334 : vector<1x1xf32>
    %336 = vector.broadcast %335 : vector<1x1xf32> to vector<1x32xf32>
    %337 = arith.mulf %332, %336 : vector<1x32xf32>
    %338 = arith.mulf %337, %318 : vector<1x32xf32>
    %339 = arith.addf %338, %319 : vector<1x32xf32>
    %c704 = arith.constant 704 : index
    %c0_114 = arith.constant 0 : index
    %340 = vector.load %arg2[%c704, %c0_114] : memref<1216x128xbf16, #tpu.memory_space<vmem>>, vector<32x32xbf16>
    %341 = arith.truncf %339 : vector<1x32xf32> to vector<1x32xbf16>
    %cst_115 = arith.constant dense<0.000000e+00> : vector<1x32xf32>
    %342 = tpu.matmul %341, %340, %cst_115 {dimension_numbers = #tpu.dot_dimension_numbers<[1], [0], [0], [1], [0, 0, 1, 1], [], []>} : vector<1x32xbf16>, vector<32x32xbf16>, vector<1x32xf32> -> vector<1x32xf32>
    %c168 = arith.constant 168 : index
    %c0_116 = arith.constant 0 : index
    %343 = vector.load %arg3[%c168, %c0_116] : memref<352x128xf32, #tpu.memory_space<vmem>>, vector<6x32xf32>
    %c736 = arith.constant 736 : index
    %c0_117 = arith.constant 0 : index
    %344 = vector.load %arg2[%c736, %c0_117] : memref<1216x128xbf16, #tpu.memory_space<vmem>>, vector<32x96xbf16>
    %345 = arith.truncf %342 : vector<1x32xf32> to vector<1x32xbf16>
    %cst_118 = arith.constant dense<0.000000e+00> : vector<1x96xf32>
    %346 = tpu.matmul %345, %344, %cst_118 {dimension_numbers = #tpu.dot_dimension_numbers<[1], [0], [0], [1], [0, 0, 1, 1], [], []>} : vector<1x32xbf16>, vector<32x96xbf16>, vector<1x96xf32> -> vector<1x96xf32>
    %c192 = arith.constant 192 : index
    %c0_119 = arith.constant 0 : index
    %347 = vector.load %arg3[%c192, %c0_119] : memref<352x128xf32, #tpu.memory_space<vmem>>, vector<1x96xf32>
    %348 = arith.addf %346, %347 : vector<1x96xf32>
    %c768 = arith.constant 768 : index
    %c0_120 = arith.constant 0 : index
    %349 = vector.load %arg2[%c768, %c0_120] : memref<1216x128xbf16, #tpu.memory_space<vmem>>, vector<32x96xbf16>
    %350 = arith.truncf %343 : vector<6x32xf32> to vector<6x32xbf16>
    %cst_121 = arith.constant dense<0.000000e+00> : vector<6x96xf32>
    %351 = tpu.matmul %350, %349, %cst_121 {dimension_numbers = #tpu.dot_dimension_numbers<[1], [0], [0], [1], [0, 0, 1, 1], [], []>} : vector<6x32xbf16>, vector<32x96xbf16>, vector<6x96xf32> -> vector<6x96xf32>
    %c200 = arith.constant 200 : index
    %c0_122 = arith.constant 0 : index
    %352 = vector.load %arg3[%c200, %c0_122] : memref<352x128xf32, #tpu.memory_space<vmem>>, vector<1x96xf32>
    %353 = vector.broadcast %352 : vector<1x96xf32> to vector<6x96xf32>
    %354 = arith.addf %351, %353 : vector<6x96xf32>
    %355 = vector.extract_strided_slice %348 {offsets = [0, 0], sizes = [1, 32], strides = [1, 1]} : vector<1x96xf32> to vector<1x32xf32>
    %356 = vector.extract_strided_slice %354 {offsets = [0, 0], sizes = [6, 32], strides = [1, 1]} : vector<6x96xf32> to vector<6x32xf32>
    %357 = vector.broadcast %355 : vector<1x32xf32> to vector<6x32xf32>
    %358 = arith.addf %357, %356 : vector<6x32xf32>
    %cst_123 = arith.constant 0.000000e+00 : f32
    %359 = vector.broadcast %cst_123 : f32 to vector<6x32xf32>
    %360 = arith.subf %359, %358 : vector<6x32xf32>
    %361 = math.exp %360 : vector<6x32xf32>
    %cst_124 = arith.constant 1.000000e+00 : f32
    %362 = vector.broadcast %cst_124 : f32 to vector<6x32xf32>
    %363 = arith.addf %362, %361 : vector<6x32xf32>
    %364 = tpu.reciprocal %363 {approx = true} : vector<6x32xf32> -> vector<6x32xf32>
    %365 = vector.extract_strided_slice %348 {offsets = [0, 32], sizes = [1, 32], strides = [1, 1]} : vector<1x96xf32> to vector<1x32xf32>
    %366 = vector.extract_strided_slice %354 {offsets = [0, 32], sizes = [6, 32], strides = [1, 1]} : vector<6x96xf32> to vector<6x32xf32>
    %367 = vector.broadcast %365 : vector<1x32xf32> to vector<6x32xf32>
    %368 = arith.addf %367, %366 : vector<6x32xf32>
    %cst_125 = arith.constant 0.000000e+00 : f32
    %369 = vector.broadcast %cst_125 : f32 to vector<6x32xf32>
    %370 = arith.subf %369, %368 : vector<6x32xf32>
    %371 = math.exp %370 : vector<6x32xf32>
    %cst_126 = arith.constant 1.000000e+00 : f32
    %372 = vector.broadcast %cst_126 : f32 to vector<6x32xf32>
    %373 = arith.addf %372, %371 : vector<6x32xf32>
    %374 = tpu.reciprocal %373 {approx = true} : vector<6x32xf32> -> vector<6x32xf32>
    %375 = vector.extract_strided_slice %348 {offsets = [0, 64], sizes = [1, 32], strides = [1, 1]} : vector<1x96xf32> to vector<1x32xf32>
    %376 = vector.extract_strided_slice %354 {offsets = [0, 64], sizes = [6, 32], strides = [1, 1]} : vector<6x96xf32> to vector<6x32xf32>
    %377 = arith.mulf %364, %376 : vector<6x32xf32>
    %378 = vector.broadcast %375 : vector<1x32xf32> to vector<6x32xf32>
    %379 = arith.addf %378, %377 : vector<6x32xf32>
    %380 = math.tanh %379 : vector<6x32xf32>
    %cst_127 = arith.constant 1.000000e+00 : f32
    %381 = vector.broadcast %cst_127 : f32 to vector<6x32xf32>
    %382 = arith.subf %381, %374 : vector<6x32xf32>
    %383 = arith.mulf %382, %380 : vector<6x32xf32>
    %384 = arith.mulf %374, %343 : vector<6x32xf32>
    %385 = arith.addf %383, %384 : vector<6x32xf32>
    %c208 = arith.constant 208 : index
    %c0_128 = arith.constant 0 : index
    %386 = vector.load %arg3[%c208, %c0_128] : memref<352x128xf32, #tpu.memory_space<vmem>>, vector<1x32xf32>
    %c216 = arith.constant 216 : index
    %c0_129 = arith.constant 0 : index
    %387 = vector.load %arg3[%c216, %c0_129] : memref<352x128xf32, #tpu.memory_space<vmem>>, vector<1x32xf32>
    %cst_130 = arith.constant dense<0.000000e+00> : vector<6xf32>
    %388 = vector.multi_reduction <add>, %385, %cst_130 [1] : vector<6x32xf32> to vector<6xf32>
    %389 = vector.shape_cast %388 : vector<6xf32> to vector<6x1xf32>
    %cst_131 = arith.constant 3.200000e+01 : f32
    %390 = vector.broadcast %cst_131 : f32 to vector<6x1xf32>
    %391 = arith.divf %389, %390 : vector<6x1xf32>
    %392 = vector.broadcast %391 : vector<6x1xf32> to vector<6x32xf32>
    %393 = arith.subf %385, %392 : vector<6x32xf32>
    %394 = arith.mulf %393, %393 : vector<6x32xf32>
    %cst_132 = arith.constant dense<0.000000e+00> : vector<6xf32>
    %395 = vector.multi_reduction <add>, %394, %cst_132 [1] : vector<6x32xf32> to vector<6xf32>
    %396 = vector.shape_cast %395 : vector<6xf32> to vector<6x1xf32>
    %cst_133 = arith.constant 3.200000e+01 : f32
    %397 = vector.broadcast %cst_133 : f32 to vector<6x1xf32>
    %398 = arith.divf %396, %397 : vector<6x1xf32>
    %399 = vector.broadcast %391 : vector<6x1xf32> to vector<6x32xf32>
    %400 = arith.subf %385, %399 : vector<6x32xf32>
    %cst_134 = arith.constant 9.99999974E-6 : f32
    %401 = vector.broadcast %cst_134 : f32 to vector<6x1xf32>
    %402 = arith.addf %398, %401 : vector<6x1xf32>
    %403 = math.rsqrt %402 : vector<6x1xf32>
    %404 = vector.broadcast %403 : vector<6x1xf32> to vector<6x32xf32>
    %405 = arith.mulf %400, %404 : vector<6x32xf32>
    %406 = vector.broadcast %386 : vector<1x32xf32> to vector<6x32xf32>
    %407 = arith.mulf %405, %406 : vector<6x32xf32>
    %408 = vector.broadcast %387 : vector<1x32xf32> to vector<6x32xf32>
    %409 = arith.addf %407, %408 : vector<6x32xf32>
    %c800 = arith.constant 800 : index
    %c0_135 = arith.constant 0 : index
    %410 = vector.load %arg2[%c800, %c0_135] : memref<1216x128xbf16, #tpu.memory_space<vmem>>, vector<32x32xbf16>
    %411 = arith.truncf %409 : vector<6x32xf32> to vector<6x32xbf16>
    %cst_136 = arith.constant dense<0.000000e+00> : vector<6x32xf32>
    %412 = tpu.matmul %411, %410, %cst_136 {dimension_numbers = #tpu.dot_dimension_numbers<[1], [0], [0], [1], [0, 0, 1, 1], [], []>} : vector<6x32xbf16>, vector<32x32xbf16>, vector<6x32xf32> -> vector<6x32xf32>
    %c224 = arith.constant 224 : index
    %c0_137 = arith.constant 0 : index
    %413 = vector.load %arg3[%c224, %c0_137] : memref<352x128xf32, #tpu.memory_space<vmem>>, vector<1x32xf32>
    %414 = vector.broadcast %413 : vector<1x32xf32> to vector<6x32xf32>
    %415 = arith.addf %412, %414 : vector<6x32xf32>
    %cst_138 = arith.constant 0.000000e+00 : f32
    %416 = vector.broadcast %cst_138 : f32 to vector<6x32xf32>
    %417 = arith.maximumf %415, %416 : vector<6x32xf32>
    %c832 = arith.constant 832 : index
    %c0_139 = arith.constant 0 : index
    %418 = vector.load %arg2[%c832, %c0_139] : memref<1216x128xbf16, #tpu.memory_space<vmem>>, vector<32x32xbf16>
    %419 = arith.truncf %417 : vector<6x32xf32> to vector<6x32xbf16>
    %cst_140 = arith.constant dense<0.000000e+00> : vector<6x32xf32>
    %420 = tpu.matmul %419, %418, %cst_140 {dimension_numbers = #tpu.dot_dimension_numbers<[1], [0], [0], [1], [0, 0, 1, 1], [], []>} : vector<6x32xbf16>, vector<32x32xbf16>, vector<6x32xf32> -> vector<6x32xf32>
    %c232 = arith.constant 232 : index
    %c0_141 = arith.constant 0 : index
    %421 = vector.load %arg3[%c232, %c0_141] : memref<352x128xf32, #tpu.memory_space<vmem>>, vector<1x32xf32>
    %422 = vector.broadcast %421 : vector<1x32xf32> to vector<6x32xf32>
    %423 = arith.addf %420, %422 : vector<6x32xf32>
    %424 = arith.addf %385, %423 : vector<6x32xf32>
    %c240 = arith.constant 240 : index
    %c0_142 = arith.constant 0 : index
    %425 = vector.load %arg3[%c240, %c0_142] : memref<352x128xf32, #tpu.memory_space<vmem>>, vector<6x32xf32>
    %426 = arith.addf %424, %425 : vector<6x32xf32>
    %c256_143 = arith.constant 256 : index
    %c0_144 = arith.constant 0 : index
    %427 = vector.load %arg3[%c256_143, %c0_144] : memref<352x128xf32, #tpu.memory_space<vmem>>, vector<1x32xf32>
    %c264 = arith.constant 264 : index
    %c0_145 = arith.constant 0 : index
    %428 = vector.load %arg3[%c264, %c0_145] : memref<352x128xf32, #tpu.memory_space<vmem>>, vector<1x32xf32>
    %cst_146 = arith.constant dense<0.000000e+00> : vector<1xf32>
    %429 = vector.multi_reduction <add>, %308, %cst_146 [1] : vector<1x32xf32> to vector<1xf32>
    %430 = vector.shape_cast %429 : vector<1xf32> to vector<1x1xf32>
    %cst_147 = arith.constant 3.200000e+01 : f32
    %431 = vector.broadcast %cst_147 : f32 to vector<1x1xf32>
    %432 = arith.divf %430, %431 : vector<1x1xf32>
    %433 = vector.broadcast %432 : vector<1x1xf32> to vector<1x32xf32>
    %434 = arith.subf %308, %433 : vector<1x32xf32>
    %435 = arith.mulf %434, %434 : vector<1x32xf32>
    %cst_148 = arith.constant dense<0.000000e+00> : vector<1xf32>
    %436 = vector.multi_reduction <add>, %435, %cst_148 [1] : vector<1x32xf32> to vector<1xf32>
    %437 = vector.shape_cast %436 : vector<1xf32> to vector<1x1xf32>
    %cst_149 = arith.constant 3.200000e+01 : f32
    %438 = vector.broadcast %cst_149 : f32 to vector<1x1xf32>
    %439 = arith.divf %437, %438 : vector<1x1xf32>
    %440 = vector.broadcast %432 : vector<1x1xf32> to vector<1x32xf32>
    %441 = arith.subf %308, %440 : vector<1x32xf32>
    %cst_150 = arith.constant 9.99999974E-6 : f32
    %442 = vector.broadcast %cst_150 : f32 to vector<1x1xf32>
    %443 = arith.addf %439, %442 : vector<1x1xf32>
    %444 = math.rsqrt %443 : vector<1x1xf32>
    %445 = vector.broadcast %444 : vector<1x1xf32> to vector<1x32xf32>
    %446 = arith.mulf %441, %445 : vector<1x32xf32>
    %447 = arith.mulf %446, %427 : vector<1x32xf32>
    %448 = arith.addf %447, %428 : vector<1x32xf32>
    %c864 = arith.constant 864 : index
    %c0_151 = arith.constant 0 : index
    %449 = vector.load %arg2[%c864, %c0_151] : memref<1216x128xbf16, #tpu.memory_space<vmem>>, vector<32x32xbf16>
    %450 = arith.truncf %448 : vector<1x32xf32> to vector<1x32xbf16>
    %cst_152 = arith.constant dense<0.000000e+00> : vector<1x32xf32>
    %451 = tpu.matmul %450, %449, %cst_152 {dimension_numbers = #tpu.dot_dimension_numbers<[1], [0], [0], [1], [0, 0, 1, 1], [], []>} : vector<1x32xbf16>, vector<32x32xbf16>, vector<1x32xf32> -> vector<1x32xf32>
    %c248 = arith.constant 248 : index
    %c0_153 = arith.constant 0 : index
    %452 = vector.load %arg3[%c248, %c0_153] : memref<352x128xf32, #tpu.memory_space<vmem>>, vector<5x32xf32>
    %c896 = arith.constant 896 : index
    %c0_154 = arith.constant 0 : index
    %453 = vector.load %arg2[%c896, %c0_154] : memref<1216x128xbf16, #tpu.memory_space<vmem>>, vector<32x96xbf16>
    %454 = arith.truncf %451 : vector<1x32xf32> to vector<1x32xbf16>
    %cst_155 = arith.constant dense<0.000000e+00> : vector<1x96xf32>
    %455 = tpu.matmul %454, %453, %cst_155 {dimension_numbers = #tpu.dot_dimension_numbers<[1], [0], [0], [1], [0, 0, 1, 1], [], []>} : vector<1x32xbf16>, vector<32x96xbf16>, vector<1x96xf32> -> vector<1x96xf32>
    %c272 = arith.constant 272 : index
    %c0_156 = arith.constant 0 : index
    %456 = vector.load %arg3[%c272, %c0_156] : memref<352x128xf32, #tpu.memory_space<vmem>>, vector<1x96xf32>
    %457 = arith.addf %455, %456 : vector<1x96xf32>
    %c928 = arith.constant 928 : index
    %c0_157 = arith.constant 0 : index
    %458 = vector.load %arg2[%c928, %c0_157] : memref<1216x128xbf16, #tpu.memory_space<vmem>>, vector<32x96xbf16>
    %459 = arith.truncf %452 : vector<5x32xf32> to vector<5x32xbf16>
    %cst_158 = arith.constant dense<0.000000e+00> : vector<5x96xf32>
    %460 = tpu.matmul %459, %458, %cst_158 {dimension_numbers = #tpu.dot_dimension_numbers<[1], [0], [0], [1], [0, 0, 1, 1], [], []>} : vector<5x32xbf16>, vector<32x96xbf16>, vector<5x96xf32> -> vector<5x96xf32>
    %c280 = arith.constant 280 : index
    %c0_159 = arith.constant 0 : index
    %461 = vector.load %arg3[%c280, %c0_159] : memref<352x128xf32, #tpu.memory_space<vmem>>, vector<1x96xf32>
    %462 = vector.broadcast %461 : vector<1x96xf32> to vector<5x96xf32>
    %463 = arith.addf %460, %462 : vector<5x96xf32>
    %464 = vector.extract_strided_slice %457 {offsets = [0, 0], sizes = [1, 32], strides = [1, 1]} : vector<1x96xf32> to vector<1x32xf32>
    %465 = vector.extract_strided_slice %463 {offsets = [0, 0], sizes = [5, 32], strides = [1, 1]} : vector<5x96xf32> to vector<5x32xf32>
    %466 = vector.broadcast %464 : vector<1x32xf32> to vector<5x32xf32>
    %467 = arith.addf %466, %465 : vector<5x32xf32>
    %cst_160 = arith.constant 0.000000e+00 : f32
    %468 = vector.broadcast %cst_160 : f32 to vector<5x32xf32>
    %469 = arith.subf %468, %467 : vector<5x32xf32>
    %470 = math.exp %469 : vector<5x32xf32>
    %cst_161 = arith.constant 1.000000e+00 : f32
    %471 = vector.broadcast %cst_161 : f32 to vector<5x32xf32>
    %472 = arith.addf %471, %470 : vector<5x32xf32>
    %473 = tpu.reciprocal %472 {approx = true} : vector<5x32xf32> -> vector<5x32xf32>
    %474 = vector.extract_strided_slice %457 {offsets = [0, 32], sizes = [1, 32], strides = [1, 1]} : vector<1x96xf32> to vector<1x32xf32>
    %475 = vector.extract_strided_slice %463 {offsets = [0, 32], sizes = [5, 32], strides = [1, 1]} : vector<5x96xf32> to vector<5x32xf32>
    %476 = vector.broadcast %474 : vector<1x32xf32> to vector<5x32xf32>
    %477 = arith.addf %476, %475 : vector<5x32xf32>
    %cst_162 = arith.constant 0.000000e+00 : f32
    %478 = vector.broadcast %cst_162 : f32 to vector<5x32xf32>
    %479 = arith.subf %478, %477 : vector<5x32xf32>
    %480 = math.exp %479 : vector<5x32xf32>
    %cst_163 = arith.constant 1.000000e+00 : f32
    %481 = vector.broadcast %cst_163 : f32 to vector<5x32xf32>
    %482 = arith.addf %481, %480 : vector<5x32xf32>
    %483 = tpu.reciprocal %482 {approx = true} : vector<5x32xf32> -> vector<5x32xf32>
    %484 = vector.extract_strided_slice %457 {offsets = [0, 64], sizes = [1, 32], strides = [1, 1]} : vector<1x96xf32> to vector<1x32xf32>
    %485 = vector.extract_strided_slice %463 {offsets = [0, 64], sizes = [5, 32], strides = [1, 1]} : vector<5x96xf32> to vector<5x32xf32>
    %486 = arith.mulf %473, %485 : vector<5x32xf32>
    %487 = vector.broadcast %484 : vector<1x32xf32> to vector<5x32xf32>
    %488 = arith.addf %487, %486 : vector<5x32xf32>
    %489 = math.tanh %488 : vector<5x32xf32>
    %cst_164 = arith.constant 1.000000e+00 : f32
    %490 = vector.broadcast %cst_164 : f32 to vector<5x32xf32>
    %491 = arith.subf %490, %483 : vector<5x32xf32>
    %492 = arith.mulf %491, %489 : vector<5x32xf32>
    %493 = arith.mulf %483, %452 : vector<5x32xf32>
    %494 = arith.addf %492, %493 : vector<5x32xf32>
    %c288_165 = arith.constant 288 : index
    %c0_166 = arith.constant 0 : index
    %495 = vector.load %arg3[%c288_165, %c0_166] : memref<352x128xf32, #tpu.memory_space<vmem>>, vector<1x32xf32>
    %c296 = arith.constant 296 : index
    %c0_167 = arith.constant 0 : index
    %496 = vector.load %arg3[%c296, %c0_167] : memref<352x128xf32, #tpu.memory_space<vmem>>, vector<1x32xf32>
    %cst_168 = arith.constant dense<0.000000e+00> : vector<5xf32>
    %497 = vector.multi_reduction <add>, %494, %cst_168 [1] : vector<5x32xf32> to vector<5xf32>
    %498 = vector.shape_cast %497 : vector<5xf32> to vector<5x1xf32>
    %cst_169 = arith.constant 3.200000e+01 : f32
    %499 = vector.broadcast %cst_169 : f32 to vector<5x1xf32>
    %500 = arith.divf %498, %499 : vector<5x1xf32>
    %501 = vector.broadcast %500 : vector<5x1xf32> to vector<5x32xf32>
    %502 = arith.subf %494, %501 : vector<5x32xf32>
    %503 = arith.mulf %502, %502 : vector<5x32xf32>
    %cst_170 = arith.constant dense<0.000000e+00> : vector<5xf32>
    %504 = vector.multi_reduction <add>, %503, %cst_170 [1] : vector<5x32xf32> to vector<5xf32>
    %505 = vector.shape_cast %504 : vector<5xf32> to vector<5x1xf32>
    %cst_171 = arith.constant 3.200000e+01 : f32
    %506 = vector.broadcast %cst_171 : f32 to vector<5x1xf32>
    %507 = arith.divf %505, %506 : vector<5x1xf32>
    %508 = vector.broadcast %500 : vector<5x1xf32> to vector<5x32xf32>
    %509 = arith.subf %494, %508 : vector<5x32xf32>
    %cst_172 = arith.constant 9.99999974E-6 : f32
    %510 = vector.broadcast %cst_172 : f32 to vector<5x1xf32>
    %511 = arith.addf %507, %510 : vector<5x1xf32>
    %512 = math.rsqrt %511 : vector<5x1xf32>
    %513 = vector.broadcast %512 : vector<5x1xf32> to vector<5x32xf32>
    %514 = arith.mulf %509, %513 : vector<5x32xf32>
    %515 = vector.broadcast %495 : vector<1x32xf32> to vector<5x32xf32>
    %516 = arith.mulf %514, %515 : vector<5x32xf32>
    %517 = vector.broadcast %496 : vector<1x32xf32> to vector<5x32xf32>
    %518 = arith.addf %516, %517 : vector<5x32xf32>
    %c960 = arith.constant 960 : index
    %c0_173 = arith.constant 0 : index
    %519 = vector.load %arg2[%c960, %c0_173] : memref<1216x128xbf16, #tpu.memory_space<vmem>>, vector<32x32xbf16>
    %520 = arith.truncf %518 : vector<5x32xf32> to vector<5x32xbf16>
    %cst_174 = arith.constant dense<0.000000e+00> : vector<5x32xf32>
    %521 = tpu.matmul %520, %519, %cst_174 {dimension_numbers = #tpu.dot_dimension_numbers<[1], [0], [0], [1], [0, 0, 1, 1], [], []>} : vector<5x32xbf16>, vector<32x32xbf16>, vector<5x32xf32> -> vector<5x32xf32>
    %c304 = arith.constant 304 : index
    %c0_175 = arith.constant 0 : index
    %522 = vector.load %arg3[%c304, %c0_175] : memref<352x128xf32, #tpu.memory_space<vmem>>, vector<1x32xf32>
    %523 = vector.broadcast %522 : vector<1x32xf32> to vector<5x32xf32>
    %524 = arith.addf %521, %523 : vector<5x32xf32>
    %cst_176 = arith.constant 0.000000e+00 : f32
    %525 = vector.broadcast %cst_176 : f32 to vector<5x32xf32>
    %526 = arith.maximumf %524, %525 : vector<5x32xf32>
    %c992 = arith.constant 992 : index
    %c0_177 = arith.constant 0 : index
    %527 = vector.load %arg2[%c992, %c0_177] : memref<1216x128xbf16, #tpu.memory_space<vmem>>, vector<32x32xbf16>
    %528 = arith.truncf %526 : vector<5x32xf32> to vector<5x32xbf16>
    %cst_178 = arith.constant dense<0.000000e+00> : vector<5x32xf32>
    %529 = tpu.matmul %528, %527, %cst_178 {dimension_numbers = #tpu.dot_dimension_numbers<[1], [0], [0], [1], [0, 0, 1, 1], [], []>} : vector<5x32xbf16>, vector<32x32xbf16>, vector<5x32xf32> -> vector<5x32xf32>
    %c312 = arith.constant 312 : index
    %c0_179 = arith.constant 0 : index
    %530 = vector.load %arg3[%c312, %c0_179] : memref<352x128xf32, #tpu.memory_space<vmem>>, vector<1x32xf32>
    %531 = vector.broadcast %530 : vector<1x32xf32> to vector<5x32xf32>
    %532 = arith.addf %529, %531 : vector<5x32xf32>
    %533 = arith.addf %494, %532 : vector<5x32xf32>
    %c320_180 = arith.constant 320 : index
    %c0_181 = arith.constant 0 : index
    %534 = vector.load %arg3[%c320_180, %c0_181] : memref<352x128xf32, #tpu.memory_space<vmem>>, vector<5x32xf32>
    %535 = arith.addf %533, %534 : vector<5x32xf32>
    %536 = arith.truncf %308 : vector<1x32xf32> to vector<1x32xbf16>
    %cst_182 = arith.constant dense<0.000000e+00> : vector<1x32xf32>
    %537 = tpu.matmul %536, %310, %cst_182 {dimension_numbers = #tpu.dot_dimension_numbers<[1], [0], [0], [1], [0, 0, 1, 1], [], []>} : vector<1x32xbf16>, vector<32x32xbf16>, vector<1x32xf32> -> vector<1x32xf32>
    %538 = arith.truncf %426 : vector<6x32xf32> to vector<6x32xbf16>
    %cst_183 = arith.constant dense<0.000000e+00> : vector<6x64xf32>
    %539 = tpu.matmul %538, %311, %cst_183 {dimension_numbers = #tpu.dot_dimension_numbers<[1], [0], [0], [1], [0, 0, 1, 1], [], []>} : vector<6x32xbf16>, vector<32x64xbf16>, vector<6x64xf32> -> vector<6x64xf32>
    %540 = vector.extract_strided_slice %539 {offsets = [0, 0], sizes = [6, 32], strides = [1, 1]} : vector<6x64xf32> to vector<6x32xf32>
    %541 = vector.extract_strided_slice %539 {offsets = [0, 32], sizes = [6, 32], strides = [1, 1]} : vector<6x64xf32> to vector<6x32xf32>
    %cst_184 = arith.constant 0.000000e+00 : f32
    %542 = vector.broadcast %cst_184 : f32 to vector<1x10xf32>
    %cst_185 = arith.constant 0.000000e+00 : f32
    %543 = vector.broadcast %cst_185 : f32 to vector<1x6xf32>
    %544 = vector.extract_strided_slice %537 {offsets = [0, 0], sizes = [1, 8], strides = [1, 1]} : vector<1x32xf32> to vector<1x8xf32>
    %545 = vector.extract_strided_slice %540 {offsets = [0, 0], sizes = [6, 8], strides = [1, 1]} : vector<6x32xf32> to vector<6x8xf32>
    %546 = arith.truncf %544 : vector<1x8xf32> to vector<1x8xbf16>
    %547 = arith.truncf %545 : vector<6x8xf32> to vector<6x8xbf16>
    "tpu.trace_start"() <{level = 10 : i32, message = "nd,md->nm"}> : () -> ()
    %cst_186 = arith.constant dense<0.000000e+00> : vector<1x6xf32>
    %548 = tpu.matmul %546, %547, %cst_186 {dimension_numbers = #tpu.dot_dimension_numbers<[1], [1], [0], [0], [0, 0, 1, 0], [], []>} : vector<1x8xbf16>, vector<6x8xbf16>, vector<1x6xf32> -> vector<1x6xf32>
    "tpu.trace_stop"() : () -> ()
    %cst_187 = arith.constant 0.353553385 : f32
    %549 = vector.broadcast %cst_187 : f32 to vector<1x6xf32>
    %550 = arith.mulf %548, %549 : vector<1x6xf32>
    %cst_188 = arith.constant dense<0xFF800000> : vector<1xf32>
    %551 = vector.multi_reduction <maximumf>, %550, %cst_188 [1] : vector<1x6xf32> to vector<1xf32>
    %552 = vector.shape_cast %551 : vector<1xf32> to vector<1x1xf32>
    %553 = vector.broadcast %552 : vector<1x1xf32> to vector<1x6xf32>
    %554 = arith.subf %550, %553 : vector<1x6xf32>
    %555 = math.exp %554 : vector<1x6xf32>
    %cst_189 = arith.constant dense<0.000000e+00> : vector<1xf32>
    %556 = vector.multi_reduction <add>, %555, %cst_189 [1] : vector<1x6xf32> to vector<1xf32>
    %557 = vector.shape_cast %556 : vector<1xf32> to vector<1x1xf32>
    %558 = tpu.reciprocal %557 {approx = true} : vector<1x1xf32> -> vector<1x1xf32>
    %559 = vector.broadcast %558 : vector<1x1xf32> to vector<1x6xf32>
    %560 = arith.mulf %555, %559 : vector<1x6xf32>
    %561 = arith.addf %543, %560 : vector<1x6xf32>
    %562 = vector.extract_strided_slice %541 {offsets = [0, 0], sizes = [6, 8], strides = [1, 1]} : vector<6x32xf32> to vector<6x8xf32>
    %563 = arith.truncf %560 : vector<1x6xf32> to vector<1x6xbf16>
    %564 = arith.truncf %562 : vector<6x8xf32> to vector<6x8xbf16>
    %cst_190 = arith.constant dense<0.000000e+00> : vector<1x8xf32>
    %565 = tpu.matmul %563, %564, %cst_190 {dimension_numbers = #tpu.dot_dimension_numbers<[1], [0], [0], [1], [0, 0, 1, 1], [], []>} : vector<1x6xbf16>, vector<6x8xbf16>, vector<1x8xf32> -> vector<1x8xf32>
    %566 = vector.extract_strided_slice %312 {offsets = [0, 0], sizes = [8, 10], strides = [1, 1]} : vector<32x10xbf16> to vector<8x10xbf16>
    %567 = arith.truncf %565 : vector<1x8xf32> to vector<1x8xbf16>
    %cst_191 = arith.constant dense<0.000000e+00> : vector<1x10xf32>
    %568 = tpu.matmul %567, %566, %cst_191 {dimension_numbers = #tpu.dot_dimension_numbers<[1], [0], [0], [1], [0, 0, 1, 1], [], []>} : vector<1x8xbf16>, vector<8x10xbf16>, vector<1x10xf32> -> vector<1x10xf32>
    %569 = arith.addf %542, %568 : vector<1x10xf32>
    %570 = vector.extract_strided_slice %537 {offsets = [0, 8], sizes = [1, 8], strides = [1, 1]} : vector<1x32xf32> to vector<1x8xf32>
    %571 = vector.extract_strided_slice %540 {offsets = [0, 8], sizes = [6, 8], strides = [1, 1]} : vector<6x32xf32> to vector<6x8xf32>
    %572 = arith.truncf %570 : vector<1x8xf32> to vector<1x8xbf16>
    %573 = arith.truncf %571 : vector<6x8xf32> to vector<6x8xbf16>
    "tpu.trace_start"() <{level = 10 : i32, message = "nd,md->nm"}> : () -> ()
    %cst_192 = arith.constant dense<0.000000e+00> : vector<1x6xf32>
    %574 = tpu.matmul %572, %573, %cst_192 {dimension_numbers = #tpu.dot_dimension_numbers<[1], [1], [0], [0], [0, 0, 1, 0], [], []>} : vector<1x8xbf16>, vector<6x8xbf16>, vector<1x6xf32> -> vector<1x6xf32>
    "tpu.trace_stop"() : () -> ()
    %cst_193 = arith.constant 0.353553385 : f32
    %575 = vector.broadcast %cst_193 : f32 to vector<1x6xf32>
    %576 = arith.mulf %574, %575 : vector<1x6xf32>
    %cst_194 = arith.constant dense<0xFF800000> : vector<1xf32>
    %577 = vector.multi_reduction <maximumf>, %576, %cst_194 [1] : vector<1x6xf32> to vector<1xf32>
    %578 = vector.shape_cast %577 : vector<1xf32> to vector<1x1xf32>
    %579 = vector.broadcast %578 : vector<1x1xf32> to vector<1x6xf32>
    %580 = arith.subf %576, %579 : vector<1x6xf32>
    %581 = math.exp %580 : vector<1x6xf32>
    %cst_195 = arith.constant dense<0.000000e+00> : vector<1xf32>
    %582 = vector.multi_reduction <add>, %581, %cst_195 [1] : vector<1x6xf32> to vector<1xf32>
    %583 = vector.shape_cast %582 : vector<1xf32> to vector<1x1xf32>
    %584 = tpu.reciprocal %583 {approx = true} : vector<1x1xf32> -> vector<1x1xf32>
    %585 = vector.broadcast %584 : vector<1x1xf32> to vector<1x6xf32>
    %586 = arith.mulf %581, %585 : vector<1x6xf32>
    %587 = arith.addf %561, %586 : vector<1x6xf32>
    %588 = vector.extract_strided_slice %541 {offsets = [0, 8], sizes = [6, 8], strides = [1, 1]} : vector<6x32xf32> to vector<6x8xf32>
    %589 = arith.truncf %586 : vector<1x6xf32> to vector<1x6xbf16>
    %590 = arith.truncf %588 : vector<6x8xf32> to vector<6x8xbf16>
    %cst_196 = arith.constant dense<0.000000e+00> : vector<1x8xf32>
    %591 = tpu.matmul %589, %590, %cst_196 {dimension_numbers = #tpu.dot_dimension_numbers<[1], [0], [0], [1], [0, 0, 1, 1], [], []>} : vector<1x6xbf16>, vector<6x8xbf16>, vector<1x8xf32> -> vector<1x8xf32>
    %592 = vector.extract_strided_slice %312 {offsets = [8, 0], sizes = [8, 10], strides = [1, 1]} : vector<32x10xbf16> to vector<8x10xbf16>
    %593 = arith.truncf %591 : vector<1x8xf32> to vector<1x8xbf16>
    %cst_197 = arith.constant dense<0.000000e+00> : vector<1x10xf32>
    %594 = tpu.matmul %593, %592, %cst_197 {dimension_numbers = #tpu.dot_dimension_numbers<[1], [0], [0], [1], [0, 0, 1, 1], [], []>} : vector<1x8xbf16>, vector<8x10xbf16>, vector<1x10xf32> -> vector<1x10xf32>
    %595 = arith.addf %569, %594 : vector<1x10xf32>
    %596 = vector.extract_strided_slice %537 {offsets = [0, 16], sizes = [1, 8], strides = [1, 1]} : vector<1x32xf32> to vector<1x8xf32>
    %597 = vector.extract_strided_slice %540 {offsets = [0, 16], sizes = [6, 8], strides = [1, 1]} : vector<6x32xf32> to vector<6x8xf32>
    %598 = arith.truncf %596 : vector<1x8xf32> to vector<1x8xbf16>
    %599 = arith.truncf %597 : vector<6x8xf32> to vector<6x8xbf16>
    "tpu.trace_start"() <{level = 10 : i32, message = "nd,md->nm"}> : () -> ()
    %cst_198 = arith.constant dense<0.000000e+00> : vector<1x6xf32>
    %600 = tpu.matmul %598, %599, %cst_198 {dimension_numbers = #tpu.dot_dimension_numbers<[1], [1], [0], [0], [0, 0, 1, 0], [], []>} : vector<1x8xbf16>, vector<6x8xbf16>, vector<1x6xf32> -> vector<1x6xf32>
    "tpu.trace_stop"() : () -> ()
    %cst_199 = arith.constant 0.353553385 : f32
    %601 = vector.broadcast %cst_199 : f32 to vector<1x6xf32>
    %602 = arith.mulf %600, %601 : vector<1x6xf32>
    %cst_200 = arith.constant dense<0xFF800000> : vector<1xf32>
    %603 = vector.multi_reduction <maximumf>, %602, %cst_200 [1] : vector<1x6xf32> to vector<1xf32>
    %604 = vector.shape_cast %603 : vector<1xf32> to vector<1x1xf32>
    %605 = vector.broadcast %604 : vector<1x1xf32> to vector<1x6xf32>
    %606 = arith.subf %602, %605 : vector<1x6xf32>
    %607 = math.exp %606 : vector<1x6xf32>
    %cst_201 = arith.constant dense<0.000000e+00> : vector<1xf32>
    %608 = vector.multi_reduction <add>, %607, %cst_201 [1] : vector<1x6xf32> to vector<1xf32>
    %609 = vector.shape_cast %608 : vector<1xf32> to vector<1x1xf32>
    %610 = tpu.reciprocal %609 {approx = true} : vector<1x1xf32> -> vector<1x1xf32>
    %611 = vector.broadcast %610 : vector<1x1xf32> to vector<1x6xf32>
    %612 = arith.mulf %607, %611 : vector<1x6xf32>
    %613 = arith.addf %587, %612 : vector<1x6xf32>
    %614 = vector.extract_strided_slice %541 {offsets = [0, 16], sizes = [6, 8], strides = [1, 1]} : vector<6x32xf32> to vector<6x8xf32>
    %615 = arith.truncf %612 : vector<1x6xf32> to vector<1x6xbf16>
    %616 = arith.truncf %614 : vector<6x8xf32> to vector<6x8xbf16>
    %cst_202 = arith.constant dense<0.000000e+00> : vector<1x8xf32>
    %617 = tpu.matmul %615, %616, %cst_202 {dimension_numbers = #tpu.dot_dimension_numbers<[1], [0], [0], [1], [0, 0, 1, 1], [], []>} : vector<1x6xbf16>, vector<6x8xbf16>, vector<1x8xf32> -> vector<1x8xf32>
    %618 = vector.extract_strided_slice %312 {offsets = [16, 0], sizes = [8, 10], strides = [1, 1]} : vector<32x10xbf16> to vector<8x10xbf16>
    %619 = arith.truncf %617 : vector<1x8xf32> to vector<1x8xbf16>
    %cst_203 = arith.constant dense<0.000000e+00> : vector<1x10xf32>
    %620 = tpu.matmul %619, %618, %cst_203 {dimension_numbers = #tpu.dot_dimension_numbers<[1], [0], [0], [1], [0, 0, 1, 1], [], []>} : vector<1x8xbf16>, vector<8x10xbf16>, vector<1x10xf32> -> vector<1x10xf32>
    %621 = arith.addf %595, %620 : vector<1x10xf32>
    %622 = vector.extract_strided_slice %537 {offsets = [0, 24], sizes = [1, 8], strides = [1, 1]} : vector<1x32xf32> to vector<1x8xf32>
    %623 = vector.extract_strided_slice %540 {offsets = [0, 24], sizes = [6, 8], strides = [1, 1]} : vector<6x32xf32> to vector<6x8xf32>
    %624 = arith.truncf %622 : vector<1x8xf32> to vector<1x8xbf16>
    %625 = arith.truncf %623 : vector<6x8xf32> to vector<6x8xbf16>
    "tpu.trace_start"() <{level = 10 : i32, message = "nd,md->nm"}> : () -> ()
    %cst_204 = arith.constant dense<0.000000e+00> : vector<1x6xf32>
    %626 = tpu.matmul %624, %625, %cst_204 {dimension_numbers = #tpu.dot_dimension_numbers<[1], [1], [0], [0], [0, 0, 1, 0], [], []>} : vector<1x8xbf16>, vector<6x8xbf16>, vector<1x6xf32> -> vector<1x6xf32>
    "tpu.trace_stop"() : () -> ()
    %cst_205 = arith.constant 0.353553385 : f32
    %627 = vector.broadcast %cst_205 : f32 to vector<1x6xf32>
    %628 = arith.mulf %626, %627 : vector<1x6xf32>
    %cst_206 = arith.constant dense<0xFF800000> : vector<1xf32>
    %629 = vector.multi_reduction <maximumf>, %628, %cst_206 [1] : vector<1x6xf32> to vector<1xf32>
    %630 = vector.shape_cast %629 : vector<1xf32> to vector<1x1xf32>
    %631 = vector.broadcast %630 : vector<1x1xf32> to vector<1x6xf32>
    %632 = arith.subf %628, %631 : vector<1x6xf32>
    %633 = math.exp %632 : vector<1x6xf32>
    %cst_207 = arith.constant dense<0.000000e+00> : vector<1xf32>
    %634 = vector.multi_reduction <add>, %633, %cst_207 [1] : vector<1x6xf32> to vector<1xf32>
    %635 = vector.shape_cast %634 : vector<1xf32> to vector<1x1xf32>
    %636 = tpu.reciprocal %635 {approx = true} : vector<1x1xf32> -> vector<1x1xf32>
    %637 = vector.broadcast %636 : vector<1x1xf32> to vector<1x6xf32>
    %638 = arith.mulf %633, %637 : vector<1x6xf32>
    %639 = arith.addf %613, %638 : vector<1x6xf32>
    %640 = vector.extract_strided_slice %541 {offsets = [0, 24], sizes = [6, 8], strides = [1, 1]} : vector<6x32xf32> to vector<6x8xf32>
    %641 = arith.truncf %638 : vector<1x6xf32> to vector<1x6xbf16>
    %642 = arith.truncf %640 : vector<6x8xf32> to vector<6x8xbf16>
    %cst_208 = arith.constant dense<0.000000e+00> : vector<1x8xf32>
    %643 = tpu.matmul %641, %642, %cst_208 {dimension_numbers = #tpu.dot_dimension_numbers<[1], [0], [0], [1], [0, 0, 1, 1], [], []>} : vector<1x6xbf16>, vector<6x8xbf16>, vector<1x8xf32> -> vector<1x8xf32>
    %644 = vector.extract_strided_slice %312 {offsets = [24, 0], sizes = [8, 10], strides = [1, 1]} : vector<32x10xbf16> to vector<8x10xbf16>
    %645 = arith.truncf %643 : vector<1x8xf32> to vector<1x8xbf16>
    %cst_209 = arith.constant dense<0.000000e+00> : vector<1x10xf32>
    %646 = tpu.matmul %645, %644, %cst_209 {dimension_numbers = #tpu.dot_dimension_numbers<[1], [0], [0], [1], [0, 0, 1, 1], [], []>} : vector<1x8xbf16>, vector<8x10xbf16>, vector<1x10xf32> -> vector<1x10xf32>
    %647 = arith.addf %621, %646 : vector<1x10xf32>
    %648 = arith.addf %647, %313 : vector<1x10xf32>
    %cst_210 = arith.constant 2.500000e-01 : f32
    %649 = vector.broadcast %cst_210 : f32 to vector<1x6xf32>
    %650 = arith.mulf %639, %649 : vector<1x6xf32>
    %651 = arith.truncf %308 : vector<1x32xf32> to vector<1x32xbf16>
    %cst_211 = arith.constant dense<0.000000e+00> : vector<1x32xf32>
    %652 = tpu.matmul %651, %310, %cst_211 {dimension_numbers = #tpu.dot_dimension_numbers<[1], [0], [0], [1], [0, 0, 1, 1], [], []>} : vector<1x32xbf16>, vector<32x32xbf16>, vector<1x32xf32> -> vector<1x32xf32>
    %653 = arith.truncf %535 : vector<5x32xf32> to vector<5x32xbf16>
    %cst_212 = arith.constant dense<0.000000e+00> : vector<5x64xf32>
    %654 = tpu.matmul %653, %311, %cst_212 {dimension_numbers = #tpu.dot_dimension_numbers<[1], [0], [0], [1], [0, 0, 1, 1], [], []>} : vector<5x32xbf16>, vector<32x64xbf16>, vector<5x64xf32> -> vector<5x64xf32>
    %655 = vector.extract_strided_slice %654 {offsets = [0, 0], sizes = [5, 32], strides = [1, 1]} : vector<5x64xf32> to vector<5x32xf32>
    %656 = vector.extract_strided_slice %654 {offsets = [0, 32], sizes = [5, 32], strides = [1, 1]} : vector<5x64xf32> to vector<5x32xf32>
    %cst_213 = arith.constant 0.000000e+00 : f32
    %657 = vector.broadcast %cst_213 : f32 to vector<1x10xf32>
    %cst_214 = arith.constant 0.000000e+00 : f32
    %658 = vector.broadcast %cst_214 : f32 to vector<1x5xf32>
    %659 = vector.extract_strided_slice %652 {offsets = [0, 0], sizes = [1, 8], strides = [1, 1]} : vector<1x32xf32> to vector<1x8xf32>
    %660 = vector.extract_strided_slice %655 {offsets = [0, 0], sizes = [5, 8], strides = [1, 1]} : vector<5x32xf32> to vector<5x8xf32>
    %661 = arith.truncf %659 : vector<1x8xf32> to vector<1x8xbf16>
    %662 = arith.truncf %660 : vector<5x8xf32> to vector<5x8xbf16>
    "tpu.trace_start"() <{level = 10 : i32, message = "nd,md->nm"}> : () -> ()
    %cst_215 = arith.constant dense<0.000000e+00> : vector<1x5xf32>
    %663 = tpu.matmul %661, %662, %cst_215 {dimension_numbers = #tpu.dot_dimension_numbers<[1], [1], [0], [0], [0, 0, 1, 0], [], []>} : vector<1x8xbf16>, vector<5x8xbf16>, vector<1x5xf32> -> vector<1x5xf32>
    "tpu.trace_stop"() : () -> ()
    %cst_216 = arith.constant 0.353553385 : f32
    %664 = vector.broadcast %cst_216 : f32 to vector<1x5xf32>
    %665 = arith.mulf %663, %664 : vector<1x5xf32>
    %cst_217 = arith.constant dense<0xFF800000> : vector<1xf32>
    %666 = vector.multi_reduction <maximumf>, %665, %cst_217 [1] : vector<1x5xf32> to vector<1xf32>
    %667 = vector.shape_cast %666 : vector<1xf32> to vector<1x1xf32>
    %668 = vector.broadcast %667 : vector<1x1xf32> to vector<1x5xf32>
    %669 = arith.subf %665, %668 : vector<1x5xf32>
    %670 = math.exp %669 : vector<1x5xf32>
    %cst_218 = arith.constant dense<0.000000e+00> : vector<1xf32>
    %671 = vector.multi_reduction <add>, %670, %cst_218 [1] : vector<1x5xf32> to vector<1xf32>
    %672 = vector.shape_cast %671 : vector<1xf32> to vector<1x1xf32>
    %673 = tpu.reciprocal %672 {approx = true} : vector<1x1xf32> -> vector<1x1xf32>
    %674 = vector.broadcast %673 : vector<1x1xf32> to vector<1x5xf32>
    %675 = arith.mulf %670, %674 : vector<1x5xf32>
    %676 = arith.addf %658, %675 : vector<1x5xf32>
    %677 = vector.extract_strided_slice %656 {offsets = [0, 0], sizes = [5, 8], strides = [1, 1]} : vector<5x32xf32> to vector<5x8xf32>
    %678 = arith.truncf %675 : vector<1x5xf32> to vector<1x5xbf16>
    %679 = arith.truncf %677 : vector<5x8xf32> to vector<5x8xbf16>
    %cst_219 = arith.constant dense<0.000000e+00> : vector<1x8xf32>
    %680 = tpu.matmul %678, %679, %cst_219 {dimension_numbers = #tpu.dot_dimension_numbers<[1], [0], [0], [1], [0, 0, 1, 1], [], []>} : vector<1x5xbf16>, vector<5x8xbf16>, vector<1x8xf32> -> vector<1x8xf32>
    %681 = vector.extract_strided_slice %312 {offsets = [0, 0], sizes = [8, 10], strides = [1, 1]} : vector<32x10xbf16> to vector<8x10xbf16>
    %682 = arith.truncf %680 : vector<1x8xf32> to vector<1x8xbf16>
    %cst_220 = arith.constant dense<0.000000e+00> : vector<1x10xf32>
    %683 = tpu.matmul %682, %681, %cst_220 {dimension_numbers = #tpu.dot_dimension_numbers<[1], [0], [0], [1], [0, 0, 1, 1], [], []>} : vector<1x8xbf16>, vector<8x10xbf16>, vector<1x10xf32> -> vector<1x10xf32>
    %684 = arith.addf %657, %683 : vector<1x10xf32>
    %685 = vector.extract_strided_slice %652 {offsets = [0, 8], sizes = [1, 8], strides = [1, 1]} : vector<1x32xf32> to vector<1x8xf32>
    %686 = vector.extract_strided_slice %655 {offsets = [0, 8], sizes = [5, 8], strides = [1, 1]} : vector<5x32xf32> to vector<5x8xf32>
    %687 = arith.truncf %685 : vector<1x8xf32> to vector<1x8xbf16>
    %688 = arith.truncf %686 : vector<5x8xf32> to vector<5x8xbf16>
    "tpu.trace_start"() <{level = 10 : i32, message = "nd,md->nm"}> : () -> ()
    %cst_221 = arith.constant dense<0.000000e+00> : vector<1x5xf32>
    %689 = tpu.matmul %687, %688, %cst_221 {dimension_numbers = #tpu.dot_dimension_numbers<[1], [1], [0], [0], [0, 0, 1, 0], [], []>} : vector<1x8xbf16>, vector<5x8xbf16>, vector<1x5xf32> -> vector<1x5xf32>
    "tpu.trace_stop"() : () -> ()
    %cst_222 = arith.constant 0.353553385 : f32
    %690 = vector.broadcast %cst_222 : f32 to vector<1x5xf32>
    %691 = arith.mulf %689, %690 : vector<1x5xf32>
    %cst_223 = arith.constant dense<0xFF800000> : vector<1xf32>
    %692 = vector.multi_reduction <maximumf>, %691, %cst_223 [1] : vector<1x5xf32> to vector<1xf32>
    %693 = vector.shape_cast %692 : vector<1xf32> to vector<1x1xf32>
    %694 = vector.broadcast %693 : vector<1x1xf32> to vector<1x5xf32>
    %695 = arith.subf %691, %694 : vector<1x5xf32>
    %696 = math.exp %695 : vector<1x5xf32>
    %cst_224 = arith.constant dense<0.000000e+00> : vector<1xf32>
    %697 = vector.multi_reduction <add>, %696, %cst_224 [1] : vector<1x5xf32> to vector<1xf32>
    %698 = vector.shape_cast %697 : vector<1xf32> to vector<1x1xf32>
    %699 = tpu.reciprocal %698 {approx = true} : vector<1x1xf32> -> vector<1x1xf32>
    %700 = vector.broadcast %699 : vector<1x1xf32> to vector<1x5xf32>
    %701 = arith.mulf %696, %700 : vector<1x5xf32>
    %702 = arith.addf %676, %701 : vector<1x5xf32>
    %703 = vector.extract_strided_slice %656 {offsets = [0, 8], sizes = [5, 8], strides = [1, 1]} : vector<5x32xf32> to vector<5x8xf32>
    %704 = arith.truncf %701 : vector<1x5xf32> to vector<1x5xbf16>
    %705 = arith.truncf %703 : vector<5x8xf32> to vector<5x8xbf16>
    %cst_225 = arith.constant dense<0.000000e+00> : vector<1x8xf32>
    %706 = tpu.matmul %704, %705, %cst_225 {dimension_numbers = #tpu.dot_dimension_numbers<[1], [0], [0], [1], [0, 0, 1, 1], [], []>} : vector<1x5xbf16>, vector<5x8xbf16>, vector<1x8xf32> -> vector<1x8xf32>
    %707 = vector.extract_strided_slice %312 {offsets = [8, 0], sizes = [8, 10], strides = [1, 1]} : vector<32x10xbf16> to vector<8x10xbf16>
    %708 = arith.truncf %706 : vector<1x8xf32> to vector<1x8xbf16>
    %cst_226 = arith.constant dense<0.000000e+00> : vector<1x10xf32>
    %709 = tpu.matmul %708, %707, %cst_226 {dimension_numbers = #tpu.dot_dimension_numbers<[1], [0], [0], [1], [0, 0, 1, 1], [], []>} : vector<1x8xbf16>, vector<8x10xbf16>, vector<1x10xf32> -> vector<1x10xf32>
    %710 = arith.addf %684, %709 : vector<1x10xf32>
    %711 = vector.extract_strided_slice %652 {offsets = [0, 16], sizes = [1, 8], strides = [1, 1]} : vector<1x32xf32> to vector<1x8xf32>
    %712 = vector.extract_strided_slice %655 {offsets = [0, 16], sizes = [5, 8], strides = [1, 1]} : vector<5x32xf32> to vector<5x8xf32>
    %713 = arith.truncf %711 : vector<1x8xf32> to vector<1x8xbf16>
    %714 = arith.truncf %712 : vector<5x8xf32> to vector<5x8xbf16>
    "tpu.trace_start"() <{level = 10 : i32, message = "nd,md->nm"}> : () -> ()
    %cst_227 = arith.constant dense<0.000000e+00> : vector<1x5xf32>
    %715 = tpu.matmul %713, %714, %cst_227 {dimension_numbers = #tpu.dot_dimension_numbers<[1], [1], [0], [0], [0, 0, 1, 0], [], []>} : vector<1x8xbf16>, vector<5x8xbf16>, vector<1x5xf32> -> vector<1x5xf32>
    "tpu.trace_stop"() : () -> ()
    %cst_228 = arith.constant 0.353553385 : f32
    %716 = vector.broadcast %cst_228 : f32 to vector<1x5xf32>
    %717 = arith.mulf %715, %716 : vector<1x5xf32>
    %cst_229 = arith.constant dense<0xFF800000> : vector<1xf32>
    %718 = vector.multi_reduction <maximumf>, %717, %cst_229 [1] : vector<1x5xf32> to vector<1xf32>
    %719 = vector.shape_cast %718 : vector<1xf32> to vector<1x1xf32>
    %720 = vector.broadcast %719 : vector<1x1xf32> to vector<1x5xf32>
    %721 = arith.subf %717, %720 : vector<1x5xf32>
    %722 = math.exp %721 : vector<1x5xf32>
    %cst_230 = arith.constant dense<0.000000e+00> : vector<1xf32>
    %723 = vector.multi_reduction <add>, %722, %cst_230 [1] : vector<1x5xf32> to vector<1xf32>
    %724 = vector.shape_cast %723 : vector<1xf32> to vector<1x1xf32>
    %725 = tpu.reciprocal %724 {approx = true} : vector<1x1xf32> -> vector<1x1xf32>
    %726 = vector.broadcast %725 : vector<1x1xf32> to vector<1x5xf32>
    %727 = arith.mulf %722, %726 : vector<1x5xf32>
    %728 = arith.addf %702, %727 : vector<1x5xf32>
    %729 = vector.extract_strided_slice %656 {offsets = [0, 16], sizes = [5, 8], strides = [1, 1]} : vector<5x32xf32> to vector<5x8xf32>
    %730 = arith.truncf %727 : vector<1x5xf32> to vector<1x5xbf16>
    %731 = arith.truncf %729 : vector<5x8xf32> to vector<5x8xbf16>
    %cst_231 = arith.constant dense<0.000000e+00> : vector<1x8xf32>
    %732 = tpu.matmul %730, %731, %cst_231 {dimension_numbers = #tpu.dot_dimension_numbers<[1], [0], [0], [1], [0, 0, 1, 1], [], []>} : vector<1x5xbf16>, vector<5x8xbf16>, vector<1x8xf32> -> vector<1x8xf32>
    %733 = vector.extract_strided_slice %312 {offsets = [16, 0], sizes = [8, 10], strides = [1, 1]} : vector<32x10xbf16> to vector<8x10xbf16>
    %734 = arith.truncf %732 : vector<1x8xf32> to vector<1x8xbf16>
    %cst_232 = arith.constant dense<0.000000e+00> : vector<1x10xf32>
    %735 = tpu.matmul %734, %733, %cst_232 {dimension_numbers = #tpu.dot_dimension_numbers<[1], [0], [0], [1], [0, 0, 1, 1], [], []>} : vector<1x8xbf16>, vector<8x10xbf16>, vector<1x10xf32> -> vector<1x10xf32>
    %736 = arith.addf %710, %735 : vector<1x10xf32>
    %737 = vector.extract_strided_slice %652 {offsets = [0, 24], sizes = [1, 8], strides = [1, 1]} : vector<1x32xf32> to vector<1x8xf32>
    %738 = vector.extract_strided_slice %655 {offsets = [0, 24], sizes = [5, 8], strides = [1, 1]} : vector<5x32xf32> to vector<5x8xf32>
    %739 = arith.truncf %737 : vector<1x8xf32> to vector<1x8xbf16>
    %740 = arith.truncf %738 : vector<5x8xf32> to vector<5x8xbf16>
    "tpu.trace_start"() <{level = 10 : i32, message = "nd,md->nm"}> : () -> ()
    %cst_233 = arith.constant dense<0.000000e+00> : vector<1x5xf32>
    %741 = tpu.matmul %739, %740, %cst_233 {dimension_numbers = #tpu.dot_dimension_numbers<[1], [1], [0], [0], [0, 0, 1, 0], [], []>} : vector<1x8xbf16>, vector<5x8xbf16>, vector<1x5xf32> -> vector<1x5xf32>
    "tpu.trace_stop"() : () -> ()
    %cst_234 = arith.constant 0.353553385 : f32
    %742 = vector.broadcast %cst_234 : f32 to vector<1x5xf32>
    %743 = arith.mulf %741, %742 : vector<1x5xf32>
    %cst_235 = arith.constant dense<0xFF800000> : vector<1xf32>
    %744 = vector.multi_reduction <maximumf>, %743, %cst_235 [1] : vector<1x5xf32> to vector<1xf32>
    %745 = vector.shape_cast %744 : vector<1xf32> to vector<1x1xf32>
    %746 = vector.broadcast %745 : vector<1x1xf32> to vector<1x5xf32>
    %747 = arith.subf %743, %746 : vector<1x5xf32>
    %748 = math.exp %747 : vector<1x5xf32>
    %cst_236 = arith.constant dense<0.000000e+00> : vector<1xf32>
    %749 = vector.multi_reduction <add>, %748, %cst_236 [1] : vector<1x5xf32> to vector<1xf32>
    %750 = vector.shape_cast %749 : vector<1xf32> to vector<1x1xf32>
    %751 = tpu.reciprocal %750 {approx = true} : vector<1x1xf32> -> vector<1x1xf32>
    %752 = vector.broadcast %751 : vector<1x1xf32> to vector<1x5xf32>
    %753 = arith.mulf %748, %752 : vector<1x5xf32>
    %754 = arith.addf %728, %753 : vector<1x5xf32>
    %755 = vector.extract_strided_slice %656 {offsets = [0, 24], sizes = [5, 8], strides = [1, 1]} : vector<5x32xf32> to vector<5x8xf32>
    %756 = arith.truncf %753 : vector<1x5xf32> to vector<1x5xbf16>
    %757 = arith.truncf %755 : vector<5x8xf32> to vector<5x8xbf16>
    %cst_237 = arith.constant dense<0.000000e+00> : vector<1x8xf32>
    %758 = tpu.matmul %756, %757, %cst_237 {dimension_numbers = #tpu.dot_dimension_numbers<[1], [0], [0], [1], [0, 0, 1, 1], [], []>} : vector<1x5xbf16>, vector<5x8xbf16>, vector<1x8xf32> -> vector<1x8xf32>
    %759 = vector.extract_strided_slice %312 {offsets = [24, 0], sizes = [8, 10], strides = [1, 1]} : vector<32x10xbf16> to vector<8x10xbf16>
    %760 = arith.truncf %758 : vector<1x8xf32> to vector<1x8xbf16>
    %cst_238 = arith.constant dense<0.000000e+00> : vector<1x10xf32>
    %761 = tpu.matmul %760, %759, %cst_238 {dimension_numbers = #tpu.dot_dimension_numbers<[1], [0], [0], [1], [0, 0, 1, 1], [], []>} : vector<1x8xbf16>, vector<8x10xbf16>, vector<1x10xf32> -> vector<1x10xf32>
    %762 = arith.addf %736, %761 : vector<1x10xf32>
    %763 = arith.addf %762, %313 : vector<1x10xf32>
    %cst_239 = arith.constant 2.500000e-01 : f32
    %764 = vector.broadcast %cst_239 : f32 to vector<1x5xf32>
    %765 = arith.mulf %754, %764 : vector<1x5xf32>
    %c344 = arith.constant 344 : index
    %c0_240 = arith.constant 0 : index
    %766 = vector.load %arg3[%c344, %c0_240] : memref<352x128xf32, #tpu.memory_space<vmem>>, vector<7x32xf32>
    %767 = arith.truncf %309 : vector<4x32xf32> to vector<4x32xbf16>
    %cst_241 = arith.constant dense<0.000000e+00> : vector<4x32xf32>
    %768 = tpu.matmul %767, %314, %cst_241 {dimension_numbers = #tpu.dot_dimension_numbers<[1], [0], [0], [1], [0, 0, 1, 1], [], []>} : vector<4x32xbf16>, vector<32x32xbf16>, vector<4x32xf32> -> vector<4x32xf32>
    %769 = arith.truncf %766 : vector<7x32xf32> to vector<7x32xbf16>
    %cst_242 = arith.constant dense<0.000000e+00> : vector<7x64xf32>
    %770 = tpu.matmul %769, %315, %cst_242 {dimension_numbers = #tpu.dot_dimension_numbers<[1], [0], [0], [1], [0, 0, 1, 1], [], []>} : vector<7x32xbf16>, vector<32x64xbf16>, vector<7x64xf32> -> vector<7x64xf32>
    %771 = vector.extract_strided_slice %770 {offsets = [0, 0], sizes = [7, 32], strides = [1, 1]} : vector<7x64xf32> to vector<7x32xf32>
    %772 = vector.extract_strided_slice %770 {offsets = [0, 32], sizes = [7, 32], strides = [1, 1]} : vector<7x64xf32> to vector<7x32xf32>
    %cst_243 = arith.constant 0.000000e+00 : f32
    %773 = vector.broadcast %cst_243 : f32 to vector<4x10xf32>
    %cst_244 = arith.constant 0.000000e+00 : f32
    %774 = vector.broadcast %cst_244 : f32 to vector<4x7xf32>
    %775 = vector.extract_strided_slice %768 {offsets = [0, 0], sizes = [4, 8], strides = [1, 1]} : vector<4x32xf32> to vector<4x8xf32>
    %776 = vector.extract_strided_slice %771 {offsets = [0, 0], sizes = [7, 8], strides = [1, 1]} : vector<7x32xf32> to vector<7x8xf32>
    %777 = arith.truncf %775 : vector<4x8xf32> to vector<4x8xbf16>
    %778 = arith.truncf %776 : vector<7x8xf32> to vector<7x8xbf16>
    "tpu.trace_start"() <{level = 10 : i32, message = "nd,md->nm"}> : () -> ()
    %cst_245 = arith.constant dense<0.000000e+00> : vector<4x7xf32>
    %779 = tpu.matmul %777, %778, %cst_245 {dimension_numbers = #tpu.dot_dimension_numbers<[1], [1], [0], [0], [0, 0, 1, 0], [], []>} : vector<4x8xbf16>, vector<7x8xbf16>, vector<4x7xf32> -> vector<4x7xf32>
    "tpu.trace_stop"() : () -> ()
    %cst_246 = arith.constant 0.353553385 : f32
    %780 = vector.broadcast %cst_246 : f32 to vector<4x7xf32>
    %781 = arith.mulf %779, %780 : vector<4x7xf32>
    %cst_247 = arith.constant dense<0xFF800000> : vector<4xf32>
    %782 = vector.multi_reduction <maximumf>, %781, %cst_247 [1] : vector<4x7xf32> to vector<4xf32>
    %783 = vector.shape_cast %782 : vector<4xf32> to vector<4x1xf32>
    %784 = vector.broadcast %783 : vector<4x1xf32> to vector<4x7xf32>
    %785 = arith.subf %781, %784 : vector<4x7xf32>
    %786 = math.exp %785 : vector<4x7xf32>
    %cst_248 = arith.constant dense<0.000000e+00> : vector<4xf32>
    %787 = vector.multi_reduction <add>, %786, %cst_248 [1] : vector<4x7xf32> to vector<4xf32>
    %788 = vector.shape_cast %787 : vector<4xf32> to vector<4x1xf32>
    %789 = tpu.reciprocal %788 {approx = true} : vector<4x1xf32> -> vector<4x1xf32>
    %790 = vector.broadcast %789 : vector<4x1xf32> to vector<4x7xf32>
    %791 = arith.mulf %786, %790 : vector<4x7xf32>
    %792 = arith.addf %774, %791 : vector<4x7xf32>
    %793 = vector.extract_strided_slice %772 {offsets = [0, 0], sizes = [7, 8], strides = [1, 1]} : vector<7x32xf32> to vector<7x8xf32>
    %794 = arith.truncf %791 : vector<4x7xf32> to vector<4x7xbf16>
    %795 = arith.truncf %793 : vector<7x8xf32> to vector<7x8xbf16>
    %cst_249 = arith.constant dense<0.000000e+00> : vector<4x8xf32>
    %796 = tpu.matmul %794, %795, %cst_249 {dimension_numbers = #tpu.dot_dimension_numbers<[1], [0], [0], [1], [0, 0, 1, 1], [], []>} : vector<4x7xbf16>, vector<7x8xbf16>, vector<4x8xf32> -> vector<4x8xf32>
    %797 = vector.extract_strided_slice %316 {offsets = [0, 0], sizes = [8, 10], strides = [1, 1]} : vector<32x10xbf16> to vector<8x10xbf16>
    %798 = arith.truncf %796 : vector<4x8xf32> to vector<4x8xbf16>
    %cst_250 = arith.constant dense<0.000000e+00> : vector<4x10xf32>
    %799 = tpu.matmul %798, %797, %cst_250 {dimension_numbers = #tpu.dot_dimension_numbers<[1], [0], [0], [1], [0, 0, 1, 1], [], []>} : vector<4x8xbf16>, vector<8x10xbf16>, vector<4x10xf32> -> vector<4x10xf32>
    %800 = arith.addf %773, %799 : vector<4x10xf32>
    %801 = vector.extract_strided_slice %768 {offsets = [0, 8], sizes = [4, 8], strides = [1, 1]} : vector<4x32xf32> to vector<4x8xf32>
    %802 = vector.extract_strided_slice %771 {offsets = [0, 8], sizes = [7, 8], strides = [1, 1]} : vector<7x32xf32> to vector<7x8xf32>
    %803 = arith.truncf %801 : vector<4x8xf32> to vector<4x8xbf16>
    %804 = arith.truncf %802 : vector<7x8xf32> to vector<7x8xbf16>
    "tpu.trace_start"() <{level = 10 : i32, message = "nd,md->nm"}> : () -> ()
    %cst_251 = arith.constant dense<0.000000e+00> : vector<4x7xf32>
    %805 = tpu.matmul %803, %804, %cst_251 {dimension_numbers = #tpu.dot_dimension_numbers<[1], [1], [0], [0], [0, 0, 1, 0], [], []>} : vector<4x8xbf16>, vector<7x8xbf16>, vector<4x7xf32> -> vector<4x7xf32>
    "tpu.trace_stop"() : () -> ()
    %cst_252 = arith.constant 0.353553385 : f32
    %806 = vector.broadcast %cst_252 : f32 to vector<4x7xf32>
    %807 = arith.mulf %805, %806 : vector<4x7xf32>
    %cst_253 = arith.constant dense<0xFF800000> : vector<4xf32>
    %808 = vector.multi_reduction <maximumf>, %807, %cst_253 [1] : vector<4x7xf32> to vector<4xf32>
    %809 = vector.shape_cast %808 : vector<4xf32> to vector<4x1xf32>
    %810 = vector.broadcast %809 : vector<4x1xf32> to vector<4x7xf32>
    %811 = arith.subf %807, %810 : vector<4x7xf32>
    %812 = math.exp %811 : vector<4x7xf32>
    %cst_254 = arith.constant dense<0.000000e+00> : vector<4xf32>
    %813 = vector.multi_reduction <add>, %812, %cst_254 [1] : vector<4x7xf32> to vector<4xf32>
    %814 = vector.shape_cast %813 : vector<4xf32> to vector<4x1xf32>
    %815 = tpu.reciprocal %814 {approx = true} : vector<4x1xf32> -> vector<4x1xf32>
    %816 = vector.broadcast %815 : vector<4x1xf32> to vector<4x7xf32>
    %817 = arith.mulf %812, %816 : vector<4x7xf32>
    %818 = arith.addf %792, %817 : vector<4x7xf32>
    %819 = vector.extract_strided_slice %772 {offsets = [0, 8], sizes = [7, 8], strides = [1, 1]} : vector<7x32xf32> to vector<7x8xf32>
    %820 = arith.truncf %817 : vector<4x7xf32> to vector<4x7xbf16>
    %821 = arith.truncf %819 : vector<7x8xf32> to vector<7x8xbf16>
    %cst_255 = arith.constant dense<0.000000e+00> : vector<4x8xf32>
    %822 = tpu.matmul %820, %821, %cst_255 {dimension_numbers = #tpu.dot_dimension_numbers<[1], [0], [0], [1], [0, 0, 1, 1], [], []>} : vector<4x7xbf16>, vector<7x8xbf16>, vector<4x8xf32> -> vector<4x8xf32>
    %823 = vector.extract_strided_slice %316 {offsets = [8, 0], sizes = [8, 10], strides = [1, 1]} : vector<32x10xbf16> to vector<8x10xbf16>
    %824 = arith.truncf %822 : vector<4x8xf32> to vector<4x8xbf16>
    %cst_256 = arith.constant dense<0.000000e+00> : vector<4x10xf32>
    %825 = tpu.matmul %824, %823, %cst_256 {dimension_numbers = #tpu.dot_dimension_numbers<[1], [0], [0], [1], [0, 0, 1, 1], [], []>} : vector<4x8xbf16>, vector<8x10xbf16>, vector<4x10xf32> -> vector<4x10xf32>
    %826 = arith.addf %800, %825 : vector<4x10xf32>
    %827 = vector.extract_strided_slice %768 {offsets = [0, 16], sizes = [4, 8], strides = [1, 1]} : vector<4x32xf32> to vector<4x8xf32>
    %828 = vector.extract_strided_slice %771 {offsets = [0, 16], sizes = [7, 8], strides = [1, 1]} : vector<7x32xf32> to vector<7x8xf32>
    %829 = arith.truncf %827 : vector<4x8xf32> to vector<4x8xbf16>
    %830 = arith.truncf %828 : vector<7x8xf32> to vector<7x8xbf16>
    "tpu.trace_start"() <{level = 10 : i32, message = "nd,md->nm"}> : () -> ()
    %cst_257 = arith.constant dense<0.000000e+00> : vector<4x7xf32>
    %831 = tpu.matmul %829, %830, %cst_257 {dimension_numbers = #tpu.dot_dimension_numbers<[1], [1], [0], [0], [0, 0, 1, 0], [], []>} : vector<4x8xbf16>, vector<7x8xbf16>, vector<4x7xf32> -> vector<4x7xf32>
    "tpu.trace_stop"() : () -> ()
    %cst_258 = arith.constant 0.353553385 : f32
    %832 = vector.broadcast %cst_258 : f32 to vector<4x7xf32>
    %833 = arith.mulf %831, %832 : vector<4x7xf32>
    %cst_259 = arith.constant dense<0xFF800000> : vector<4xf32>
    %834 = vector.multi_reduction <maximumf>, %833, %cst_259 [1] : vector<4x7xf32> to vector<4xf32>
    %835 = vector.shape_cast %834 : vector<4xf32> to vector<4x1xf32>
    %836 = vector.broadcast %835 : vector<4x1xf32> to vector<4x7xf32>
    %837 = arith.subf %833, %836 : vector<4x7xf32>
    %838 = math.exp %837 : vector<4x7xf32>
    %cst_260 = arith.constant dense<0.000000e+00> : vector<4xf32>
    %839 = vector.multi_reduction <add>, %838, %cst_260 [1] : vector<4x7xf32> to vector<4xf32>
    %840 = vector.shape_cast %839 : vector<4xf32> to vector<4x1xf32>
    %841 = tpu.reciprocal %840 {approx = true} : vector<4x1xf32> -> vector<4x1xf32>
    %842 = vector.broadcast %841 : vector<4x1xf32> to vector<4x7xf32>
    %843 = arith.mulf %838, %842 : vector<4x7xf32>
    %844 = arith.addf %818, %843 : vector<4x7xf32>
    %845 = vector.extract_strided_slice %772 {offsets = [0, 16], sizes = [7, 8], strides = [1, 1]} : vector<7x32xf32> to vector<7x8xf32>
    %846 = arith.truncf %843 : vector<4x7xf32> to vector<4x7xbf16>
    %847 = arith.truncf %845 : vector<7x8xf32> to vector<7x8xbf16>
    %cst_261 = arith.constant dense<0.000000e+00> : vector<4x8xf32>
    %848 = tpu.matmul %846, %847, %cst_261 {dimension_numbers = #tpu.dot_dimension_numbers<[1], [0], [0], [1], [0, 0, 1, 1], [], []>} : vector<4x7xbf16>, vector<7x8xbf16>, vector<4x8xf32> -> vector<4x8xf32>
    %849 = vector.extract_strided_slice %316 {offsets = [16, 0], sizes = [8, 10], strides = [1, 1]} : vector<32x10xbf16> to vector<8x10xbf16>
    %850 = arith.truncf %848 : vector<4x8xf32> to vector<4x8xbf16>
    %cst_262 = arith.constant dense<0.000000e+00> : vector<4x10xf32>
    %851 = tpu.matmul %850, %849, %cst_262 {dimension_numbers = #tpu.dot_dimension_numbers<[1], [0], [0], [1], [0, 0, 1, 1], [], []>} : vector<4x8xbf16>, vector<8x10xbf16>, vector<4x10xf32> -> vector<4x10xf32>
    %852 = arith.addf %826, %851 : vector<4x10xf32>
    %853 = vector.extract_strided_slice %768 {offsets = [0, 24], sizes = [4, 8], strides = [1, 1]} : vector<4x32xf32> to vector<4x8xf32>
    %854 = vector.extract_strided_slice %771 {offsets = [0, 24], sizes = [7, 8], strides = [1, 1]} : vector<7x32xf32> to vector<7x8xf32>
    %855 = arith.truncf %853 : vector<4x8xf32> to vector<4x8xbf16>
    %856 = arith.truncf %854 : vector<7x8xf32> to vector<7x8xbf16>
    "tpu.trace_start"() <{level = 10 : i32, message = "nd,md->nm"}> : () -> ()
    %cst_263 = arith.constant dense<0.000000e+00> : vector<4x7xf32>
    %857 = tpu.matmul %855, %856, %cst_263 {dimension_numbers = #tpu.dot_dimension_numbers<[1], [1], [0], [0], [0, 0, 1, 0], [], []>} : vector<4x8xbf16>, vector<7x8xbf16>, vector<4x7xf32> -> vector<4x7xf32>
    "tpu.trace_stop"() : () -> ()
    %cst_264 = arith.constant 0.353553385 : f32
    %858 = vector.broadcast %cst_264 : f32 to vector<4x7xf32>
    %859 = arith.mulf %857, %858 : vector<4x7xf32>
    %cst_265 = arith.constant dense<0xFF800000> : vector<4xf32>
    %860 = vector.multi_reduction <maximumf>, %859, %cst_265 [1] : vector<4x7xf32> to vector<4xf32>
    %861 = vector.shape_cast %860 : vector<4xf32> to vector<4x1xf32>
    %862 = vector.broadcast %861 : vector<4x1xf32> to vector<4x7xf32>
    %863 = arith.subf %859, %862 : vector<4x7xf32>
    %864 = math.exp %863 : vector<4x7xf32>
    %cst_266 = arith.constant dense<0.000000e+00> : vector<4xf32>
    %865 = vector.multi_reduction <add>, %864, %cst_266 [1] : vector<4x7xf32> to vector<4xf32>
    %866 = vector.shape_cast %865 : vector<4xf32> to vector<4x1xf32>
    %867 = tpu.reciprocal %866 {approx = true} : vector<4x1xf32> -> vector<4x1xf32>
    %868 = vector.broadcast %867 : vector<4x1xf32> to vector<4x7xf32>
    %869 = arith.mulf %864, %868 : vector<4x7xf32>
    %870 = arith.addf %844, %869 : vector<4x7xf32>
    %871 = vector.extract_strided_slice %772 {offsets = [0, 24], sizes = [7, 8], strides = [1, 1]} : vector<7x32xf32> to vector<7x8xf32>
    %872 = arith.truncf %869 : vector<4x7xf32> to vector<4x7xbf16>
    %873 = arith.truncf %871 : vector<7x8xf32> to vector<7x8xbf16>
    %cst_267 = arith.constant dense<0.000000e+00> : vector<4x8xf32>
    %874 = tpu.matmul %872, %873, %cst_267 {dimension_numbers = #tpu.dot_dimension_numbers<[1], [0], [0], [1], [0, 0, 1, 1], [], []>} : vector<4x7xbf16>, vector<7x8xbf16>, vector<4x8xf32> -> vector<4x8xf32>
    %875 = vector.extract_strided_slice %316 {offsets = [24, 0], sizes = [8, 10], strides = [1, 1]} : vector<32x10xbf16> to vector<8x10xbf16>
    %876 = arith.truncf %874 : vector<4x8xf32> to vector<4x8xbf16>
    %cst_268 = arith.constant dense<0.000000e+00> : vector<4x10xf32>
    %877 = tpu.matmul %876, %875, %cst_268 {dimension_numbers = #tpu.dot_dimension_numbers<[1], [0], [0], [1], [0, 0, 1, 1], [], []>} : vector<4x8xbf16>, vector<8x10xbf16>, vector<4x10xf32> -> vector<4x10xf32>
    %878 = arith.addf %852, %877 : vector<4x10xf32>
    %879 = vector.broadcast %317 : vector<1x10xf32> to vector<4x10xf32>
    %880 = arith.addf %878, %879 : vector<4x10xf32>
    %cst_269 = arith.constant 2.500000e-01 : f32
    %881 = vector.broadcast %cst_269 : f32 to vector<4x7xf32>
    %882 = arith.mulf %870, %881 : vector<4x7xf32>
    %883 = arith.addf %648, %763 : vector<1x10xf32>
    %cst_270 = arith.constant dense<0.000000e+00> : vector<10xf32>
    %884 = vector.multi_reduction <add>, %880, %cst_270 [0] : vector<4x10xf32> to vector<10xf32>
    %885 = vector.shape_cast %884 : vector<10xf32> to vector<1x10xf32>
    %cst_271 = arith.constant 4.000000e+00 : f32
    %886 = vector.broadcast %cst_271 : f32 to vector<1x10xf32>
    %887 = arith.divf %885, %886 : vector<1x10xf32>
    %888 = arith.addf %883, %887 : vector<1x10xf32>
    %cst_272 = arith.constant 0.000000e+00 : f32
    %889 = vector.broadcast %cst_272 : f32 to vector<1x8x128xf32>
    %c0_273 = arith.constant 0 : index
    %c0_274 = arith.constant 0 : index
    %c0_275 = arith.constant 0 : index
    %890 = vector.load %arg4[%c0_273, %c0_274, %c0_275] : memref<1x8x128xf32, #tpu.memory_space<vmem>>, vector<1x8x128xf32>
    tpu.vector_store %arg4[%c0_273, %c0_274, %c0_275], %889 {strides = array<i32>} : memref<1x8x128xf32, #tpu.memory_space<vmem>>, vector<1x8x128xf32>,
    %c0_276 = arith.constant 0 : index
    %c0_277 = arith.constant 0 : index
    %c0_278 = arith.constant 0 : index
    %891 = vector.load %arg4[%c0_276, %c0_277, %c0_278] : memref<1x8x128xf32, #tpu.memory_space<vmem>>, vector<1x1x10xf32>
    %892 = vector.shape_cast %891 : vector<1x1x10xf32> to vector<1x10xf32>
    %893 = vector.shape_cast %888 : vector<1x10xf32> to vector<1x1x10xf32>
    tpu.vector_store %arg4[%c0_276, %c0_277, %c0_278], %893 {strides = array<i32>} : memref<1x8x128xf32, #tpu.memory_space<vmem>>, vector<1x1x10xf32>,
    %c0_279 = arith.constant 0 : index
    %c1 = arith.constant 1 : index
    %c0_280 = arith.constant 0 : index
    %894 = vector.load %arg4[%c0_279, %c1, %c0_280] : memref<1x8x128xf32, #tpu.memory_space<vmem>>, vector<1x1x6xf32>
    %895 = vector.shape_cast %894 : vector<1x1x6xf32> to vector<1x6xf32>
    %896 = vector.shape_cast %650 : vector<1x6xf32> to vector<1x1x6xf32>
    tpu.vector_store %arg4[%c0_279, %c1, %c0_280], %896 {strides = array<i32>} : memref<1x8x128xf32, #tpu.memory_space<vmem>>, vector<1x1x6xf32>,
    %c0_281 = arith.constant 0 : index
    %c2 = arith.constant 2 : index
    %c0_282 = arith.constant 0 : index
    %897 = vector.load %arg4[%c0_281, %c2, %c0_282] : memref<1x8x128xf32, #tpu.memory_space<vmem>>, vector<1x1x5xf32>
    %898 = vector.shape_cast %897 : vector<1x1x5xf32> to vector<1x5xf32>
    %899 = vector.shape_cast %765 : vector<1x5xf32> to vector<1x1x5xf32>
    tpu.vector_store %arg4[%c0_281, %c2, %c0_282], %899 {strides = array<i32>} : memref<1x8x128xf32, #tpu.memory_space<vmem>>, vector<1x1x5xf32>,
    %c0_283 = arith.constant 0 : index
    %c4 = arith.constant 4 : index
    %c0_284 = arith.constant 0 : index
    %900 = vector.load %arg4[%c0_283, %c4, %c0_284] : memref<1x8x128xf32, #tpu.memory_space<vmem>>, vector<1x4x7xf32>
    %901 = vector.shape_cast %900 : vector<1x4x7xf32> to vector<4x7xf32>
    %902 = vector.shape_cast %882 : vector<4x7xf32> to vector<1x4x7xf32>
    tpu.vector_store %arg4[%c0_283, %c4, %c0_284], %902 {strides = array<i32>} : memref<1x8x128xf32, #tpu.memory_space<vmem>>, vector<1x4x7xf32>,
    return
  }
  func.func @transform_0(%arg0: i32) -> (i32, i32, i32) {
    %c0_i32 = arith.constant 0 : i32
    %c0_i32_0 = arith.constant 0 : i32
    %c0_i32_1 = arith.constant 0 : i32
    return %arg0, %c0_i32, %c0_i32_0 : i32, i32, i32
  }
  func.func @transform_1(%arg0: i32) -> (i32, i32) {
    %c0_i32 = arith.constant 0 : i32
    %c0_i32_0 = arith.constant 0 : i32
    %c0_i32_1 = arith.constant 0 : i32
    return %c0_i32, %c0_i32_0 : i32, i32
  }
  func.func @transform_2(%arg0: i32) -> (i32, i32) {
    %c0_i32 = arith.constant 0 : i32
    %c0_i32_0 = arith.constant 0 : i32
    %c0_i32_1 = arith.constant 0 : i32
    return %c0_i32, %c0_i32_0 : i32, i32
  }
  func.func @transform_3(%arg0: i32) -> (i32, i32, i32) {
    %c0_i32 = arith.constant 0 : i32
    %c0_i32_0 = arith.constant 0 : i32
    %c0_i32_1 = arith.constant 0 : i32
    return %arg0, %c0_i32, %c0_i32_0 : i32, i32, i32
  }
}

</mosaic_0001>

<bundles_post_ra>
// kernel: slot_cvit_forward.1
= control target key start
LH: loop header
LB: loop body
LE: loop exit
PB: predicated region body
PF: predicated region fallthrough
CT: control target
= control target key end

     0   :  { %s5859_s12 = smov 0   ;;  %s6911_s0 = inlined_call_operand.vmem [shape: f32[2,4,256], index: 0, kind: input, shape index: {}]   ;;  %s6912_s1 = inlined_call_operand.vmem [shape: bf16[1216,128], index: 1, kind: input, shape index: {}]   ;;  %s6913_s2 = inlined_call_operand.vmem [shape: f32[352,128], index: 2, kind: input, shape index: {}]   ;;  %s6914_s3 = inlined_call_operand.vmem [shape: f32[2,8,128], index: 3, kind: output, shape index: {}]  }
   0x1 LB: > { %s4773_s13 = sadd.s32 4294967295, %s5824_s12   ;;  %p4777_p0 = scmp.ge.s32.totalorder %s5824_s12, 1  ;;  %s5824_s12 = sphi %s5859_s12, %s13_s12  }
   0x2   : > { %p137_p1 = scmp.lt.s32.totalorder %s5824_s12, 3 }
   0x4   : > { %p138_p2 = pnand %p4777_p0, %p137_p1 }
   0x5   : > { %v5647_v0 = vld [vmem:[%s6912_s1 + $0x40] sm:$0xff] (!%p138_p2)   ;;  %p160_p3 = scmp.lt.s32.totalorder (!%p138_p2), %s4773_s13, 1  ;;  %v5649_v2 = vld [vmem:[%s6912_s1 + $0x48] sm:$0xff] (!%p138_p2)   ;;  %v5826_v3 = vmov (!%p138_p2), 0.0   ;;  %v5651_v5 = vld [vmem:[%s6912_s1 + $0x50] sm:$0xff] (!%p138_p2)   ;;  %vm353_vm0 = vcmask (!%p138_p2), 1040384  }
   0x6   : > { %141 = sbr.rel (%p138_p2) target bundleno = 16960 (0x4240), region = 32  ;;  %v5648_v1 = vld [vmem:[%s6912_s1] sm:$0xff] (!%p138_p2)   ;;  %4953 = vmatprep.subr.bf16.mxu0 (!%p138_p2), %v5647_v0  ;;  %5146 = vmatprep.subr.bf16.mxu1 (!%p138_p2), %v5826_v3  ;;  %v5650_v4 = vld [vmem:[%s6912_s1 + $0x8] sm:$0xff] (!%p138_p2)   ;;  %v5652_v6 = vld [vmem:[%s6912_s1 + $0x10] sm:$0xff] (!%p138_p2)   ;;  %vm359_vm1 = vcmask (!%p138_p2), 258048   ;;  %vm5827_vm2 = vmmov (!%p138_p2), 0  }
   0x7   : > { %4954 = vmatpush3.bf16.msra.mxu0 (!%p138_p2), %v5648_v1  ;;  %v5653_v7 = vld [vmem:[%s6912_s1 + $0x58] sm:$0xff] (!%p138_p2)   ;;  %v5655_v9 = vld [vmem:[%s6912_s1 + $0x60] sm:$0xff] (!%p138_p2)   ;;  %v5657_v11 = vld [vmem:[%s6912_s1 + $0x68] sm:$0xff] (!%p138_p2)   ;;  %5150 = vmatprep.mubr.msk.bf16.mxu1 (!%p138_p2), %vm5827_vm2, %v5826_v3  ;;  %vm406_vm3 = vcmask (!%p138_p2), 261120   ;;  %s5828_s18 = smov (!%p138_p2), 64   ;;  %s5829_s19 = smov (!%p138_p2), 96  }
   0x8   : > { %4955 = vmatprep.subr.bf16.mxu0 (!%p138_p2), %v5649_v2  ;;  %v5654_v8 = vld [vmem:[%s6912_s1 + $0x18] sm:$0xff] (!%p138_p2)   ;;  %v5656_v10 = vld [vmem:[%s6912_s1 + $0x20] sm:$0xff] (!%p138_p2)   ;;  %v5658_v13 = vld [vmem:[%s6912_s1 + $0x28] sm:$0xff] (!%p138_p2)   ;;  %vm458_vm4 = vcmask (!%p138_p2), 130048   ;;  %vm525_vm5 = vcmask (!%p138_p2), 1041408   ;;  %vm526_vm6 = vcmask (!%p138_p2), 1042432  }
   0x9   : > { %v5659_v15 = vld [vmem:[%s6912_s1 + $0x70] sm:$0xff] (!%p138_p2)   ;;  %v5661_v18 = vld [vmem:[%s6912_s1 + $0x78] sm:$0xff] (!%p138_p2)   ;;  %v4781_v22 = vld [vmem:[%s6913_s2] ss:$0 sm:$0xff] (!%p138_p2)  ;;  %v5830_v60 = vmov (!%p138_p2), 65535   ;;  %vm506_vm7 = vcmask (!%p138_p2), 36864  }
   0xa   : > { %v5660_v17 = vld [vmem:[%s6912_s1 + $0x30] sm:$0xff] (!%p138_p2)   ;;  %v5662_v19 = vld [vmem:[%s6912_s1 + $0x38] sm:$0xff] (!%p138_p2)   ;;  %v349_v28 = vld [vmem:[%s6913_s2 + $0x8] sm:$0x1] (!%p138_p2)  ;;  %v527_v61 = vsel (!%p138_p2), %vm525_vm5, 4294967295, %v5830_v60  ;;  %s5831_s20 = smov (!%p138_p2), 80  }
   0xb   : > { %4956 = vmatpush3.bf16.msra.mxu0 (!%p138_p2), %v5650_v4  ;;  %v355_v30 = vld [vmem:[%s6913_s2 + $0x10] sm:$0x1f] (!%p138_p2)  ;;  %v5664_v39 = vld [vmem:[%s6912_s1 + $0x80] sm:$0xff] (!%p138_p2)   ;;  %v5665_v40 = vld [vmem:[%s6912_s1 + $0x88] sm:$0xff] (!%p138_p2)   ;;  %v5976_v62 = vsel (!%p138_p2), %vm526_vm6, %v527_v61, 0  ;;  %s5832_s21 = smov (!%p138_p2), 112  }
   0xc   : > { %4957 = vmatprep.subr.bf16.mxu0 (!%p138_p2), %v5651_v5  ;;  %5147 = vmatpush3.bf16.msra.mxu1 (!%p138_p2), %v5664_v39  ;;  %v4798_v45 = vld [vmem:[%s6913_s2 + $0x18] ss:$0 sm:$0xff] (!%p138_p2)  ;;  %v4799_v47 = vld [vmem:[%s6913_s2 + $0x20] ss:$0 sm:$0xff] (!%p138_p2)  ;;  %v4800_v51 = vld [vmem:[%s6913_s2 + $0x28] ss:$0 sm:$0xff] (!%p138_p2) }
   0xd   : > { %s6916_s13 = smov (!%p160_p3, %s4773_s13), 1  ;;  %5148 = vmatprep.subr.bf16.mxu1 %v5826_v3  ;;  %vm521_vm8 = vcmask 39936   ;;  %s5833_s22 = smov 48   ;;  %vm1688_vm9 = vcmask 253952   ;;  %vm1930_vm10 = vcmask 259072   ;;  %vm2638_vm11 = vcmask 64512  }
   0xe   : > { %s4952_s24 = sshll.u32 %s6916_s13, 3  ;;  %s5835_s25 = smov 120   ;;  %vm2686_vm12 = vcmask 40960   ;;  %vm2703_vm13 = vcmask 48128   ;;  %vm2868_vm14 = vcmask 1043456   ;;  %vm3372_vm15 = vcmask 32768  }
   0xf   : > { %s5886_s27 = scalar_lea.vmem %s6914_s3, %s4952_s24  ;;  %4958 = vmatpush3.bf16.msra.mxu0 %v5652_v6  ;;  %s164_s11 = scalar_lea.vmem %s6911_s0, %s4952_s24 }
  0x10   : > { %4714 = vst [vmem:[%s5886_s27] sm:$0xff] %v5826_v3  ;;  %4959 = vmatprep.subr.bf16.mxu0 %v5653_v7  ;;  %v170_v12 = vld [vmem:[%s164_s11] sm:$0xff]  ;;  %5149 = vmatpush3.bf16.msra.mxu1 %v5665_v40  ;;  %s5834_s24 = smov 32   ;;  %s5836_s26 = smov 88  }
  0x11   : > { %v204_v14 = vcombine.high %v170_v12, %v170_v12  ;;  %v206_v20 = vpack.c.bf16 %v170_v12, %v170_v12  ;;  %5154 = vmatprep.subr.bf16.mxu1 %v5826_v3  ;;  %s5837_s6 = smov 104   ;;  %s5838_s10 = smov 72  }
  0x13   : > { %4960 = vmatpush3.bf16.msra.mxu0 %v5654_v8  ;;  %v207_v16 = vpack.c.bf16 %v204_v14, %v204_v14 }
  0x14   : > { %4961 = vmatprep.subr.bf16.mxu0 %v5655_v9 }
  0x15   : > { %341 = vmatprep.mubr.bf16.mxu0 %v207_v16 }
  0x17   : > { %4962 = vmatpush3.bf16.msra.mxu0 %v5656_v10 }
  0x18   : > { %4963 = vmatprep.subr.bf16.mxu0 %v5657_v11 }
  0x1b   : > { %4964 = vmatpush3.bf16.msra.mxu0 %v5658_v13 }
  0x1c   : > { %4965 = vmatprep.subr.bf16.mxu0 %v5659_v15 }
  0x1f   : > { %4966 = vmatpush3.bf16.msra.mxu0 %v5660_v17 }
  0x20   : > { %4967 = vmatprep.subr.bf16.mxu0 %v5661_v18 }
  0x23   : > { %4968 = vmatpush3.bf16.msra.mxu0 %v5662_v19 }
  0x24   : > { %5172 = vmatprep.subr.bf16.mxu0 %v5826_v3 }
  0x26   : > { %342 = vmatmul.mubr.bf16.vlgmr.msra.gmra.mrb[0].mxu0 %v206_v20 }
  0x27   : > { %5174 = vmatprep.mubr.msk.bf16.mxu0 %vm5827_vm2, %v5826_v3 }
  0xf9   : > { %v4969_v21 = vpop.f32.mrb[0].mxu0 }
  0xfa   : > { %v4970_v23 = vpop.f32.mrb[1].mxu0 }
  0xfb   : > { %v4971_v24 = vadd.f32 %v4970_v23, %v4969_v21  ;;  %v4972_v25 = vpop.f32.mrb[2].mxu0 }
  0xfc   : > { %v4973_v26 = vpop.f32.mrb[3].mxu0 }
  0xfd   : > { %v344_v27 = vadd.f32 %v4971_v24, %v4781_v22 }
  0xff   : > { %v351_v29 = vrot.slane %v344_v27, 7 }
 0x101   : > { %v354_v31 = vsel %vm353_vm0, %v349_v28, %v351_v29  ;;  %vm4103_vm0 = vcmask 52224  }
 0x102   : > { %v5936_v32 = vadd.f32 %v355_v30, %v354_v31 }
 0x104   : > { %v360_v33 = vsel %vm359_vm1, %v5936_v32, 0.0 }
 0x105   : > { %361 = vadd.xlane.f32.xlu0 %v360_v33 }
 0x192   : > { %v362_v34 = vpop.xlane.xlu0 %361 }
 0x193   : > { %v364_v35 = vmul.f32 0.03125, %v362_v34 }
 0x195   : > { %v365_v36 = vsub.f32 %v5936_v32, %v364_v35 }
 0x197   : > { %v366_v37 = vmul.f32 %v365_v36, %v365_v36 }
 0x199   : > { %v367_v38 = vsel %vm359_vm1, %v366_v37, 0.0 }
 0x19a   : > { %368 = vadd.xlane.f32.xlu0 %v367_v38  ;;  %v5667_v38 = vld [vmem:[%s6912_s1 + $0x98] sm:$0xff]  }
 0x227   : > { %v369_v41 = vpop.xlane.xlu0 %368 }
 0x228   : > { %v370_v42 = vmul.f32 0.03125, %v369_v41 }
 0x22a   : > { %v371_v43 = vadd.f32 1e-06, %v370_v42  ;;  %v5666_v42 = vld [vmem:[%s6912_s1 + $0x90] sm:$0xff]  }
 0x22c   : > { %5720 = vrsqrt.f32 %v371_v43 }
 0x236   : > { %v5721_v44 = vpop.eup %5720 }
 0x237   : > { %v373_v46 = vmul.f32 %v5721_v44, %v365_v36 }
 0x239   : > { %v378_v48 = vmul.f32 %v4798_v45, %v373_v46 }
 0x23b   : > { %v383_v49 = vadd.f32 %v4799_v47, %v378_v48 }
 0x23d   : > { %v388_v50 = vpack.c.bf16 %v383_v49, %v383_v49 }
 0x23f   : > { %5151 = vmatmul.mubr.msk.bf16.vlgmr.msra.gmra.mrb[0].mxu1 %vm406_vm3, %v388_v50 }
 0x240   : > { %5156 = vmatprep.mubr.msk.bf16.mxu1 %vm5827_vm2, %v5826_v3 }
 0x312   : > { %v444_v52 = vpop.f32.mrb[0].mxu1 }
 0x313   : > { %v445_v53 = vadd.f32 %v4800_v51, %v444_v52  ;;  %v5152_v54 = vpop.f32.mrb[1].mxu1 }
 0x314   : > { %v447_v55 = vpop.f32.mrb[2].mxu1 }
 0x315   : > { %v5966_v56 = vpack.c.bf16 %v445_v53, %v445_v53  ;;  %v5153_v57 = vpop.f32.mrb[3].mxu1 }
 0x316   : > { %v4812_v57 = vld [vmem:[%s6913_s2 + $0x30] ss:$0 sm:$0xff] }
 0x317   : > { %519 = vrot.lane.b32.xlu0 %v5966_v56, %s5828_s18  ;;  %456 = vrot.lane.b32.xlu1 %v5966_v56, %s5829_s19 }
 0x389   : > { %v457_v58 = vpop.permute.xlu1 %456  ;;  %v520_v63 = vpop.permute.xlu0 %519 }
 0x38a   : > { %v463_v59 = vsel %vm458_vm4, %v457_v58, 0  ;;  %v530_v0 = vand.u32 %v5976_v62, %v520_v63 }
 0x38b   : > { %5155 = vmatpush3.bf16.xpose.msra.mxu1 %v463_v59 }
 0x38c   : > { %5160 = vmatprep.subr.bf16.mxu1 %v5826_v3 }
 0x392   : > { %5157 = vmatmul.mubr.msk.bf16.vlgmr.msra.gmra.mrb[4].mxu1 %vm458_vm4, %v5966_v56 }
 0x393   : > { %5161 = vmatpush3.bf16.msra.mxu1 %v530_v0  ;;  %5162 = vmatprep.mubr.msk.bf16.mxu1 %vm5827_vm2, %v5826_v3 }
 0x394   : > { %5166 = vmatprep.subr.bf16.mxu1 %v5826_v3 }
 0x465   : > { %v499_v1 = vpop.f32.mrb[4].mxu1 }
 0x466   : > { %v505_v2 = vmul.f32 0.25, %v499_v1  ;;  %v5158_v4 = vpop.f32.mrb[5].mxu1 }
 0x467   : > { %v502_v5 = vpop.f32.mrb[6].mxu1 }
 0x468   : > { %v5159_v6 = vpop.f32.mrb[7].mxu1  ;;  %v507_v7 = vsel %vm506_vm7, %v505_v2, -inf }
 0x469   : > { %508 = vmax.xlane.f32.xlu1 %v507_v7  ;;  %v5668_v7 = vld [vmem:[%s6912_s1 + $0xa0] sm:$0xff]  }
 0x4f6   : > { %v509_v8 = vpop.xlane.xlu1 %508 }
 0x4f7   : > { %v510_v9 = vsub.f32 %v505_v2, %v509_v8  ;;  %v5670_v8 = vld [vmem:[%s6912_s1 + $0xb0] sm:$0xff]  }
 0x4f9   : > { %v511_v10 = vmul.f32 1.442695, %v510_v9 }
 0x4fb   : > { %5722 = vpow2.f32 %v511_v10 }
 0x505   : > { %v5723_v11 = vpop.eup %5722 }
 0x506   : > { %v513_v12 = vsel %vm506_vm7, %v5723_v11, 0.0 }
 0x507   : > { %514 = vadd.xlane.f32.xlu0 %v513_v12 }
 0x51d   : > { %575 = vrot.lane.b32.xlu0 %v5966_v56, %s5831_s20 }
 0x521   : > { %573 = vrot.lane.b32.xlu0 %v5966_v56, %s5832_s21 }
 0x594   : > { %v515_v13 = vpop.xlane.xlu0 %514 }
 0x595   : > { %5724 = vrcp.f32 %v515_v13  ;;  %v4813_v13 = vld [vmem:[%s6913_s2 + $0x38] ss:$0 sm:$0xff] }
 0x598   : > { %v576_v16 = vpop.permute.xlu0 %575 }
 0x599   : > { %v581_v18 = vsel %vm458_vm4, %v576_v16, 0 }
 0x59c   : > { %v574_v19 = vpop.permute.xlu0 %573 }
 0x59f   : > { %v5725_v14 = vpop.eup %5724 }
 0x5a0   : > { %v517_v15 = vmul.f32 %v5725_v14, %v5723_v11 }
 0x5a2   : > { %v518_v17 = vpack.c.bf16 %v517_v15, %v517_v15  ;;  %v4814_v15 = vld [vmem:[%s6913_s2 + $0x40] ss:$0 sm:$0xff] }
 0x5a4   : > { %5163 = vmatmul.mubr.msk.bf16.vlgmr.msra.gmra.mrb[8].mxu1 %vm521_vm8, %v518_v17 }
 0x5a5   : > { %5167 = vmatpush3.bf16.xpose.msra.mxu1 %v581_v18  ;;  %5168 = vmatprep.mubr.msk.bf16.mxu1 %vm5827_vm2, %v5826_v3 }
 0x5a6   : > { %5178 = vmatprep.subr.bf16.mxu1 %v5826_v3 }
 0x5ac   : > { %5169 = vmatmul.mubr.msk.bf16.vlgmr.msra.gmra.mrb[12].mxu1 %vm458_vm4, %v574_v19  ;;  %v5671_v19 = vld [vmem:[%s6912_s1 + $0xb8] sm:$0xff]  }
 0x5ad   : > { %5180 = vmatprep.mubr.msk.bf16.mxu1 %vm5827_vm2, %v5826_v3  ;;  %5179 = vmatpush3.bf16.msra.mxu1 %v5667_v38 }
 0x5ae   : > { %5190 = vmatprep.subr.bf16.mxu1 %v5826_v3 }
 0x677   : > { %v566_v20 = vpop.f32.mrb[8].mxu1 }
 0x678   : > { %v5164_v21 = vpop.f32.mrb[9].mxu1  ;;  %v572_v44 = vpack.c.bf16 %v566_v20, %v566_v20  ;;  %v5672_v20 = vld [vmem:[%s6912_s1 + $0xc0] sm:$0xff]  }
 0x679   : > { %v569_v22 = vpop.f32.mrb[10].mxu1  ;;  %v5673_v21 = vld [vmem:[%s6912_s1 + $0xc8] sm:$0xff]  }
 0x67a   : > { %v5165_v23 = vpop.f32.mrb[11].mxu1  ;;  %v5674_v22 = vld [vmem:[%s6912_s1 + $0xd0] sm:$0xff]  }
 0x67b   : > { %v5675_v23 = vld [vmem:[%s6912_s1 + $0xd8] sm:$0xff]  }
 0x67f   : > { %v617_v24 = vpop.f32.mrb[12].mxu1 }
 0x680   : > { %v623_v25 = vmul.f32 0.25, %v617_v24  ;;  %v5170_v26 = vpop.f32.mrb[13].mxu1  ;;  %v5676_v24 = vld [vmem:[%s6912_s1 + $0xe0] sm:$0xff]  }
 0x681   : > { %v620_v27 = vpop.f32.mrb[14].mxu1  ;;  %v4815_v26 = vld [vmem:[%s6913_s2 + $0x48] ss:$0 sm:$0xff] }
 0x682   : > { %v5171_v28 = vpop.f32.mrb[15].mxu1  ;;  %v624_v29 = vsel %vm506_vm7, %v623_v25, -inf }
 0x683   : > { %625 = vmax.xlane.f32.xlu1 %v624_v29 }
 0x694   : > { %636 = vrot.lane.b32.xlu1 %v5966_v56, %s5833_s22 }
 0x710   : > { %v626_v30 = vpop.xlane.xlu1 %625 }
 0x711   : > { %v627_v31 = vsub.f32 %v623_v25, %v626_v30  ;;  %v5677_v25 = vld [vmem:[%s6912_s1 + $0xe8] sm:$0xff]  }
 0x713   : > { %v628_v33 = vmul.f32 1.442695, %v627_v31 }
 0x714   : > { %v637_v34 = vpop.permute.xlu1 %636 }
 0x715   : > { %5726 = vpow2.f32 %v628_v33  ;;  %v642_v35 = vand.u32 %v637_v34, %v5976_v62 }
 0x717   : > { %5173 = vmatpush3.bf16.msra.mxu0 %v642_v35 }
 0x718   : > { %5184 = vmatprep.subr.bf16.mxu0 %v5826_v3 }
 0x71f   : > { %v5727_v36 = vpop.eup %5726 }
 0x720   : > { %v630_v37 = vsel %vm506_vm7, %v5727_v36, 0.0 }
 0x721   : > { %631 = vadd.xlane.f32.xlu0 %v630_v37 }
 0x7ae   : > { %v632_v39 = vpop.xlane.xlu0 %631 }
 0x7af   : > { %5728 = vrcp.f32 %v632_v39 }
 0x7b9   : > { %v5729_v40 = vpop.eup %5728 }
 0x7ba   : > { %v634_v41 = vmul.f32 %v5729_v40, %v5727_v36 }
 0x7bc   : > { %v635_v43 = vpack.c.bf16 %v634_v41, %v634_v41 }
 0x7be   : > { %5175 = vmatmul.mubr.msk.bf16.vlgmr.msra.gmra.mrb[4].mxu0 %vm521_vm8, %v635_v43 }
 0x7bf   : > { %5185 = vmatpush3.bf16.msra.mxu0 %v5666_v42  ;;  %5186 = vmatprep.mubr.msk.bf16.mxu0 %vm5827_vm2, %v5826_v3 }
 0x7c0   : > { %5198 = vmatprep.subr.bf16.mxu0 %v5826_v3 }
 0x7c6   : > { %5187 = vmatmul.mubr.msk.bf16.vlgmr.msra.gmra.mrb[8].mxu0 %vm458_vm4, %v572_v44  ;;  %v4827_v44 = vld [vmem:[%s6913_s2 + $0x50] ss:$0 sm:$0xff] }
 0x7c7   : > { %5214 = vmatprep.mubr.msk.bf16.mxu0 %vm5827_vm2, %v5826_v3  ;;  %5199 = vmatpush3.bf16.msra.mxu0 %v5670_v8 }
 0x7c8   : > { %5200 = vmatprep.subr.bf16.mxu0 %v5826_v3 }
 0x7cb   : > { %5201 = vmatpush3.bf16.msra.mxu0 %v5671_v19 }
 0x7cc   : > { %5202 = vmatprep.subr.bf16.mxu0 %v5826_v3 }
 0x7cf   : > { %5203 = vmatpush3.bf16.msra.mxu0 %v5672_v20 }
 0x7d0   : > { %5204 = vmatprep.subr.bf16.mxu0 %v5826_v3 }
 0x7d3   : > { %5205 = vmatpush3.bf16.msra.mxu0 %v5673_v21 }
 0x7d4   : > { %5206 = vmatprep.subr.bf16.mxu0 %v5826_v3 }
 0x7d7   : > { %5207 = vmatpush3.bf16.msra.mxu0 %v5674_v22 }
 0x7d8   : > { %5208 = vmatprep.subr.bf16.mxu0 %v5826_v3 }
 0x7db   : > { %5209 = vmatpush3.bf16.msra.mxu0 %v5675_v23 }
 0x7dc   : > { %5210 = vmatprep.subr.bf16.mxu0 %v5826_v3 }
 0x7df   : > { %5211 = vmatpush3.bf16.msra.mxu0 %v5676_v24 }
 0x7e0   : > { %5212 = vmatprep.subr.bf16.mxu0 %v5826_v3 }
 0x7e3   : > { %5213 = vmatpush3.bf16.msra.mxu0 %v5677_v25 }
 0x7e4   : > { %5244 = vmatprep.subr.bf16.mxu0 %v5826_v3 }
 0x891   : > { %v678_v45 = vpop.f32.mrb[4].mxu0 }
 0x892   : > { %v684_v46 = vpack.c.bf16 %v678_v45, %v678_v45  ;;  %v5176_v47 = vpop.f32.mrb[5].mxu0 }
 0x893   : > { %v681_v48 = vpop.f32.mrb[6].mxu0 }
 0x894   : > { %v5177_v49 = vpop.f32.mrb[7].mxu0  ;;  %5181 = vmatmul.mubr.msk.bf16.vlgmr.msra.gmra.mrb[16].mxu1 %vm458_vm4, %v684_v46 }
 0x895   : > { %5194 = vmatprep.mubr.msk.bf16.mxu1 %vm5827_vm2, %v5826_v3  ;;  %5191 = vmatpush3.bf16.msra.mxu1 %v5668_v7  ;;  %v4830_v7 = vld [vmem:[%s6913_s2 + $0x68] ss:$0 sm:$0xff] }
 0x896   : > { %5192 = vmatprep.subr.bf16.mxu1 %v5826_v3 }
 0x899   : > { %v777_v50 = vpop.f32.mrb[8].mxu0 }
 0x89a   : > { %v5188_v51 = vpop.f32.mrb[9].mxu0 }
 0x89b   : > { %v780_v52 = vpop.f32.mrb[10].mxu0 }
 0x89c   : > { %v5189_v53 = vpop.f32.mrb[11].mxu0 }
 0x967   : > { %v728_v54 = vpop.f32.mrb[16].mxu1 }
 0x968   : > { %v778_v55 = vadd.f32 %v777_v50, %v728_v54  ;;  %v5182_v56 = vpop.f32.mrb[17].mxu1 }
 0x969   : > { %v731_v58 = vpop.f32.mrb[18].mxu1  ;;  %v5678_v56 = vld [vmem:[%s6912_s1 + $0xf0] sm:$0xff]  }
 0x96a   : > { %v783_v59 = vadd.f32 %v778_v55, %v5936_v32  ;;  %v5183_v61 = vpop.f32.mrb[19].mxu1  ;;  %v5669_v32 = vld [vmem:[%s6912_s1 + $0xa8] sm:$0xff]  }
 0x96b   : > { %5193 = vmatpush3.bf16.msra.mxu1 %v5669_v32 }
 0x96c   : > { %v6025_v63 = vadd.f32 %v4812_v57, %v783_v59  ;;  %5218 = vmatprep.subr.bf16.mxu1 %v5826_v3  ;;  %v5679_v57 = vld [vmem:[%s6912_s1 + $0xf8] sm:$0xff]  }
 0x96e   : > { %v792_v0 = vsel %vm359_vm1, %v6025_v63, 0.0 }
 0x96f   : > { %793 = vadd.xlane.f32.xlu1 %v792_v0  ;;  %v4828_v0 = vld [vmem:[%s6913_s2 + $0x58] ss:$0 sm:$0xff] }
 0x9fc   : > { %v794_v1 = vpop.xlane.xlu1 %793 }
 0x9fd   : > { %v795_v2 = vmul.f32 0.03125, %v794_v1 }
 0x9ff   : > { %v796_v4 = vsub.f32 %v6025_v63, %v795_v2  ;;  %v4829_v2 = vld [vmem:[%s6913_s2 + $0x60] ss:$0 sm:$0xff] }
 0xa01   : > { %v797_v5 = vmul.f32 %v796_v4, %v796_v4 }
 0xa03   : > { %v798_v6 = vsel %vm359_vm1, %v797_v5, 0.0 }
 0xa04   : > { %799 = vadd.xlane.f32.xlu0 %v798_v6 }
 0xa91   : > { %v800_v9 = vpop.xlane.xlu0 %799 }
 0xa92   : > { %v801_v10 = vmul.f32 0.03125, %v800_v9 }
 0xa94   : > { %v802_v11 = vadd.f32 1e-06, %v801_v10 }
 0xa96   : > { %5730 = vrsqrt.f32 %v802_v11 }
 0xaa0   : > { %v5731_v12 = vpop.eup %5730 }
 0xaa1   : > { %v804_v14 = vmul.f32 %v5731_v12, %v796_v4 }
 0xaa3   : > { %v809_v16 = vmul.f32 %v4813_v13, %v804_v14 }
 0xaa5   : > { %v814_v17 = vadd.f32 %v4814_v15, %v809_v16 }
 0xaa7   : > { %v819_v18 = vpack.c.bf16 %v814_v17, %v814_v17 }
 0xaa9   : > { %5195 = vmatmul.mubr.msk.bf16.vlgmr.msra.gmra.mrb[20].mxu1 %vm406_vm3, %v819_v18 }
 0xaaa   : > { %5222 = vmatprep.mubr.msk.bf16.mxu1 %vm5827_vm2, %v5826_v3  ;;  %5219 = vmatpush3.bf16.msra.mxu1 %v5678_v56 }
 0xaab   : > { %5220 = vmatprep.subr.bf16.mxu1 %v5826_v3 }
 0xaae   : > { %5221 = vmatpush3.bf16.msra.mxu1 %v5679_v57 }
 0xaaf   : > { %5226 = vmatprep.subr.bf16.mxu1 %v5826_v3 }
 0xb7c   : > { %v874_v27 = vpop.f32.mrb[20].mxu1 }
 0xb7d   : > { %v875_v28 = vadd.f32 %v4815_v26, %v874_v27  ;;  %v5196_v29 = vpop.f32.mrb[21].mxu1 }
 0xb7e   : > { %v877_v30 = vpop.f32.mrb[22].mxu1 }
 0xb7f   : > { %v881_v31 = vmul.f32 0.044715, %v875_v28  ;;  %v5197_v33 = vpop.f32.mrb[23].mxu1  ;;  %v880_v39 = vmul.f32 0.5, %v875_v28 }
 0xb81   : > { %v882_v34 = vmul.f32 %v881_v31, %v875_v28 }
 0xb83   : > { %v883_v35 = vmul.f32 %v882_v34, %v875_v28 }
 0xb85   : > { %v884_v36 = vadd.f32 %v883_v35, %v875_v28 }
 0xb87   : > { %v885_v37 = vmul.f32 0.7978846, %v884_v36 }
 0xb89   : > { %5732 = vtanh.f32 %v885_v37 }
 0xb93   : > { %v5733_v38 = vpop.eup %5732 }
 0xb94   : > { %v887_v40 = vadd.f32 1.0, %v5733_v38 }
 0xb96   : > { %v888_v41 = vmul.f32 %v887_v40, %v880_v39 }
 0xb98   : > { %v905_v42 = vpack.c.bf16 %v888_v41, %v888_v41 }
 0xb9a   : > { %5215 = vmatmul.mubr.bf16.vlgmr.msra.gmra.mrb[12].mxu0 %v905_v42 }
 0xb9b   : > { %5246 = vmatprep.mubr.msk.bf16.mxu0 %vm5827_vm2, %v5826_v3 }
 0xc6d   : > { %v988_v43 = vpop.f32.mrb[12].mxu0 }
 0xc6e   : > { %v994_v45 = vadd.f32 %v988_v43, %v6025_v63  ;;  %v5216_v46 = vpop.f32.mrb[13].mxu0 }
 0xc6f   : > { %v991_v47 = vpop.f32.mrb[14].mxu0 }
 0xc70   : > { %v6089_v48 = vadd.f32 %v4827_v44, %v994_v45  ;;  %v5217_v49 = vpop.f32.mrb[15].mxu0 }
 0xc72   : > { %v1003_v50 = vsel %vm359_vm1, %v6089_v48, 0.0 }
 0xc73   : > { %1004 = vadd.xlane.f32.xlu0 %v1003_v50 }
 0xd00   : > { %v1005_v51 = vpop.xlane.xlu0 %1004 }
 0xd01   : > { %v1006_v52 = vmul.f32 0.03125, %v1005_v51 }
 0xd03   : > { %v1007_v53 = vsub.f32 %v6089_v48, %v1006_v52 }
 0xd05   : > { %v1008_v54 = vmul.f32 %v1007_v53, %v1007_v53 }
 0xd07   : > { %v1009_v55 = vsel %vm359_vm1, %v1008_v54, 0.0  ;;  %v5681_v54 = vld [vmem:[%s6912_s1 + $0x108] sm:$0xff]  }
 0xd08   : > { %1010 = vadd.xlane.f32.xlu0 %v1009_v55 }
 0xd95   : > { %v1011_v58 = vpop.xlane.xlu0 %1010 }
 0xd96   : > { %v1012_v59 = vmul.f32 0.03125, %v1011_v58  ;;  %v5680_v58 = vld [vmem:[%s6912_s1 + $0x100] sm:$0xff]  }
 0xd98   : > { %v1013_v61 = vadd.f32 1e-06, %v1012_v59 }
 0xd9a   : > { %5734 = vrsqrt.f32 %v1013_v61  ;;  %v6150_v61 = vld [vmem:[%s5886_s27] sm:$0xff] }
 0xda4   : > { %v5735_v63 = vpop.eup %5734 }
 0xda5   : > { %v1015_v1 = vmul.f32 %v5735_v63, %v1007_v53 }
 0xda7   : > { %v1020_v4 = vmul.f32 %v4828_v0, %v1015_v1 }
 0xda9   : > { %v1025_v5 = vadd.f32 %v4829_v2, %v1020_v4 }
 0xdab   : > { %v1030_v6 = vpack.c.bf16 %v1025_v5, %v1025_v5 }
 0xdad   : > { %5223 = vmatmul.mubr.msk.bf16.vlgmr.msra.gmra.mrb[24].mxu1 %vm406_vm3, %v1030_v6 }
 0xdae   : > { %5228 = vmatprep.mubr.msk.bf16.mxu1 %vm5827_vm2, %v5826_v3 }
 0xe80   : > { %v1085_v32 = vpop.f32.mrb[24].mxu1 }
 0xe81   : > { %v1086_v8 = vadd.f32 %v4830_v7, %v1085_v32  ;;  %v5224_v9 = vpop.f32.mrb[25].mxu1 }
 0xe82   : > { %v1088_v10 = vpop.f32.mrb[26].mxu1 }
 0xe83   : > { %v1095_v11 = vpack.c.bf16 %v1086_v8, %v1086_v8  ;;  %v5225_v12 = vpop.f32.mrb[27].mxu1 }
 0xe85   : > { %1097 = vrot.lane.b32.xlu0 %v1095_v11, %s5829_s19 }
 0xe89   : > { %1209 = vrot.lane.b32.xlu0 %v1095_v11, %s5831_s20 }
 0xe8d   : > { %1207 = vrot.lane.b32.xlu0 %v1095_v11, %s5832_s21 }
 0xef7   : > { %v1098_v13 = vpop.permute.xlu0 %1097 }
 0xef8   : > { %v1103_v14 = vsel %vm458_vm4, %v1098_v13, 0 }
 0xef9   : > { %5227 = vmatpush3.bf16.xpose.msra.mxu1 %v1103_v14 }
 0xefa   : > { %5232 = vmatprep.subr.bf16.mxu1 %v5826_v3 }
 0xefb   : > { %v1210_v31 = vpop.permute.xlu0 %1209 }
 0xefc   : > { %v1215_v34 = vsel %vm458_vm4, %v1210_v31, 0 }
 0xeff   : > { %v1208_v35 = vpop.permute.xlu0 %1207 }
 0xf00   : > { %5229 = vmatmul.mubr.msk.bf16.vlgmr.msra.gmra.mrb[28].mxu1 %vm458_vm4, %v1095_v11 }
 0xf01   : > { %5234 = vmatprep.mubr.msk.bf16.mxu1 %vm5827_vm2, %v5826_v3 }
 0xfd3   : > { %v1139_v15 = vpop.f32.mrb[28].mxu1 }
 0xfd4   : > { %v1145_v16 = vmul.f32 0.25, %v1139_v15  ;;  %v5230_v17 = vpop.f32.mrb[29].mxu1 }
 0xfd5   : > { %v1142_v18 = vpop.f32.mrb[30].mxu1 }
 0xfd6   : > { %v5231_v19 = vpop.f32.mrb[31].mxu1  ;;  %v1146_v20 = vsel %vm506_vm7, %v1145_v16, -inf }
 0xfd7   : > { %1147 = vmax.xlane.f32.xlu1 %v1146_v20 }
0x1064   : > { %v1148_v21 = vpop.xlane.xlu1 %1147 }
0x1065   : > { %v1149_v22 = vsub.f32 %v1145_v16, %v1148_v21 }
0x1067   : > { %v1150_v23 = vmul.f32 1.442695, %v1149_v22  ;;  %v5682_v22 = vld [vmem:[%s6912_s1 + $0x110] sm:$0xff]  }
0x1069   : > { %5736 = vpow2.f32 %v1150_v23  ;;  %v5684_v23 = vld [vmem:[%s6912_s1 + $0x120] sm:$0xff]  }
0x1073   : > { %v5737_v24 = vpop.eup %5736 }
0x1074   : > { %v1152_v25 = vsel %vm506_vm7, %v5737_v24, 0.0 }
0x1075   : > { %1153 = vadd.xlane.f32.xlu1 %v1152_v25 }
0x1086   : > { %1158 = vrot.lane.b32.xlu1 %v1095_v11, %s5828_s18 }
0x1102   : > { %v1154_v26 = vpop.xlane.xlu1 %1153 }
0x1103   : > { %5738 = vrcp.f32 %v1154_v26 }
0x1106   : > { %v1159_v27 = vpop.permute.xlu1 %1158 }
0x1107   : > { %v1164_v28 = vand.u32 %v1159_v27, %v5976_v62 }
0x1109   : > { %5233 = vmatpush3.bf16.msra.mxu1 %v1164_v28  ;;  %v4843_v28 = vld [vmem:[%s6913_s2 + $0x78] ss:$0 sm:$0xff] }
0x110a   : > { %5238 = vmatprep.subr.bf16.mxu1 %v5826_v3 }
0x110d   : > { %v5739_v29 = vpop.eup %5738 }
0x110e   : > { %v1156_v30 = vmul.f32 %v5739_v29, %v5737_v24 }
0x1110   : > { %v1157_v33 = vpack.c.bf16 %v1156_v30, %v1156_v30  ;;  %v4844_v30 = vld [vmem:[%s6913_s2 + $0x80] ss:$0 sm:$0xff] }
0x1112   : > { %5235 = vmatmul.mubr.msk.bf16.vlgmr.msra.gmra.mrb[32].mxu1 %vm521_vm8, %v1157_v33 }
0x1113   : > { %5239 = vmatpush3.bf16.xpose.msra.mxu1 %v1215_v34  ;;  %5240 = vmatprep.mubr.msk.bf16.mxu1 %vm5827_vm2, %v5826_v3 }
0x1114   : > { %5250 = vmatprep.subr.bf16.mxu1 %v5826_v3 }
0x111a   : > { %5241 = vmatmul.mubr.msk.bf16.vlgmr.msra.gmra.mrb[36].mxu1 %vm458_vm4, %v1208_v35  ;;  %v5685_v35 = vld [vmem:[%s6912_s1 + $0x128] sm:$0xff]  }
0x111b   : > { %5252 = vmatprep.mubr.msk.bf16.mxu1 %vm5827_vm2, %v5826_v3  ;;  %5251 = vmatpush3.bf16.msra.mxu1 %v5681_v54 }
0x111c   : > { %5262 = vmatprep.subr.bf16.mxu1 %v5826_v3 }
0x11e5   : > { %v1200_v36 = vpop.f32.mrb[32].mxu1 }
0x11e6   : > { %v5236_v37 = vpop.f32.mrb[33].mxu1 }
0x11e7   : > { %v1203_v38 = vpop.f32.mrb[34].mxu1  ;;  %v5687_v37 = vld [vmem:[%s6912_s1 + $0x138] sm:$0xff]  }
0x11e8   : > { %v5237_v39 = vpop.f32.mrb[35].mxu1  ;;  %v5688_v38 = vld [vmem:[%s6912_s1 + $0x140] sm:$0xff]  }
0x11e9   : > { %v5689_v39 = vld [vmem:[%s6912_s1 + $0x148] sm:$0xff]  }
0x11ed   : > { %v1251_v40 = vpop.f32.mrb[36].mxu1 }
0x11ee   : > { %v1257_v41 = vmul.f32 0.25, %v1251_v40  ;;  %v5242_v42 = vpop.f32.mrb[37].mxu1  ;;  %v5690_v40 = vld [vmem:[%s6912_s1 + $0x150] sm:$0xff]  }
0x11ef   : > { %v1254_v43 = vpop.f32.mrb[38].mxu1  ;;  %v4845_v42 = vld [vmem:[%s6913_s2 + $0x88] ss:$0 sm:$0xff] }
0x11f0   : > { %v5243_v44 = vpop.f32.mrb[39].mxu1  ;;  %v1258_v45 = vsel %vm506_vm7, %v1257_v41, -inf }
0x11f1   : > { %1259 = vmax.xlane.f32.xlu0 %v1258_v45 }
0x1207   : > { %1270 = vrot.lane.b32.xlu0 %v1095_v11, %s5833_s22  ;;  %v4842_v11 = vld [vmem:[%s6913_s2 + $0x70] ss:$0 sm:$0xff] }
0x127e   : > { %v1260_v46 = vpop.xlane.xlu0 %1259 }
0x127f   : > { %v1261_v47 = vsub.f32 %v1257_v41, %v1260_v46  ;;  %v5691_v41 = vld [vmem:[%s6912_s1 + $0x158] sm:$0xff]  }
0x1281   : > { %v1262_v49 = vmul.f32 1.442695, %v1261_v47 }
0x1282   : > { %v1271_v50 = vpop.permute.xlu0 %1270 }
0x1283   : > { %5740 = vpow2.f32 %v1262_v49  ;;  %v1276_v51 = vand.u32 %v1271_v50, %v5976_v62 }
0x1285   : > { %5245 = vmatpush3.bf16.msra.mxu0 %v1276_v51 }
0x1286   : > { %5256 = vmatprep.subr.bf16.mxu0 %v5826_v3  ;;  %v1206_v3 = vpack.c.bf16 %v1200_v36, %v1200_v36  ;;  %v5686_v36 = vld [vmem:[%s6912_s1 + $0x130] sm:$0xff]  }
0x128d   : > { %v5741_v52 = vpop.eup %5740 }
0x128e   : > { %v1264_v53 = vsel %vm506_vm7, %v5741_v52, 0.0 }
0x128f   : > { %1265 = vadd.xlane.f32.xlu1 %v1264_v53 }
0x131c   : > { %v1266_v55 = vpop.xlane.xlu1 %1265 }
0x131d   : > { %5742 = vrcp.f32 %v1266_v55 }
0x1327   : > { %v5743_v56 = vpop.eup %5742 }
0x1328   : > { %v1268_v57 = vmul.f32 %v5743_v56, %v5741_v52 }
0x132a   : > { %v1269_v59 = vpack.c.bf16 %v1268_v57, %v1268_v57 }
0x132c   : > { %5247 = vmatmul.mubr.msk.bf16.vlgmr.msra.gmra.mrb[16].mxu0 %vm521_vm8, %v1269_v59 }
0x132d   : > { %5257 = vmatpush3.bf16.msra.mxu0 %v5680_v58  ;;  %5258 = vmatprep.mubr.msk.bf16.mxu0 %vm5827_vm2, %v6150_v61 }
0x132e   : > { %5270 = vmatprep.subr.bf16.mxu0 %v6150_v61 }
0x1334   : > { %5259 = vmatmul.mubr.msk.bf16.vlgmr.msra.gmra.mrb[20].mxu0 %vm458_vm4, %v1206_v3  ;;  %v4857_v3 = vld [vmem:[%s6913_s2 + $0x90] ss:$0 sm:$0xff] }
0x1335   : > { %5286 = vmatprep.mubr.msk.bf16.mxu0 %vm5827_vm2, %v6150_v61  ;;  %5271 = vmatpush3.bf16.msra.mxu0 %v5684_v23 }
0x1336   : > { %5272 = vmatprep.subr.bf16.mxu0 %v6150_v61 }
0x1339   : > { %5273 = vmatpush3.bf16.msra.mxu0 %v5685_v35 }
0x133a   : > { %5274 = vmatprep.subr.bf16.mxu0 %v6150_v61 }
0x133d   : > { %5275 = vmatpush3.bf16.msra.mxu0 %v5686_v36  ;;  %v5694_v36 = vld [vmem:[%s6912_s1 + $0x170] sm:$0xff]  }
0x133e   : > { %5276 = vmatprep.subr.bf16.mxu0 %v6150_v61 }
0x1341   : > { %5277 = vmatpush3.bf16.msra.mxu0 %v5687_v37 }
0x1342   : > { %5278 = vmatprep.subr.bf16.mxu0 %v6150_v61 }
0x1345   : > { %5279 = vmatpush3.bf16.msra.mxu0 %v5688_v38  ;;  %v5695_v38 = vld [vmem:[%s6912_s1 + $0x178] sm:$0xff]  }
0x1346   : > { %5280 = vmatprep.subr.bf16.mxu0 %v6150_v61 }
0x1349   : > { %5281 = vmatpush3.bf16.msra.mxu0 %v5689_v39 }
0x134a   : > { %5282 = vmatprep.subr.bf16.mxu0 %v6150_v61 }
0x134d   : > { %5283 = vmatpush3.bf16.msra.mxu0 %v5690_v40  ;;  %v5696_v40 = vld [vmem:[%s6912_s1 + $0x180] sm:$0xff]  }
0x134e   : > { %5284 = vmatprep.subr.bf16.mxu0 %v6150_v61 }
0x1351   : > { %5285 = vmatpush3.bf16.msra.mxu0 %v5691_v41 }
0x1352   : > { %5322 = vmatprep.subr.bf16.mxu0 %v6150_v61 }
0x13ff   : > { %v1312_v63 = vpop.f32.mrb[16].mxu0 }
0x1400   : > { %v1318_v0 = vpack.c.bf16 %v1312_v63, %v1312_v63  ;;  %v5248_v1 = vpop.f32.mrb[17].mxu0 }
0x1401   : > { %v1315_v2 = vpop.f32.mrb[18].mxu0 }
0x1402   : > { %v5249_v4 = vpop.f32.mrb[19].mxu0  ;;  %5253 = vmatmul.mubr.msk.bf16.vlgmr.msra.gmra.mrb[40].mxu1 %vm458_vm4, %v1318_v0 }
0x1403   : > { %5266 = vmatprep.mubr.msk.bf16.mxu1 %vm5827_vm2, %v6150_v61  ;;  %5263 = vmatpush3.bf16.msra.mxu1 %v5682_v22 }
0x1404   : > { %5264 = vmatprep.subr.bf16.mxu1 %v6150_v61 }
0x1407   : > { %v1411_v5 = vpop.f32.mrb[20].mxu0 }
0x1408   : > { %v5260_v6 = vpop.f32.mrb[21].mxu0 }
0x1409   : > { %v1414_v7 = vpop.f32.mrb[22].mxu0 }
0x140a   : > { %v5261_v32 = vpop.f32.mrb[23].mxu0 }
0x14d5   : > { %v1362_v8 = vpop.f32.mrb[40].mxu1 }
0x14d6   : > { %v1412_v9 = vadd.f32 %v1411_v5, %v1362_v8  ;;  %v5254_v10 = vpop.f32.mrb[41].mxu1 }
0x14d7   : > { %v1365_v12 = vpop.f32.mrb[42].mxu1 }
0x14d8   : > { %v1417_v13 = vadd.f32 %v1412_v9, %v6089_v48  ;;  %v5255_v14 = vpop.f32.mrb[43].mxu1  ;;  %v5683_v48 = vld [vmem:[%s6912_s1 + $0x118] sm:$0xff]  }
0x14d9   : > { %5265 = vmatpush3.bf16.msra.mxu1 %v5683_v48  ;;  %v4858_v14 = vld [vmem:[%s6913_s2 + $0x98] ss:$0 sm:$0xff] }
0x14da   : > { %v6165_v15 = vadd.f32 %v4842_v11, %v1417_v13  ;;  %5290 = vmatprep.subr.bf16.mxu1 %v6150_v61 }
0x14dc   : > { %v1426_v16 = vsel %vm359_vm1, %v6165_v15, 0.0 }
0x14dd   : > { %1427 = vadd.xlane.f32.xlu1 %v1426_v16  ;;  %v4859_v16 = vld [vmem:[%s6913_s2 + $0xa0] ss:$0 sm:$0xff] }
0x156a   : > { %v1428_v17 = vpop.xlane.xlu1 %1427 }
0x156b   : > { %v1429_v18 = vmul.f32 0.03125, %v1428_v17 }
0x156d   : > { %v1430_v19 = vsub.f32 %v6165_v15, %v1429_v18 }
0x156f   : > { %v1431_v20 = vmul.f32 %v1430_v19, %v1430_v19 }
0x1571   : > { %v1432_v21 = vsel %vm359_vm1, %v1431_v20, 0.0 }
0x1572   : > { %1433 = vadd.xlane.f32.xlu1 %v1432_v21 }
0x15ff   : > { %v1434_v24 = vpop.xlane.xlu1 %1433 }
0x1600   : > { %v1435_v25 = vmul.f32 0.03125, %v1434_v24  ;;  %v5692_v24 = vld [vmem:[%s6912_s1 + $0x160] sm:$0xff]  }
0x1602   : > { %v1436_v26 = vadd.f32 1e-06, %v1435_v25  ;;  %v5693_v25 = vld [vmem:[%s6912_s1 + $0x168] sm:$0xff]  }
0x1604   : > { %5744 = vrsqrt.f32 %v1436_v26 }
0x160e   : > { %v5745_v27 = vpop.eup %5744 }
0x160f   : > { %v1438_v29 = vmul.f32 %v5745_v27, %v1430_v19 }
0x1611   : > { %v1443_v31 = vmul.f32 %v4843_v28, %v1438_v29 }
0x1613   : > { %v1448_v33 = vadd.f32 %v4844_v30, %v1443_v31  ;;  %v1686_v30 = vld [vmem:[%s6913_s2 + $0xb0] sm:$0x1] }
0x1615   : > { %v1453_v34 = vpack.c.bf16 %v1448_v33, %v1448_v33  ;;  %v1687_v33 = vld [vmem:[%s6913_s2 + $0xb8] sm:$0x1] }
0x1617   : > { %5267 = vmatmul.mubr.msk.bf16.vlgmr.msra.gmra.mrb[44].mxu1 %vm406_vm3, %v1453_v34 }
0x1618   : > { %5294 = vmatprep.mubr.msk.bf16.mxu1 %vm5827_vm2, %v6150_v61  ;;  %5291 = vmatpush3.bf16.msra.mxu1 %v5692_v24 }
0x1619   : > { %5292 = vmatprep.subr.bf16.mxu1 %v6150_v61 }
0x161c   : > { %5293 = vmatpush3.bf16.msra.mxu1 %v5693_v25 }
0x161d   : > { %5298 = vmatprep.subr.bf16.mxu1 %v6150_v61 }
0x16ea   : > { %v1508_v43 = vpop.f32.mrb[44].mxu1 }
0x16eb   : > { %v1509_v44 = vadd.f32 %v4845_v42, %v1508_v43  ;;  %v5268_v45 = vpop.f32.mrb[45].mxu1 }
0x16ec   : > { %v1511_v46 = vpop.f32.mrb[46].mxu1  ;;  %v5697_v45 = vld [vmem:[%s6912_s1 + $0x188] sm:$0xff]  }
0x16ed   : > { %v1515_v47 = vmul.f32 0.044715, %v1509_v44  ;;  %v5269_v49 = vpop.f32.mrb[47].mxu1  ;;  %v1514_v55 = vmul.f32 0.5, %v1509_v44  ;;  %v1764_v46 = vld [vmem:[%s6913_s2 + $0xa8] sm:$0x3f] }
0x16ef   : > { %v1516_v50 = vmul.f32 %v1515_v47, %v1509_v44  ;;  %v1830_v47 = vpack.c.bf16 %v1764_v46, %v1764_v46 }
0x16f1   : > { %v1517_v51 = vmul.f32 %v1516_v50, %v1509_v44 }
0x16f3   : > { %v1518_v52 = vadd.f32 %v1517_v51, %v1509_v44 }
0x16f5   : > { %v1519_v53 = vmul.f32 0.7978846, %v1518_v52 }
0x16f7   : > { %5746 = vtanh.f32 %v1519_v53  ;;  %v4866_v53 = vld [vmem:[%s6913_s2 + $0xc8] ss:$0 sm:$0xff] }
0x1701   : > { %v5747_v54 = vpop.eup %5746 }
0x1702   : > { %v1521_v56 = vadd.f32 1.0, %v5747_v54 }
0x1704   : > { %v1522_v57 = vmul.f32 %v1521_v56, %v1514_v55 }
0x1706   : > { %v1539_v58 = vpack.c.bf16 %v1522_v57, %v1522_v57 }
0x1708   : > { %5287 = vmatmul.mubr.bf16.vlgmr.msra.gmra.mrb[24].mxu0 %v1539_v58 }
0x1709   : > { %5326 = vmatprep.mubr.msk.bf16.mxu0 %vm5827_vm2, %v6150_v61 }
0x17db   : > { %v1622_v59 = vpop.f32.mrb[24].mxu0 }
0x17dc   : > { %v1628_v63 = vadd.f32 %v1622_v59, %v6165_v15  ;;  %v5288_v0 = vpop.f32.mrb[25].mxu0  ;;  %v1891_v59 = vlaneseq }
0x17dd   : > { %v1625_v1 = vpop.f32.mrb[26].mxu0 }
0x17de   : > { %v5289_v2 = vpop.f32.mrb[27].mxu0  ;;  %v1634_v4 = vadd.f32 %v4857_v3, %v1628_v63  ;;  %v6290_v3 = vshrl.u32 %v1891_v59, 7  ;;  %v1770_v63 = vld [vmem:[%s6913_s2 + $0xc0] sm:$0x1] }
0x17e0   : > { %v1637_v5 = vsel %vm359_vm1, %v1634_v4, 0.0  ;;  %v1893_v1 = vsub.s32 0, %v6290_v3 }
0x17e1   : > { %1638 = vadd.xlane.f32.xlu1 %v1637_v5 }
0x186e   : > { %v1639_v6 = vpop.xlane.xlu1 %1638 }
0x186f   : > { %v1640_v7 = vmul.f32 0.03125, %v1639_v6 }
0x1871   : > { %v1641_v32 = vsub.f32 %v1634_v4, %v1640_v7 }
0x1873   : > { %v1642_v8 = vmul.f32 %v1641_v32, %v1641_v32 }
0x1875   : > { %v1643_v9 = vsel %vm359_vm1, %v1642_v8, 0.0 }
0x1876   : > { %1644 = vadd.xlane.f32.xlu0 %v1643_v9 }
0x1903   : > { %v1645_v10 = vpop.xlane.xlu0 %1644 }
0x1904   : > { %v1646_v11 = vmul.f32 0.03125, %v1645_v10 }
0x1906   : > { %v1647_v12 = vadd.f32 1e-06, %v1646_v11 }
0x1908   : > { %5748 = vrsqrt.f32 %v1647_v12 }
0x1912   : > { %v5749_v13 = vpop.eup %5748 }
0x1913   : > { %v1649_v15 = vmul.f32 %v5749_v13, %v1641_v32 }
0x1915   : > { %v1654_v17 = vmul.f32 %v4858_v14, %v1649_v15 }
0x1917   : > { %v6237_v18 = vadd.f32 %v4859_v16, %v1654_v17 }
0x1919   : > { %v1689_v19 = vsel %vm1688_vm9, %v6237_v18, 0.0 }
0x191a   : > { %1690 = vadd.xlane.f32.xlu1 %v1689_v19 }
0x19a7   : > { %v1691_v20 = vpop.xlane.xlu1 %1690 }
0x19a8   : > { %v1692_v21 = vmul.f32 0.03125, %v1691_v20 }
0x19aa   : > { %v1693_v22 = vsub.f32 %v6237_v18, %v1692_v21 }
0x19ac   : > { %v1694_v48 = vmul.f32 %v1693_v22, %v1693_v22 }
0x19ae   : > { %v1695_v23 = vsel %vm1688_vm9, %v1694_v48, 0.0  ;;  %v4870_v48 = vld [vmem:[%s6913_s2 + $0xd0] ss:$0 sm:$0xff] }
0x19af   : > { %1696 = vadd.xlane.f32.xlu1 %v1695_v23 }
0x1a3c   : > { %v1697_v26 = vpop.xlane.xlu1 %1696 }
0x1a3d   : > { %v1698_v27 = vmul.f32 0.03125, %v1697_v26 }
0x1a3f   : > { %v1699_v28 = vadd.f32 1e-05, %v1698_v27 }
0x1a41   : > { %5750 = vrsqrt.f32 %v1699_v28 }
0x1a4b   : > { %v5751_v29 = vpop.eup %5750 }
0x1a4c   : > { %v6252_v31 = vmul.f32 %v5751_v29, %v1693_v22  ;;  %v4871_v29 = vld [vmem:[%s6913_s2 + $0xd8] ss:$0 sm:$0xff] }
0x1a4e   : > { %v1702_v34 = vmul.f32 %v6252_v31, %v1686_v30  ;;  %v5698_v30 = vld [vmem:[%s6912_s1 + $0x190] sm:$0xff]  }
0x1a50   : > { %v1703_v35 = vadd.f32 %v1702_v34, %v1687_v33  ;;  %v5699_v33 = vld [vmem:[%s6912_s1 + $0x198] sm:$0xff]  }
0x1a52   : > { %v1708_v37 = vpack.c.bf16 %v1703_v35, %v1703_v35 }
0x1a54   : > { %5295 = vmatmul.mubr.msk.bf16.vlgmr.msra.gmra.mrb[48].mxu1 %vm406_vm3, %v1708_v37 }
0x1a55   : > { %5299 = vmatpush3.bf16.msra.mxu1 %v5694_v36  ;;  %5302 = vmatprep.mubr.msk.bf16.mxu1 %vm5827_vm2, %v6150_v61 }
0x1a56   : > { %5300 = vmatprep.subr.bf16.mxu1 %v6150_v61 }
0x1a59   : > { %5301 = vmatpush3.bf16.msra.mxu1 %v5695_v38 }
0x1a5a   : > { %5306 = vmatprep.subr.bf16.mxu1 %v6150_v61 }
0x1b27   : > { %v1758_v39 = vpop.f32.mrb[48].mxu1 }
0x1b28   : > { %v1769_v41 = vpack.c.bf16 %v1758_v39, %v1758_v39  ;;  %v5296_v42 = vpop.f32.mrb[49].mxu1 }
0x1b29   : > { %v1761_v43 = vpop.f32.mrb[50].mxu1 }
0x1b2a   : > { %v5297_v44 = vpop.f32.mrb[51].mxu1  ;;  %5303 = vmatmul.mubr.msk.bf16.vlgmr.msra.gmra.mrb[52].mxu1 %vm406_vm3, %v1769_v41 }
0x1b2b   : > { %5307 = vmatpush3.bf16.msra.mxu1 %v5696_v40  ;;  %5310 = vmatprep.mubr.msk.bf16.mxu1 %vm5827_vm2, %v6150_v61  ;;  %v2111_v44 = vld [vmem:[%s6913_s2 + $0x100] sm:$0x1] }
0x1b2c   : > { %5308 = vmatprep.subr.bf16.mxu1 %v6150_v61 }
0x1b2f   : > { %5309 = vmatpush3.bf16.msra.mxu1 %v5697_v45  ;;  %v5700_v45 = vld [vmem:[%s6912_s1 + $0x1b0] sm:$0xff]  }
0x1b30   : > { %5314 = vmatprep.subr.bf16.mxu1 %v6150_v61 }
0x1b32   : > { %5311 = vmatmul.mubr.msk.bf16.vlgmr.msra.gmra.mrb[56].mxu1 %vm406_vm3, %v1830_v47 }
0x1b33   : > { %5318 = vmatprep.mubr.msk.bf16.mxu1 %vm5827_vm2, %v6150_v61  ;;  %5315 = vmatpush3.bf16.msra.mxu1 %v5698_v30 }
0x1b34   : > { %5316 = vmatprep.subr.bf16.mxu1 %v6150_v61 }
0x1b37   : > { %5317 = vmatpush3.bf16.msra.mxu1 %v5699_v33 }
0x1b38   : > { %5330 = vmatprep.subr.bf16.mxu1 %v6150_v61 }
0x1bfd   : > { %v1820_v49 = vpop.f32.mrb[52].mxu1 }
0x1bfe   : > { %v5304_v50 = vpop.f32.mrb[53].mxu1  ;;  %v1821_v0 = vadd.f32 %v1820_v49, %v1770_v63  ;;  %v2112_v49 = vld [vmem:[%s6913_s2 + $0x108] sm:$0x1] }
0x1bff   : > { %v1823_v51 = vpop.f32.mrb[54].mxu1  ;;  %v5701_v50 = vld [vmem:[%s6912_s1 + $0x1b8] sm:$0xff]  }
0x1c00   : > { %v5305_v52 = vpop.f32.mrb[55].mxu1  ;;  %v1894_v2 = vrot.slane %v1821_v0, %v1893_v1 }
0x1c05   : > { %v1885_v54 = vpop.f32.mrb[56].mxu1 }
0x1c06   : > { %v1886_v55 = vadd.f32 %v4866_v53, %v1885_v54  ;;  %v5312_v56 = vpop.f32.mrb[57].mxu1  ;;  %v5703_v53 = vld [vmem:[%s6912_s1 + $0x1d8] sm:$0xff]  }
0x1c07   : > { %v1888_v57 = vpop.f32.mrb[58].mxu1  ;;  %v6354_v54 = vld [vmem:[%s6913_s2 + $0xf8] sm:$0x1f]  ;;  %v5704_v56 = vld [vmem:[%s6912_s1 + $0x1a0] sm:$0xff]  }
0x1c08   : > { %1902 = vrot.lane.b32.xlu1 %v1886_v55, %s5828_s18  ;;  %v5313_v58 = vpop.f32.mrb[59].mxu1  ;;  %v1895_v4 = vadd.f32 %v1894_v2, %v1886_v55  ;;  %v2241_v55 = vpack.c.bf16 %v6354_v54, %v6354_v54  ;;  %5323 = vmatpush3.bf16.msra.mxu0 %v5704_v56  ;;  %v5705_v57 = vld [vmem:[%s6912_s1 + $0x1a8] sm:$0xff]  }
0x1c09   : > { %5324 = vmatprep.subr.bf16.mxu0 %v6150_v61  ;;  %v4872_v58 = vld [vmem:[%s6913_s2 + $0xe0] ss:$0 sm:$0xff] }
0x1c0a   : > { %v1896_v5 = vsub.f32 0.0, %v1895_v4 }
0x1c0c   : > { %v1897_v6 = vmul.f32 1.442695, %v1896_v5  ;;  %5325 = vmatpush3.bf16.msra.mxu0 %v5705_v57  ;;  %v4891_v57 = vld [vmem:[%s6913_s2 + $0x128] ss:$0 sm:$0xff] }
0x1c0d   : > { %5338 = vmatprep.subr.bf16.mxu0 %v6150_v61 }
0x1c0e   : > { %5752 = vpow2.f32 %v1897_v6  ;;  %v5706_v6 = vld [vmem:[%s6912_s1 + $0x1c0] sm:$0xff]  }
0x1c18   : > { %v5753_v7 = vpop.eup %5752 }
0x1c19   : > { %v1899_v32 = vadd.f32 1.0, %v5753_v7 }
0x1c1b   : > { %5754 = vrcp.f32 %v1899_v32 }
0x1c25   : > { %v5755_v8 = vpop.eup %5754 }
0x1c26   : > { %v1912_v15 = vsub.f32 1.0, %v5755_v8 }
0x1c7a   : > { %v1903_v9 = vpop.permute.xlu1 %1902 }
0x1c7b   : > { %v1905_v10 = vmul.f32 %v5755_v8, %v1903_v9 }
0x1c7d   : > { %1907 = vrot.lane.b32.xlu1 %v1905_v10, %s5828_s18 }
0x1c81   : > { %1919 = vrot.lane.b32.xlu1 %v1764_v46, %s5834_s24  ;;  %v2113_v46 = vmul.f32 %v2111_v44, %v6252_v31  ;;  %v5702_v31 = vld [vmem:[%s6912_s1 + $0x1d0] sm:$0xff]  }
0x1c83   : > { %v2114_v51 = vadd.f32 %v2113_v46, %v2112_v49 }
0x1c85   : > { %v2119_v52 = vpack.c.bf16 %v2114_v51, %v2114_v51  ;;  %v4890_v51 = vld [vmem:[%s6913_s2 + $0x120] ss:$0 sm:$0xff] }
0x1cef   : > { %v1908_v11 = vpop.permute.xlu1 %1907 }
0x1cf0   : > { %v1910_v12 = vadd.f32 %v1908_v11, %v1894_v2 }
0x1cf2   : > { %5756 = vtanh.f32 %v1910_v12 }
0x1cf3   : > { %v1920_v14 = vpop.permute.xlu1 %1919 }
0x1cf4   : > { %v1922_v17 = vmul.f32 %v5755_v8, %v1920_v14  ;;  %v5707_v8 = vld [vmem:[%s6912_s1 + $0x1c8] sm:$0xff]  }
0x1cfc   : > { %v5757_v13 = vpop.eup %5756 }
0x1cfd   : > { %1914 = vrot.lane.b32.xlu0 %v5757_v13, %s5829_s19  ;;  %v4886_v13 = vld [vmem:[%s6913_s2 + $0x118] ss:$0 sm:$0xff] }
0x1d6f   : > { %v1915_v16 = vpop.permute.xlu0 %1914 }
0x1d70   : > { %v1917_v19 = vmul.f32 %v1915_v16, %v1912_v15 }
0x1d72   : > { %v6301_v20 = vadd.f32 %v1922_v17, %v1917_v19 }
0x1d74   : > { %1927 = vrot.lane.b32.xlu1 %v6301_v20, %s5829_s19 }
0x1de6   : > { %v1928_v21 = vpop.permute.xlu1 %1927 }
0x1de7   : > { %v1931_v22 = vsel %vm1930_vm10, %v1928_v21, 0.0 }
0x1de8   : > { %1932 = vadd.xlane.f32.xlu1 %v1931_v22 }
0x1df9   : > { %1953 = vrot.lane.b32.xlu1 %v4870_v48, %s5834_s24 }
0x1e75   : > { %v1933_v23 = vpop.xlane.xlu1 %1932 }
0x1e76   : > { %v1934_v24 = vmul.f32 0.03125, %v1933_v23 }
0x1e78   : > { %v1935_v25 = vsub.f32 %v6301_v20, %v1934_v24  ;;  %v2181_v24 = vld [vmem:[%s6913_s2 + $0x110] sm:$0x1] }
0x1e79   : > { %v1954_v38 = vpop.permute.xlu1 %1953 }
0x1e7a   : > { %v1936_v26 = vmul.f32 %v1935_v25, %v1935_v25 }
0x1e7c   : > { %1938 = vrot.lane.b32.xlu0 %v1936_v26, %s5829_s19 }
0x1eee   : > { %v1939_v27 = vpop.permute.xlu0 %1938 }
0x1eef   : > { %v1941_v28 = vsel %vm1930_vm10, %v1939_v27, 0.0 }
0x1ef0   : > { %1942 = vadd.xlane.f32.xlu0 %v1941_v28 }
0x1f06   : > { %1962 = vrot.lane.b32.xlu0 %v4871_v29, %s5834_s24 }
0x1f7d   : > { %v1943_v34 = vpop.xlane.xlu0 %1942 }
0x1f7e   : > { %v1944_v35 = vmul.f32 0.03125, %v1943_v34 }
0x1f80   : > { %v1945_v36 = vadd.f32 1e-05, %v1944_v35 }
0x1f81   : > { %v1963_v40 = vpop.permute.xlu0 %1962 }
0x1f82   : > { %5758 = vrsqrt.f32 %v1945_v36 }
0x1f8c   : > { %v5759_v37 = vpop.eup %5758 }
0x1f8d   : > { %v1947_v39 = vmul.f32 %v5759_v37, %v1935_v25 }
0x1f8f   : > { %v1956_v41 = vmul.f32 %v1954_v38, %v1947_v39 }
0x1f91   : > { %v1965_v42 = vadd.f32 %v1963_v40, %v1956_v41 }
0x1f93   : > { %v1970_v43 = vpack.c.bf16 %v1965_v42, %v1965_v42 }
0x1f95   : > { %1977 = vrot.lane.b32.xlu1 %v1970_v43, %s5829_s19 }
0x2007   : > { %v1978_v47 = vpop.permute.xlu1 %1977 }
0x2008   : > { %5319 = vmatmul.mubr.msk.bf16.vlgmr.msra.gmra.mrb[60].mxu1 %vm406_vm3, %v1978_v47 }
0x2009   : > { %5331 = vmatpush3.bf16.msra.mxu1 %v5700_v45  ;;  %5334 = vmatprep.mubr.msk.bf16.mxu1 %vm5827_vm2, %v6150_v61 }
0x200a   : > { %5332 = vmatprep.subr.bf16.mxu1 %v6150_v61 }
0x200d   : > { %5333 = vmatpush3.bf16.msra.mxu1 %v5701_v50 }
0x200e   : > { %5346 = vmatprep.subr.bf16.mxu1 %v6150_v61 }
0x2010   : > { %5335 = vmatmul.mubr.msk.bf16.vlgmr.msra.gmra.mrb[64].mxu1 %vm406_vm3, %v2119_v52 }
0x2011   : > { %5347 = vmatpush3.bf16.msra.mxu1 %v5702_v31  ;;  %5350 = vmatprep.mubr.msk.bf16.mxu1 %vm5827_vm2, %v6150_v61 }
0x2012   : > { %5348 = vmatprep.subr.bf16.mxu1 %v6150_v61 }
0x2015   : > { %5349 = vmatpush3.bf16.msra.mxu1 %v5703_v53 }
0x2016   : > { %5362 = vmatprep.subr.bf16.mxu1 %v6150_v61 }
0x2018   : > { %5351 = vmatmul.mubr.msk.bf16.vlgmr.msra.gmra.mrb[68].mxu1 %vm406_vm3, %v2241_v55 }
0x2019   : > { %5366 = vmatprep.mubr.msk.bf16.mxu1 %vm5827_vm2, %v6150_v61 }
0x20db   : > { %v2028_v59 = vpop.f32.mrb[60].mxu1 }
0x20dc   : > { %v2029_v63 = vadd.f32 %v4872_v58, %v2028_v59  ;;  %v5320_v0 = vpop.f32.mrb[61].mxu1  ;;  %v2105_v58 = vld [vmem:[%s6913_s2 + $0xf0] sm:$0x3f]  ;;  %v5708_v59 = vld [vmem:[%s6912_s1 + $0x1e0] sm:$0xff]  }
0x20dd   : > { %v2031_v2 = vpop.f32.mrb[62].mxu1 }
0x20de   : > { %v2034_v4 = vmax.f32 %v2029_v63, 0.0  ;;  %v5321_v5 = vpop.f32.mrb[63].mxu1  ;;  %v5709_v63 = vld [vmem:[%s6912_s1 + $0x1e8] sm:$0xff]  }
0x20e0   : > { %v2039_v7 = vpack.c.bf16 %v2034_v4, %v2034_v4 }
0x20e2   : > { %5327 = vmatmul.mubr.msk.bf16.vlgmr.msra.gmra.mrb[28].mxu0 %vm406_vm3, %v2039_v7 }
0x20e3   : > { %v2169_v32 = vpop.f32.mrb[64].mxu1  ;;  %5339 = vmatpush3.bf16.msra.mxu0 %v5706_v6  ;;  %5342 = vmatprep.mubr.msk.bf16.mxu0 %vm5827_vm2, %v6150_v61 }
0x20e4   : > { %v5336_v9 = vpop.f32.mrb[65].mxu1  ;;  %5340 = vmatprep.subr.bf16.mxu0 %v6150_v61  ;;  %v2180_v12 = vpack.c.bf16 %v2169_v32, %v2169_v32 }
0x20e5   : > { %v2172_v10 = vpop.f32.mrb[66].mxu1 }
0x20e6   : > { %v5337_v11 = vpop.f32.mrb[67].mxu1 }
0x20e7   : > { %5341 = vmatpush3.bf16.msra.mxu0 %v5707_v8  ;;  %v4876_v11 = vld [vmem:[%s6913_s2 + $0xe8] ss:$0 sm:$0xff] }
0x20e8   : > { %5354 = vmatprep.subr.bf16.mxu0 %v6150_v61 }
0x20ea   : > { %5343 = vmatmul.mubr.msk.bf16.vlgmr.msra.gmra.mrb[32].mxu0 %vm406_vm3, %v2180_v12 }
0x20eb   : > { %v2296_v14 = vpop.f32.mrb[68].mxu1  ;;  %5358 = vmatprep.mubr.msk.bf16.mxu0 %vm5827_vm2, %v6150_v61  ;;  %5355 = vmatpush3.bf16.msra.mxu0 %v5708_v59 }
0x20ec   : > { %v2297_v15 = vadd.f32 %v4886_v13, %v2296_v14  ;;  %v5352_v16 = vpop.f32.mrb[69].mxu1  ;;  %5356 = vmatprep.subr.bf16.mxu0 %v6150_v61  ;;  %v5710_v13 = vld [vmem:[%s6912_s1 + $0x200] sm:$0xff]  }
0x20ed   : > { %v2299_v17 = vpop.f32.mrb[70].mxu1 }
0x20ee   : > { %v5353_v19 = vpop.f32.mrb[71].mxu1  ;;  %2313 = vrot.lane.b32.xlu1 %v2297_v15, %s5828_s18 }
0x20ef   : > { %5357 = vmatpush3.bf16.msra.mxu0 %v5709_v63 }
0x20f0   : > { %5370 = vmatprep.subr.bf16.mxu0 %v6150_v61 }
0x2160   : > { %v2314_v38 = vpop.permute.xlu1 %2313 }
0x21b5   : > { %v6392_v21 = vpop.f32.mrb[28].mxu0 }
0x21b6   : > { %v5328_v22 = vpop.f32.mrb[29].mxu0  ;;  %v2095_v12 = vadd.f32 %v4876_v11, %v6392_v21  ;;  %v6450_v21 = vpack.c.bf16 %v6237_v18, %v6237_v18  ;;  %v5713_v18 = vld [vmem:[%s6912_s1 + $0x1f8] sm:$0xff]  }
0x21b7   : > { %v2097_v48 = vpop.f32.mrb[30].mxu0 }
0x21b8   : > { %v5329_v23 = vpop.f32.mrb[31].mxu0 }
0x21b9   : > { %v4892_v23 = vld [vmem:[%s6913_s2 + $0x130] ss:$0 sm:$0xff] }
0x21bd   : > { %v2231_v25 = vpop.f32.mrb[32].mxu0 }
0x21be   : > { %v2232_v26 = vadd.f32 %v2231_v25, %v2181_v24  ;;  %v5344_v27 = vpop.f32.mrb[33].mxu0 }
0x21bf   : > { %v2234_v28 = vpop.f32.mrb[34].mxu0 }
0x21c0   : > { %v2305_v29 = vrot.slane %v2232_v26, %v1893_v1  ;;  %v5345_v30 = vpop.f32.mrb[35].mxu0 }
0x21c1   : > { %v6472_v30 = vld [vmem:[%s6912_s1 + $0x210] sm:$0xff]  }
0x21c2   : > { %v2306_v33 = vadd.f32 %v2305_v29, %v2297_v15  ;;  %v5711_v15 = vld [vmem:[%s6912_s1 + $0x208] sm:$0xff]  }
0x21c4   : > { %v2307_v34 = vsub.f32 0.0, %v2306_v33 }
0x21c6   : > { %v2308_v35 = vmul.f32 1.442695, %v2307_v34 }
0x21c8   : > { %5760 = vpow2.f32 %v2308_v35  ;;  %v6479_v35 = vld [vmem:[%s6912_s1 + $0x218] sm:$0xff]  }
0x21d2   : > { %v5761_v36 = vpop.eup %5760 }
0x21d3   : > { %v2310_v37 = vadd.f32 1.0, %v5761_v36 }
0x21d5   : > { %5762 = vrcp.f32 %v2310_v37 }
0x21df   : > { %v5763_v39 = vpop.eup %5762 }
0x21e0   : > { %v2316_v40 = vmul.f32 %v5763_v39, %v2314_v38  ;;  %v2323_v1 = vsub.f32 1.0, %v5763_v39 }
0x21e2   : > { %2318 = vrot.lane.b32.xlu1 %v2316_v40, %s5828_s18 }
0x2254   : > { %v2319_v41 = vpop.permute.xlu1 %2318 }
0x2255   : > { %v2321_v42 = vadd.f32 %v2319_v41, %v2305_v29 }
0x2257   : > { %5764 = vtanh.f32 %v2321_v42 }
0x2261   : > { %v5765_v43 = vpop.eup %5764 }
0x2262   : > { %2325 = vrot.lane.b32.xlu1 %v5765_v43, %s5829_s19 }
0x2266   : > { %2330 = vrot.lane.b32.xlu1 %v6354_v54, %s5834_s24 }
0x22d4   : > { %v2326_v3 = vpop.permute.xlu1 %2325 }
0x22d5   : > { %v2328_v45 = vmul.f32 %v2326_v3, %v2323_v1 }
0x22d8   : > { %v2331_v44 = vpop.permute.xlu1 %2330 }
0x22d9   : > { %v2333_v46 = vmul.f32 %v5763_v39, %v2331_v44 }
0x22db   : > { %v6403_v47 = vadd.f32 %v2333_v46, %v2328_v45 }
0x22dd   : > { %2338 = vrot.lane.b32.xlu0 %v6403_v47, %s5829_s19 }
0x234f   : > { %v2339_v49 = vpop.permute.xlu0 %2338 }
0x2350   : > { %v2341_v50 = vsel %vm359_vm1, %v2339_v49, 0.0 }
0x2351   : > { %2342 = vadd.xlane.f32.xlu1 %v2341_v50 }
0x2362   : > { %2363 = vrot.lane.b32.xlu1 %v4890_v51, %s5834_s24 }
0x23de   : > { %v2343_v31 = vpop.xlane.xlu1 %2342 }
0x23df   : > { %v2344_v52 = vmul.f32 0.03125, %v2343_v31 }
0x23e1   : > { %v2345_v53 = vsub.f32 %v6403_v47, %v2344_v52 }
0x23e2   : > { %v2364_v6 = vpop.permute.xlu1 %2363 }
0x23e3   : > { %v2346_v54 = vmul.f32 %v2345_v53, %v2345_v53 }
0x23e5   : > { %2348 = vrot.lane.b32.xlu0 %v2346_v54, %s5829_s19 }
0x2457   : > { %v2349_v55 = vpop.permute.xlu0 %2348 }
0x2458   : > { %v2351_v56 = vsel %vm359_vm1, %v2349_v55, 0.0  ;;  %vm4120_vm1 = vcmask 56320  }
0x2459   : > { %2352 = vadd.xlane.f32.xlu0 %v2351_v56 }
0x246f   : > { %2372 = vrot.lane.b32.xlu0 %v4891_v57, %s5834_s24 }
0x2473   : > { %2107 = vrot.lane.b32.xlu0 %v2105_v58, %s5834_s24 }
0x24e6   : > { %v2353_v0 = vpop.xlane.xlu0 %2352 }
0x24e7   : > { %v2354_v2 = vmul.f32 0.03125, %v2353_v0 }
0x24e9   : > { %v2355_v4 = vadd.f32 1e-05, %v2354_v2 }
0x24ea   : > { %v2373_v32 = vpop.permute.xlu0 %2372 }
0x24eb   : > { %5766 = vrsqrt.f32 %v2355_v4 }
0x24ee   : > { %v2108_v17 = vpop.permute.xlu0 %2107 }
0x24f5   : > { %v5767_v5 = vpop.eup %5766 }
0x24f6   : > { %v2357_v7 = vmul.f32 %v5767_v5, %v2345_v53 }
0x24f8   : > { %v2366_v8 = vmul.f32 %v2364_v6, %v2357_v7 }
0x24fa   : > { %v2375_v9 = vadd.f32 %v2373_v32, %v2366_v8 }
0x24fc   : > { %v2380_v10 = vpack.c.bf16 %v2375_v9, %v2375_v9 }
0x24fe   : > { %2387 = vrot.lane.b32.xlu1 %v2380_v10, %s5829_s19 }
0x2502   : > { %2101 = vrot.lane.b32.xlu1 %v2095_v12, %s5834_s24 }
0x2570   : > { %v2388_v14 = vpop.permute.xlu1 %2387 }
0x2571   : > { %5359 = vmatmul.mubr.msk.bf16.vlgmr.msra.gmra.mrb[36].mxu0 %vm406_vm3, %v2388_v14 }
0x2572   : > { %5371 = vmatpush3.bf16.msra.mxu0 %v5710_v13  ;;  %5374 = vmatprep.mubr.msk.bf16.mxu0 %vm5827_vm2, %v6150_v61 }
0x2573   : > { %5372 = vmatprep.subr.bf16.mxu0 %v6150_v61 }
0x2574   : > { %v2102_v16 = vpop.permute.xlu1 %2101 }
0x2575   : > { %v2104_v19 = vadd.f32 %v2102_v16, %v6301_v20  ;;  %v5712_v20 = vld [vmem:[%s6912_s1 + $0x1f0] sm:$0xff]  }
0x2576   : > { %5373 = vmatpush3.bf16.msra.mxu0 %v5711_v15  ;;  %5363 = vmatpush3.bf16.msra.mxu1 %v5712_v20  ;;  %v1669_v20 = vld [vmem:[%s6912_s1 + $0x224] sm:$0xf] }
0x2577   : > { %v2110_v22 = vadd.f32 %v2108_v17, %v2104_v19  ;;  %5386 = vmatprep.subr.bf16.mxu0 %v6150_v61  ;;  %5364 = vmatprep.subr.bf16.mxu1 %v6150_v61 }
0x2579   : > { %v2577_v48 = vpack.c.bf16 %v2110_v22, %v2110_v22  ;;  %5375 = vmatmul.mubr.msk.bf16.vlgmr.msra.gmra.mrb[40].mxu0 %vm406_vm3, %v6450_v21 }
0x257a   : > { %5388 = vmatprep.mubr.msk.bf16.mxu0 %vm5827_vm2, %v6150_v61  ;;  %5365 = vmatpush3.bf16.msra.mxu1 %v5713_v18  ;;  %v6539_v18 = vsel %vm2868_vm14, %v1669_v20, 0 }
0x257b   : > { %2579 = vrot.lane.b32.xlu1 %v2577_v48, %s5829_s19  ;;  %5378 = vmatprep.subr.bf16.mxu1 %v6150_v61 }
0x25ed   : > { %v2580_v40 = vpop.permute.xlu1 %2579 }
0x2644   : > { %v2438_v24 = vpop.f32.mrb[36].mxu0 }
0x2645   : > { %v2439_v25 = vadd.f32 %v4892_v23, %v2438_v24  ;;  %v5360_v26 = vpop.f32.mrb[37].mxu0 }
0x2646   : > { %v2441_v27 = vpop.f32.mrb[38].mxu0 }
0x2647   : > { %v2444_v28 = vmax.f32 %v2439_v25, 0.0  ;;  %v5361_v29 = vpop.f32.mrb[39].mxu0  ;;  %v1668_v27 = vld [vmem:[%s6912_s1 + $0x220] sm:$0xf] }
0x2649   : > { %v2449_v33 = vpack.c.bf16 %v2444_v28, %v2444_v28 }
0x264b   : > { %5367 = vmatmul.mubr.msk.bf16.vlgmr.msra.gmra.mrb[72].mxu1 %vm406_vm3, %v2449_v33  ;;  %v6553_v33 = vsel %vm2868_vm14, %v1668_v27, 0 }
0x264c   : > { %v2571_v34 = vpop.f32.mrb[40].mxu0  ;;  %5379 = vmatpush3.bf16.msra.mxu1 %v6472_v30  ;;  %5382 = vmatprep.mubr.msk.bf16.mxu1 %vm5827_vm2, %v6150_v61 }
0x264d   : > { %v6483_v36 = vpack.c.bf16 %v2571_v34, %v2571_v34  ;;  %v5376_v37 = vpop.f32.mrb[41].mxu0  ;;  %5380 = vmatprep.subr.bf16.mxu1 %v6150_v61  ;;  %v6558_v34 = vld [vmem:[%s5886_s27] sm:$0xff] }
0x264e   : > { %v2574_v38 = vpop.f32.mrb[42].mxu0 }
0x264f   : > { %v5377_v39 = vpop.f32.mrb[43].mxu0  ;;  %2752 = vrot.lane.b32.xlu1 %v6483_v36, %s5835_s25 }
0x2650   : > { %5381 = vmatpush3.bf16.msra.mxu1 %v6479_v35 }
0x2651   : > { %5392 = vmatprep.subr.bf16.mxu1 %v6150_v61 }
0x2653   : > { %5383 = vmatmul.mubr.msk.bf16.vlgmr.msra.gmra.mrb[76].mxu1 %vm406_vm3, %v2580_v40 }
0x2654   : > { %5394 = vmatprep.mubr.msk.bf16.mxu1 %vm5827_vm2, %v6150_v61 }
0x26c1   : > { %v6508_v52 = vpop.permute.xlu1 %2752 }
0x271e   : > { %v6493_v41 = vpop.f32.mrb[72].mxu1 }
0x271f   : > { %v5368_v42 = vpop.f32.mrb[73].mxu1 }
0x2720   : > { %v2507_v43 = vpop.f32.mrb[74].mxu1 }
0x2721   : > { %v5369_v3 = vpop.f32.mrb[75].mxu1 }
0x2726   : > { %v2630_v1 = vpop.f32.mrb[76].mxu1 }
0x2727   : > { %v6495_v44 = vpack.c.bf16 %v2630_v1, %v2630_v1  ;;  %v5384_v45 = vpop.f32.mrb[77].mxu1 }
0x2728   : > { %v2633_v46 = vpop.f32.mrb[78].mxu1 }
0x2729   : > { %2754 = vrot.lane.b32.xlu0 %v6495_v44, %s5835_s25  ;;  %v5385_v49 = vpop.f32.mrb[79].mxu1  ;;  %v2643_v50 = vsel %vm2638_vm11, %v6495_v44, 0 }
0x272a   : > { %5387 = vmatpush3.bf16.xpose.msra.mxu0 %v2643_v50 }
0x272b   : > { %5398 = vmatprep.subr.bf16.mxu0 %v6150_v61 }
0x2731   : > { %5389 = vmatmul.mubr.msk.bf16.vlgmr.msra.gmra.mrb[44].mxu0 %vm2638_vm11, %v6483_v36 }
0x2732   : > { %5400 = vmatprep.mubr.msk.bf16.mxu0 %vm5827_vm2, %v6150_v61 }
0x279b   : > { %v2755_v51 = vpop.permute.xlu0 %2754 }
0x279c   : > { %v2760_v31 = vsel %vm2638_vm11, %v2755_v51, 0 }
0x279d   : > { %5399 = vmatpush3.bf16.xpose.msra.mxu0 %v2760_v31 }
0x279e   : > { %5410 = vmatprep.subr.bf16.mxu0 %v6150_v61 }
0x27a4   : > { %5401 = vmatmul.mubr.msk.bf16.vlgmr.msra.gmra.mrb[48].mxu0 %vm2638_vm11, %v6508_v52 }
0x27a5   : > { %5412 = vmatprep.mubr.msk.bf16.mxu0 %vm5827_vm2, %v6150_v61  ;;  %5411 = vmatpush3.bf16.msra.mxu0 %v6539_v18 }
0x27a6   : > { %5422 = vmatprep.subr.bf16.mxu0 %v6150_v61 }
0x2804   : > { %v2679_v53 = vpop.f32.mrb[44].mxu0 }
0x2805   : > { %v2685_v54 = vmul.f32 0.35355338, %v2679_v53  ;;  %v5390_v55 = vpop.f32.mrb[45].mxu0 }
0x2806   : > { %v2682_v56 = vpop.f32.mrb[46].mxu0 }
0x2807   : > { %v5391_v57 = vpop.f32.mrb[47].mxu0  ;;  %v2687_v58 = vsel %vm2686_vm12, %v2685_v54, -inf }
0x2808   : > { %2688 = vmax.xlane.f32.xlu0 %v2687_v58 }
0x2877   : > { %v2796_v59 = vpop.f32.mrb[48].mxu0 }
0x2878   : > { %v2802_v63 = vmul.f32 0.35355338, %v2796_v59  ;;  %v5402_v0 = vpop.f32.mrb[49].mxu0 }
0x2879   : > { %v2799_v2 = vpop.f32.mrb[50].mxu0 }
0x287a   : > { %v5403_v4 = vpop.f32.mrb[51].mxu0  ;;  %v2803_v5 = vsel %vm2686_vm12, %v2802_v63, -inf }
0x287b   : > { %2804 = vmax.xlane.f32.xlu1 %v2803_v5 }
0x288c   : > { %2701 = vrot.lane.b32.xlu1 %v6495_v44, %s5829_s19 }
0x2890   : > { %2960 = vrot.lane.b32.xlu1 %v6495_v44, %s5832_s21 }
0x2894   : > { %2958 = vrot.lane.b32.xlu1 %v6483_v36, %s5832_s21 }
0x2895   : > { %v2689_v6 = vpop.xlane.xlu0 %2688 }
0x2896   : > { %v2690_v7 = vsub.f32 %v2685_v54, %v2689_v6 }
0x2898   : > { %v2691_v32 = vmul.f32 1.442695, %v2690_v7  ;;  %v4896_v7 = vld [vmem:[%s6913_s2 + $0x138] ss:$0 sm:$0xff] }
0x289a   : > { %5768 = vpow2.f32 %v2691_v32  ;;  %v2505_v32 = vadd.f32 %v4896_v7, %v6493_v41 }
0x28a4   : > { %v5769_v8 = vpop.eup %5768 }
0x28a5   : > { %v2693_v9 = vsel %vm2686_vm12, %v5769_v8, 0.0 }
0x28a6   : > { %2694 = vadd.xlane.f32.xlu0 %v2693_v9 }
0x2908   : > { %v2805_v10 = vpop.xlane.xlu1 %2804 }
0x2909   : > { %v2806_v11 = vsub.f32 %v2802_v63, %v2805_v10 }
0x290b   : > { %v2807_v12 = vmul.f32 1.442695, %v2806_v11 }
0x290c   : > { %v2702_v13 = vpop.permute.xlu1 %2701 }
0x290d   : > { %5770 = vpow2.f32 %v2807_v12  ;;  %v2708_v14 = vsel %vm526_vm6, %v2702_v13, 0 }
0x290e   : > { %5393 = vmatpush3.bf16.msra.mxu1 %v2708_v14 }
0x290f   : > { %5404 = vmatprep.subr.bf16.mxu1 %v6150_v61 }
0x2910   : > { %v2961_v42 = vpop.permute.xlu1 %2960 }
0x2911   : > { %v2966_v46 = vsel %vm2638_vm11, %v2961_v42, 0 }
0x2914   : > { %v6571_v50 = vpop.permute.xlu1 %2958 }
0x2917   : > { %v5771_v15 = vpop.eup %5770 }
0x2918   : > { %v2809_v16 = vsel %vm2686_vm12, %v5771_v15, 0.0 }
0x2919   : > { %2810 = vadd.xlane.f32.xlu0 %v2809_v16 }
0x292f   : > { %2816 = vrot.lane.b32.xlu0 %v6495_v44, %s5836_s26 }
0x2933   : > { %v2695_v17 = vpop.xlane.xlu0 %2694 }
0x2934   : > { %5772 = vrcp.f32 %v2695_v17 }
0x293e   : > { %v5773_v19 = vpop.eup %5772 }
0x293f   : > { %v6528_v22 = vmul.f32 %v5773_v19, %v5769_v8  ;;  %v2515_v8 = vld [vmem:[%s6913_s2 + $0x140] sm:$0x1f] }
0x2941   : > { %v2699_v48 = vpack.c.bf16 %v6528_v22, %v6528_v22 }
0x2943   : > { %5395 = vmatmul.mubr.msk.bf16.vlgmr.msra.gmra.mrb[80].mxu1 %vm2703_vm13, %v2699_v48 }
0x2944   : > { %5406 = vmatprep.mubr.msk.bf16.mxu1 %vm5827_vm2, %v6150_v61 }
0x29a6   : > { %v2811_v23 = vpop.xlane.xlu0 %2810 }
0x29a7   : > { %5774 = vrcp.f32 %v2811_v23 }
0x29aa   : > { %v2817_v24 = vpop.permute.xlu0 %2816 }
0x29ab   : > { %v2822_v25 = vsel %vm526_vm6, %v2817_v24, 0 }
0x29ac   : > { %5405 = vmatpush3.bf16.msra.mxu1 %v2822_v25 }
0x29ad   : > { %5416 = vmatprep.subr.bf16.mxu1 %v6150_v61 }
0x29b1   : > { %v5775_v26 = vpop.eup %5774 }
0x29b2   : > { %v6548_v28 = vmul.f32 %v5775_v26, %v5771_v15 }
0x29b4   : > { %v2815_v29 = vpack.c.bf16 %v6548_v28, %v6548_v28  ;;  %v2814_v17 = vadd.f32 %v6548_v28, %v6528_v22  ;;  %v1670_v22 = vld [vmem:[%s6912_s1 + $0x228] sm:$0xf] }
0x29b5   : > { %v6615_v26 = vsel %vm2868_vm14, %v1670_v22, 0 }
0x29b6   : > { %5407 = vmatmul.mubr.msk.bf16.vlgmr.msra.gmra.mrb[84].mxu1 %vm2703_vm13, %v2815_v29 }
0x29b7   : > { %5417 = vmatpush3.bf16.msra.mxu1 %v6553_v33  ;;  %5418 = vmatprep.mubr.msk.bf16.mxu1 %vm5827_vm2, %v6558_v34 }
0x29b8   : > { %5428 = vmatprep.subr.bf16.mxu1 %v6558_v34 }
0x2a16   : > { %v2744_v61 = vpop.f32.mrb[80].mxu1 }
0x2a17   : > { %v2750_v37 = vpack.c.bf16 %v2744_v61, %v2744_v61  ;;  %v5396_v38 = vpop.f32.mrb[81].mxu1 }
0x2a18   : > { %v2747_v39 = vpop.f32.mrb[82].mxu1 }
0x2a19   : > { %v5397_v40 = vpop.f32.mrb[83].mxu1  ;;  %5419 = vmatmul.mubr.msk.bf16.vlgmr.msra.gmra.mrb[88].mxu1 %vm2638_vm11, %v2750_v37 }
0x2a1a   : > { %5430 = vmatprep.mubr.msk.bf16.mxu1 %vm5827_vm2, %v6558_v34 }
0x2a89   : > { %v2858_v43 = vpop.f32.mrb[84].mxu1 }
0x2a8a   : > { %v2864_v3 = vpack.c.bf16 %v2858_v43, %v2858_v43  ;;  %v5408_v1 = vpop.f32.mrb[85].mxu1 }
0x2a8b   : > { %v2861_v45 = vpop.f32.mrb[86].mxu1 }
0x2a8c   : > { %v5409_v49 = vpop.f32.mrb[87].mxu1  ;;  %5413 = vmatmul.mubr.msk.bf16.vlgmr.msra.gmra.mrb[52].mxu0 %vm2638_vm11, %v2864_v3 }
0x2a8d   : > { %5423 = vmatpush3.bf16.xpose.msra.mxu0 %v2966_v46  ;;  %5424 = vmatprep.mubr.msk.bf16.mxu0 %vm5827_vm2, %v6558_v34 }
0x2a8e   : > { %5434 = vmatprep.subr.bf16.mxu0 %v6558_v34 }
0x2a94   : > { %5425 = vmatmul.mubr.msk.bf16.vlgmr.msra.gmra.mrb[56].mxu0 %vm2638_vm11, %v6571_v50 }
0x2a95   : > { %5436 = vmatprep.mubr.msk.bf16.mxu0 %vm5827_vm2, %v6558_v34  ;;  %5435 = vmatpush3.bf16.msra.mxu0 %v6615_v26 }
0x2a96   : > { %5446 = vmatprep.subr.bf16.mxu0 %v6558_v34 }
0x2aec   : > { %v2952_v51 = vpop.f32.mrb[88].mxu1 }
0x2aed   : > { %v5420_v31 = vpop.f32.mrb[89].mxu1 }
0x2aee   : > { %v2955_v53 = vpop.f32.mrb[90].mxu1 }
0x2aef   : > { %v5421_v54 = vpop.f32.mrb[91].mxu1 }
0x2b5f   : > { %v2906_v55 = vpop.f32.mrb[52].mxu0 }
0x2b60   : > { %v6577_v56 = vadd.f32 %v2952_v51, %v2906_v55  ;;  %v5414_v57 = vpop.f32.mrb[53].mxu0 }
0x2b61   : > { %v2909_v58 = vpop.f32.mrb[54].mxu0 }
0x2b62   : > { %v5415_v59 = vpop.f32.mrb[55].mxu0 }
0x2b67   : > { %v3002_v63 = vpop.f32.mrb[56].mxu0 }
0x2b68   : > { %v3008_v0 = vmul.f32 0.35355338, %v3002_v63  ;;  %v5426_v2 = vpop.f32.mrb[57].mxu0 }
0x2b69   : > { %v3005_v4 = vpop.f32.mrb[58].mxu0 }
0x2b6a   : > { %v5427_v5 = vpop.f32.mrb[59].mxu0  ;;  %v3009_v6 = vsel %vm2686_vm12, %v3008_v0, -inf }
0x2b6b   : > { %3010 = vmax.xlane.f32.xlu0 %v3009_v6 }
0x2b81   : > { %3022 = vrot.lane.b32.xlu0 %v6495_v44, %s5831_s20 }
0x2b85   : > { %3118 = vrot.lane.b32.xlu0 %v6483_v36, %s5837_s6 }
0x2b89   : > { %2511 = vrot.lane.b32.xlu0 %v2505_v32, %s5834_s24 }
0x2b8d   : > { %2517 = vrot.lane.b32.xlu0 %v2515_v8, %s5834_s24 }
0x2bf8   : > { %v3011_v9 = vpop.xlane.xlu0 %3010 }
0x2bf9   : > { %v3012_v10 = vsub.f32 %v3008_v0, %v3011_v9 }
0x2bfb   : > { %v3013_v11 = vmul.f32 1.442695, %v3012_v10 }
0x2bfc   : > { %v3023_v12 = vpop.permute.xlu0 %3022 }
0x2bfd   : > { %5776 = vpow2.f32 %v3013_v11  ;;  %v3028_v13 = vsel %vm526_vm6, %v3023_v12, 0 }
0x2bfe   : > { %5429 = vmatpush3.bf16.msra.mxu1 %v3028_v13 }
0x2bff   : > { %5440 = vmatprep.subr.bf16.mxu1 %v6558_v34 }
0x2c00   : > { %v6605_v25 = vpop.permute.xlu0 %3118 }
0x2c04   : > { %v2512_v54 = vpop.permute.xlu0 %2511 }
0x2c05   : > { %v2514_v57 = vadd.f32 %v2512_v54, %v6403_v47 }
0x2c07   : > { %v5777_v14 = vpop.eup %5776 }
0x2c08   : > { %v3015_v41 = vsel %vm2686_vm12, %v5777_v14, 0.0  ;;  %v2518_v55 = vpop.permute.xlu0 %2517 }
0x2c09   : > { %3016 = vadd.xlane.f32.xlu1 %v3015_v41  ;;  %v2520_v58 = vadd.f32 %v2518_v55, %v2514_v57 }
0x2c1a   : > { %3120 = vrot.lane.b32.xlu1 %v6495_v44, %s5837_s6 }
0x2c96   : > { %v3017_v15 = vpop.xlane.xlu1 %3016 }
0x2c97   : > { %5778 = vrcp.f32 %v3017_v15 }
0x2c9a   : > { %v3121_v48 = vpop.permute.xlu1 %3120 }
0x2c9b   : > { %v3126_v24 = vsel %vm2638_vm11, %v3121_v48, 0 }
0x2ca1   : > { %v5779_v16 = vpop.eup %5778 }
0x2ca2   : > { %v3019_v19 = vmul.f32 %v5779_v16, %v5777_v14 }
0x2ca4   : > { %v3020_v20 = vadd.f32 %v3019_v19, %v2814_v17  ;;  %v3021_v23 = vpack.c.bf16 %v3019_v19, %v3019_v19 }
0x2ca6   : > { %5431 = vmatmul.mubr.msk.bf16.vlgmr.msra.gmra.mrb[92].mxu1 %vm2703_vm13, %v3021_v23 }
0x2ca7   : > { %5441 = vmatpush3.bf16.xpose.msra.mxu1 %v3126_v24  ;;  %5442 = vmatprep.mubr.msk.bf16.mxu1 %vm5827_vm2, %v6558_v34 }
0x2ca8   : > { %5452 = vmatprep.subr.bf16.mxu1 %v6558_v34 }
0x2cae   : > { %5443 = vmatmul.mubr.msk.bf16.vlgmr.msra.gmra.mrb[96].mxu1 %vm2638_vm11, %v6605_v25 }
0x2caf   : > { %5454 = vmatprep.mubr.msk.bf16.mxu1 %vm5827_vm2, %v6558_v34 }
0x2d79   : > { %v3064_v27 = vpop.f32.mrb[92].mxu1 }
0x2d7a   : > { %v3070_v28 = vpack.c.bf16 %v3064_v27, %v3064_v27  ;;  %v5432_v29 = vpop.f32.mrb[93].mxu1 }
0x2d7b   : > { %v3067_v61 = vpop.f32.mrb[94].mxu1 }
0x2d7c   : > { %v5433_v37 = vpop.f32.mrb[95].mxu1  ;;  %5437 = vmatmul.mubr.msk.bf16.vlgmr.msra.gmra.mrb[60].mxu0 %vm2638_vm11, %v3070_v28 }
0x2d7d   : > { %5448 = vmatprep.mubr.msk.bf16.mxu0 %vm5827_vm2, %v6558_v34 }
0x2d81   : > { %v3162_v38 = vpop.f32.mrb[96].mxu1 }
0x2d82   : > { %v3168_v39 = vmul.f32 0.35355338, %v3162_v38  ;;  %v5444_v40 = vpop.f32.mrb[97].mxu1 }
0x2d83   : > { %v3165_v42 = vpop.f32.mrb[98].mxu1 }
0x2d84   : > { %v5445_v43 = vpop.f32.mrb[99].mxu1  ;;  %v3169_v3 = vsel %vm2686_vm12, %v3168_v39, -inf }
0x2d85   : > { %3170 = vmax.xlane.f32.xlu1 %v3169_v3 }
0x2d96   : > { %3182 = vrot.lane.b32.xlu1 %v6495_v44, %s5838_s10  ;;  %v3280_v44 = vpack.c.bf16 %v2520_v58, %v2520_v58 }
0x2e12   : > { %v3171_v1 = vpop.xlane.xlu1 %3170 }
0x2e13   : > { %v3172_v45 = vsub.f32 %v3168_v39, %v3171_v1 }
0x2e15   : > { %v3173_v46 = vmul.f32 1.442695, %v3172_v45 }
0x2e16   : > { %v3183_v49 = vpop.permute.xlu1 %3182 }
0x2e17   : > { %5780 = vpow2.f32 %v3173_v46  ;;  %v3188_v51 = vsel %vm526_vm6, %v3183_v49, 0 }
0x2e18   : > { %5447 = vmatpush3.bf16.msra.mxu0 %v3188_v51 }
0x2e19   : > { %5458 = vmatprep.subr.bf16.mxu0 %v6558_v34 }
0x2e21   : > { %v5781_v31 = vpop.eup %5780 }
0x2e22   : > { %v3175_v53 = vsel %vm2686_vm12, %v5781_v31, 0.0 }
0x2e23   : > { %3176 = vadd.xlane.f32.xlu0 %v3175_v53 }
0x2e39   : > { %3282 = vrot.lane.b32.xlu0 %v3280_v44, %s5829_s19 }
0x2e4f   : > { %v3111_v59 = vpop.f32.mrb[60].mxu0 }
0x2e50   : > { %v3117_v63 = vadd.f32 %v3111_v59, %v6577_v56  ;;  %v5438_v0 = vpop.f32.mrb[61].mxu0 }
0x2e51   : > { %v3114_v2 = vpop.f32.mrb[62].mxu0 }
0x2e52   : > { %v5439_v4 = vpop.f32.mrb[63].mxu0 }
0x2eb0   : > { %v3177_v5 = vpop.xlane.xlu0 %3176 }
0x2eb1   : > { %5782 = vrcp.f32 %v3177_v5 }
0x2eb4   : > { %v3283_v47 = vpop.permute.xlu0 %3282 }
0x2ebb   : > { %v5783_v6 = vpop.eup %5782 }
0x2ebc   : > { %v3179_v7 = vmul.f32 %v5783_v6, %v5781_v31 }
0x2ebe   : > { %v3180_v32 = vadd.f32 %v3179_v7, %v3020_v20  ;;  %v3181_v8 = vpack.c.bf16 %v3179_v7, %v3179_v7 }
0x2ec0   : > { %v3279_v9 = vmul.f32 0.25, %v3180_v32  ;;  %5449 = vmatmul.mubr.msk.bf16.vlgmr.msra.gmra.mrb[64].mxu0 %vm2703_vm13, %v3181_v8 }
0x2ec1   : > { %5459 = vmatpush3.bf16.msra.mxu0 %v6472_v30  ;;  %5462 = vmatprep.mubr.msk.bf16.mxu0 %vm5827_vm2, %v6558_v34  ;;  %v1671_v30 = vld [vmem:[%s6912_s1 + $0x22c] sm:$0xf] }
0x2ec2   : > { %4717 = vst.msk [vmem:[%s5886_s27 + $0x1] sm:$0x1] %vm2686_vm12, %v3279_v9  ;;  %5460 = vmatprep.subr.bf16.mxu0 %v6558_v34  ;;  %v6647_v56 = vsel %vm2868_vm14, %v1671_v30, 0 }
0x2ec3   : > { %5453 = vmatpush3.bf16.msra.mxu1 %v6647_v56 }
0x2ec4   : > { %5466 = vmatprep.subr.bf16.mxu1 %v6558_v34 }
0x2ec5   : > { %5461 = vmatpush3.bf16.msra.mxu0 %v6479_v35 }
0x2ec6   : > { %5472 = vmatprep.subr.bf16.mxu0 %v6558_v34 }
0x2ec8   : > { %5463 = vmatmul.mubr.msk.bf16.vlgmr.msra.gmra.mrb[68].mxu0 %vm406_vm3, %v3283_v47 }
0x2ec9   : > { %5474 = vmatprep.mubr.msk.bf16.mxu0 %vm5827_vm2, %v6558_v34 }
0x2f93   : > { %v3224_v35 = vpop.f32.mrb[64].mxu0 }
0x2f94   : > { %v3230_v10 = vpack.c.bf16 %v3224_v35, %v3224_v35  ;;  %v5450_v11 = vpop.f32.mrb[65].mxu0 }
0x2f95   : > { %v3227_v12 = vpop.f32.mrb[66].mxu0 }
0x2f96   : > { %v5451_v13 = vpop.f32.mrb[67].mxu0  ;;  %5455 = vmatmul.mubr.msk.bf16.vlgmr.msra.gmra.mrb[100].mxu1 %vm2638_vm11, %v3230_v10 }
0x2f97   : > { %5468 = vmatprep.mubr.msk.bf16.mxu1 %vm5827_vm2, %v6558_v34 }
0x2f9b   : > { %v3321_v14 = vpop.f32.mrb[68].mxu0 }
0x2f9c   : > { %v6654_v41 = vpack.c.bf16 %v3321_v14, %v3321_v14  ;;  %v5464_v15 = vpop.f32.mrb[69].mxu0 }
0x2f9d   : > { %v3324_v16 = vpop.f32.mrb[70].mxu0 }
0x2f9e   : > { %3436 = vrot.lane.b32.xlu1 %v6654_v41, %s5835_s25  ;;  %v5465_v17 = vpop.f32.mrb[71].mxu0  ;;  %v3329_v19 = vsel %vm2638_vm11, %v6654_v41, 0 }
0x2f9f   : > { %5467 = vmatpush3.bf16.xpose.msra.mxu1 %v3329_v19 }
0x2fa0   : > { %5478 = vmatprep.subr.bf16.mxu1 %v6558_v34 }
0x2fa6   : > { %5469 = vmatmul.mubr.msk.bf16.vlgmr.msra.gmra.mrb[104].mxu1 %vm2638_vm11, %v6483_v36 }
0x2fa7   : > { %5480 = vmatprep.mubr.msk.bf16.mxu1 %vm5827_vm2, %v6558_v34 }
0x3010   : > { %v3437_v48 = vpop.permute.xlu1 %3436 }
0x3011   : > { %v3439_v20 = vsel %vm2638_vm11, %v3437_v48, 0 }
0x3012   : > { %5479 = vmatpush3.bf16.xpose.msra.mxu1 %v3439_v20 }
0x3013   : > { %5490 = vmatprep.subr.bf16.mxu1 %v6558_v34 }
0x3019   : > { %5481 = vmatmul.mubr.msk.bf16.vlgmr.msra.gmra.mrb[108].mxu1 %vm2638_vm11, %v6508_v52 }
0x301a   : > { %5491 = vmatpush3.bf16.msra.mxu1 %v6539_v18  ;;  %5492 = vmatprep.mubr.msk.bf16.mxu1 %vm5827_vm2, %v6558_v34 }
0x301b   : > { %5502 = vmatprep.subr.bf16.mxu1 %v6558_v34 }
0x3069   : > { %v3271_v36 = vpop.f32.mrb[100].mxu1 }
0x306a   : > { %v6673_v23 = vadd.f32 %v3271_v36, %v3117_v63  ;;  %v5456_v24 = vpop.f32.mrb[101].mxu1 }
0x306b   : > { %v3274_v22 = vpop.f32.mrb[102].mxu1 }
0x306c   : > { %v5457_v27 = vpop.f32.mrb[103].mxu1 }
0x3079   : > { %v3365_v28 = vpop.f32.mrb[104].mxu1 }
0x307a   : > { %v3371_v29 = vmul.f32 0.35355338, %v3365_v28  ;;  %v5470_v61 = vpop.f32.mrb[105].mxu1 }
0x307b   : > { %v3368_v37 = vpop.f32.mrb[106].mxu1 }
0x307c   : > { %v5471_v38 = vpop.f32.mrb[107].mxu1  ;;  %v3373_v52 = vsel %vm3372_vm15, %v3371_v29, -inf }
0x307d   : > { %3374 = vmax.xlane.f32.xlu1 %v3373_v52 }
0x30ec   : > { %v3475_v18 = vpop.f32.mrb[108].mxu1 }
0x30ed   : > { %v3481_v39 = vmul.f32 0.35355338, %v3475_v18  ;;  %v5482_v40 = vpop.f32.mrb[109].mxu1 }
0x30ee   : > { %v3478_v42 = vpop.f32.mrb[110].mxu1 }
0x30ef   : > { %v5483_v43 = vpop.f32.mrb[111].mxu1  ;;  %v3482_v3 = vsel %vm3372_vm15, %v3481_v39, -inf }
0x30f0   : > { %3483 = vmax.xlane.f32.xlu0 %v3482_v3 }
0x310a   : > { %v3375_v1 = vpop.xlane.xlu1 %3374 }
0x310b   : > { %v3376_v45 = vsub.f32 %v3371_v29, %v3375_v1 }
0x310d   : > { %v3377_v46 = vmul.f32 1.442695, %v3376_v45 }
0x310f   : > { %5784 = vpow2.f32 %v3377_v46 }
0x3119   : > { %v5785_v49 = vpop.eup %5784 }
0x311a   : > { %v3379_v51 = vsel %vm3372_vm15, %v5785_v49, 0.0 }
0x311b   : > { %3380 = vadd.xlane.f32.xlu1 %v3379_v51 }
0x312c   : > { %3387 = vrot.lane.b32.xlu1 %v6654_v41, %s5829_s19 }
0x3130   : > { %3630 = vrot.lane.b32.xlu1 %v6654_v41, %s5832_s21 }
0x317d   : > { %v3484_v31 = vpop.xlane.xlu0 %3483 }
0x317e   : > { %v3485_v53 = vsub.f32 %v3481_v39, %v3484_v31 }
0x3180   : > { %v3486_v54 = vmul.f32 1.442695, %v3485_v53 }
0x3182   : > { %5786 = vpow2.f32 %v3486_v54 }
0x318c   : > { %v5787_v55 = vpop.eup %5786 }
0x318d   : > { %v3488_v57 = vsel %vm3372_vm15, %v5787_v55, 0.0 }
0x318e   : > { %3489 = vadd.xlane.f32.xlu0 %v3488_v57 }
0x31a4   : > { %3495 = vrot.lane.b32.xlu0 %v6654_v41, %s5836_s26 }
0x31a8   : > { %v3381_v58 = vpop.xlane.xlu1 %3380 }
0x31a9   : > { %5788 = vrcp.f32 %v3381_v58 }
0x31ac   : > { %v3388_v44 = vpop.permute.xlu1 %3387 }
0x31ad   : > { %v3393_v59 = vand.u32 %v3388_v44, %v5976_v62 }
0x31af   : > { %5473 = vmatpush3.bf16.msra.mxu0 %v3393_v59 }
0x31b0   : > { %5484 = vmatprep.subr.bf16.mxu0 %v6558_v34  ;;  %v3631_v11 = vpop.permute.xlu1 %3630 }
0x31b1   : > { %v3633_v15 = vsel %vm2638_vm11, %v3631_v11, 0 }
0x31b3   : > { %v5789_v63 = vpop.eup %5788 }
0x31b4   : > { %v6687_v0 = vmul.f32 %v5789_v63, %v5785_v49 }
0x31b6   : > { %v3385_v2 = vpack.c.bf16 %v6687_v0, %v6687_v0 }
0x31b8   : > { %5475 = vmatmul.mubr.msk.bf16.vlgmr.msra.gmra.mrb[72].mxu0 %vm521_vm8, %v3385_v2 }
0x31b9   : > { %5486 = vmatprep.mubr.msk.bf16.mxu0 %vm5827_vm2, %v6558_v34 }
0x321b   : > { %v3490_v4 = vpop.xlane.xlu0 %3489 }
0x321c   : > { %5790 = vrcp.f32 %v3490_v4 }
0x321f   : > { %v3496_v5 = vpop.permute.xlu0 %3495 }
0x3220   : > { %v3501_v6 = vand.u32 %v3496_v5, %v5976_v62 }
0x3222   : > { %5485 = vmatpush3.bf16.msra.mxu0 %v3501_v6 }
0x3223   : > { %5496 = vmatprep.subr.bf16.mxu0 %v6558_v34 }
0x3226   : > { %v5791_v7 = vpop.eup %5790 }
0x3227   : > { %v3492_v32 = vmul.f32 %v5791_v7, %v5787_v55 }
0x3229   : > { %v3494_v8 = vpack.c.bf16 %v3492_v32, %v3492_v32  ;;  %v3493_v46 = vadd.f32 %v3492_v32, %v6687_v0 }
0x322b   : > { %5487 = vmatmul.mubr.msk.bf16.vlgmr.msra.gmra.mrb[76].mxu0 %vm521_vm8, %v3494_v8 }
0x322c   : > { %5497 = vmatpush3.bf16.msra.mxu0 %v6553_v33  ;;  %5498 = vmatprep.mubr.msk.bf16.mxu0 %vm5827_vm2, %v6558_v34 }
0x322d   : > { %5508 = vmatprep.subr.bf16.mxu0 %v6558_v34 }
0x328b   : > { %v3429_v9 = vpop.f32.mrb[72].mxu0 }
0x328c   : > { %v3435_v47 = vpack.c.bf16 %v3429_v9, %v3429_v9  ;;  %v5476_v30 = vpop.f32.mrb[73].mxu0 }
0x328d   : > { %v3432_v35 = vpop.f32.mrb[74].mxu0 }
0x328e   : > { %v5477_v10 = vpop.f32.mrb[75].mxu0  ;;  %5499 = vmatmul.mubr.msk.bf16.vlgmr.msra.gmra.mrb[80].mxu0 %vm2638_vm11, %v3435_v47 }
0x328f   : > { %5510 = vmatprep.mubr.msk.bf16.mxu0 %vm5827_vm2, %v6558_v34 }
0x32fe   : > { %v3537_v12 = vpop.f32.mrb[76].mxu0 }
0x32ff   : > { %v3543_v13 = vpack.c.bf16 %v3537_v12, %v3537_v12  ;;  %v5488_v14 = vpop.f32.mrb[77].mxu0 }
0x3300   : > { %v3540_v33 = vpop.f32.mrb[78].mxu0 }
0x3301   : > { %v5489_v16 = vpop.f32.mrb[79].mxu0  ;;  %5493 = vmatmul.mubr.msk.bf16.vlgmr.msra.gmra.mrb[112].mxu1 %vm2638_vm11, %v3543_v13 }
0x3302   : > { %5503 = vmatpush3.bf16.xpose.msra.mxu1 %v3633_v15  ;;  %5504 = vmatprep.mubr.msk.bf16.mxu1 %vm5827_vm2, %v6558_v34  ;;  %v3939_v15 = vshll.u32 %v6450_v21, 16 }
0x3303   : > { %5514 = vmatprep.subr.bf16.mxu1 %v6558_v34 }
0x3309   : > { %5505 = vmatmul.mubr.msk.bf16.vlgmr.msra.gmra.mrb[116].mxu1 %vm2638_vm11, %v6571_v50 }
0x330a   : > { %5515 = vmatpush3.bf16.msra.mxu1 %v6615_v26  ;;  %5516 = vmatprep.mubr.msk.bf16.mxu1 %vm5827_vm2, %v6558_v34 }
0x330b   : > { %5526 = vmatprep.subr.bf16.mxu1 %v6558_v34 }
0x3361   : > { %v3624_v17 = vpop.f32.mrb[80].mxu0 }
0x3362   : > { %v5500_v19 = vpop.f32.mrb[81].mxu0 }
0x3363   : > { %v3627_v48 = vpop.f32.mrb[82].mxu0 }
0x3364   : > { %v5501_v20 = vpop.f32.mrb[83].mxu0  ;;  %v3941_v48 = vrot.slane %v3939_v15, 1 }
0x3365   : > { %v3937_v20 = vshrl.u32 %v6450_v21, 16  ;;  %v5719_v21 = vld [vmem:[%s6912_s1 + $0x248] sm:$0xff]  }
0x33d4   : > { %v3581_v36 = vpop.f32.mrb[112].mxu1 }
0x33d5   : > { %v6715_v24 = vadd.f32 %v3624_v17, %v3581_v36  ;;  %v5494_v22 = vpop.f32.mrb[113].mxu1  ;;  %v3942_v36 = vor.u32 %v3941_v48, %v3937_v20 }
0x33d6   : > { %v3584_v27 = vpop.f32.mrb[114].mxu1  ;;  %v5718_v22 = vld [vmem:[%s6912_s1 + $0x240] sm:$0xff]  }
0x33d7   : > { %v5495_v28 = vpop.f32.mrb[115].mxu1 }
0x33dc   : > { %v3669_v29 = vpop.f32.mrb[116].mxu1 }
0x33dd   : > { %v3675_v61 = vmul.f32 0.35355338, %v3669_v29  ;;  %v5506_v50 = vpop.f32.mrb[117].mxu1 }
0x33de   : > { %v3672_v37 = vpop.f32.mrb[118].mxu1  ;;  %v3936_v50 = vld [vmem:[%s6913_s2 + $0x158] sm:$0x7f] }
0x33df   : > { %v5507_v26 = vpop.f32.mrb[119].mxu1  ;;  %v3676_v38 = vsel %vm3372_vm15, %v3675_v61, -inf  ;;  %v3998_v37 = vpack.c.bf16 %v3936_v50, %v3936_v50 }
0x33e0   : > { %3677 = vmax.xlane.f32.xlu1 %v3676_v38 }
0x33f1   : > { %3782 = vrot.lane.b32.xlu1 %v6654_v41, %s5837_s6 }
0x346d   : > { %v3678_v52 = vpop.xlane.xlu1 %3677 }
0x346e   : > { %v3679_v18 = vsub.f32 %v3675_v61, %v3678_v52 }
0x3470   : > { %v3680_v39 = vmul.f32 1.442695, %v3679_v18 }
0x3471   : > { %v3783_v51 = vpop.permute.xlu1 %3782 }
0x3472   : > { %5792 = vpow2.f32 %v3680_v39  ;;  %v3785_v54 = vsel %vm2638_vm11, %v3783_v51, 0  ;;  %v1672_v39 = vld [vmem:[%s6913_s2 + $0x148] sm:$0x1] }
0x347c   : > { %v5793_v40 = vpop.eup %5792 }
0x347d   : > { %v3682_v42 = vsel %vm3372_vm15, %v5793_v40, 0.0 }
0x347e   : > { %3683 = vadd.xlane.f32.xlu0 %v3682_v42 }
0x3494   : > { %3689 = vrot.lane.b32.xlu0 %v6654_v41, %s5831_s20 }
0x350b   : > { %v3684_v43 = vpop.xlane.xlu0 %3683 }
0x350c   : > { %5794 = vrcp.f32 %v3684_v43 }
0x350f   : > { %v3690_v3 = vpop.permute.xlu0 %3689 }
0x3510   : > { %v3695_v1 = vand.u32 %v3690_v3, %v5976_v62 }
0x3512   : > { %5509 = vmatpush3.bf16.msra.mxu0 %v3695_v1  ;;  %v3278_v1 = vadd.f32 %v6673_v23, %v1672_v39 }
0x3513   : > { %5520 = vmatprep.subr.bf16.mxu0 %v6558_v34 }
0x3516   : > { %v5795_v45 = vpop.eup %5794 }
0x3517   : > { %v3686_v49 = vmul.f32 %v5795_v45, %v5793_v40 }
0x3519   : > { %v3687_v31 = vadd.f32 %v3686_v49, %v3493_v46  ;;  %v3688_v53 = vpack.c.bf16 %v3686_v49, %v3686_v49 }
0x351b   : > { %5511 = vmatmul.mubr.msk.bf16.vlgmr.msra.gmra.mrb[84].mxu0 %vm521_vm8, %v3688_v53 }
0x351c   : > { %5521 = vmatpush3.bf16.xpose.msra.mxu0 %v3785_v54  ;;  %5522 = vmatprep.mubr.msk.bf16.mxu0 %vm5827_vm2, %v6558_v34 }
0x351d   : > { %5532 = vmatprep.subr.bf16.mxu0 %v6558_v34 }
0x3523   : > { %5523 = vmatmul.mubr.msk.bf16.vlgmr.msra.gmra.mrb[88].mxu0 %vm2638_vm11, %v6605_v25 }
0x3524   : > { %5533 = vmatpush3.bf16.msra.mxu0 %v6647_v56  ;;  %5534 = vmatprep.mubr.msk.bf16.mxu0 %vm5827_vm2, %v6558_v34 }
0x3525   : > { %5546 = vmatprep.subr.bf16.mxu0 %v6558_v34 }
0x35ee   : > { %v3731_v55 = vpop.f32.mrb[84].mxu0 }
0x35ef   : > { %v3737_v57 = vpack.c.bf16 %v3731_v55, %v3731_v55  ;;  %v5512_v58 = vpop.f32.mrb[85].mxu0 }
0x35f0   : > { %v3734_v44 = vpop.f32.mrb[86].mxu0 }
0x35f1   : > { %v5513_v59 = vpop.f32.mrb[87].mxu0  ;;  %5517 = vmatmul.mubr.msk.bf16.vlgmr.msra.gmra.mrb[120].mxu1 %vm2638_vm11, %v3737_v57 }
0x35f2   : > { %5528 = vmatprep.mubr.msk.bf16.mxu1 %vm5827_vm2, %v6558_v34 }
0x35f6   : > { %v3821_v63 = vpop.f32.mrb[88].mxu0 }
0x35f7   : > { %v3827_v0 = vmul.f32 0.35355338, %v3821_v63  ;;  %v5524_v25 = vpop.f32.mrb[89].mxu0 }
0x35f8   : > { %v3824_v2 = vpop.f32.mrb[90].mxu0 }
0x35f9   : > { %v5525_v56 = vpop.f32.mrb[91].mxu0  ;;  %v3828_v4 = vsel %vm3372_vm15, %v3827_v0, -inf }
0x35fa   : > { %3829 = vmax.xlane.f32.xlu1 %v3828_v4 }
0x3687   : > { %v3830_v5 = vpop.xlane.xlu1 %3829 }
0x3688   : > { %v3831_v6 = vsub.f32 %v3827_v0, %v3830_v5 }
0x368a   : > { %v3832_v7 = vmul.f32 1.442695, %v3831_v6 }
0x368c   : > { %5796 = vpow2.f32 %v3832_v7 }
0x3696   : > { %v5797_v32 = vpop.eup %5796 }
0x3697   : > { %v3834_v8 = vsel %vm3372_vm15, %v5797_v32, 0.0 }
0x3698   : > { %3835 = vadd.xlane.f32.xlu0 %v3834_v8 }
0x36ae   : > { %3841 = vrot.lane.b32.xlu0 %v6654_v41, %s5838_s10  ;;  %v5716_v41 = vld [vmem:[%s6912_s1 + $0x230] sm:$0xff]  }
0x36c4   : > { %v3775_v9 = vpop.f32.mrb[120].mxu1 }
0x36c5   : > { %v3781_v47 = vadd.f32 %v3775_v9, %v6715_v24  ;;  %v5518_v30 = vpop.f32.mrb[121].mxu1 }
0x36c6   : > { %v3778_v35 = vpop.f32.mrb[122].mxu1 }
0x36c7   : > { %v5519_v10 = vpop.f32.mrb[123].mxu1 }
0x3725   : > { %v3836_v11 = vpop.xlane.xlu0 %3835 }
0x3726   : > { %5798 = vrcp.f32 %v3836_v11 }
0x3729   : > { %v3842_v12 = vpop.permute.xlu0 %3841 }
0x372a   : > { %v3847_v13 = vand.u32 %v3842_v12, %v5976_v62  ;;  %v5717_v62 = vld [vmem:[%s6912_s1 + $0x238] sm:$0xff]   ;;  %v4124_v12 = vsel %vm526_vm6, 4294967295, %v5830_v60 }
0x372c   : > { %5527 = vmatpush3.bf16.msra.mxu1 %v3847_v13 }
0x372d   : > { %5538 = vmatprep.subr.bf16.mxu1 %v6558_v34 }
0x3730   : > { %v5799_v14 = vpop.eup %5798 }
0x3731   : > { %v3838_v33 = vmul.f32 %v5799_v14, %v5797_v32 }
0x3733   : > { %v3839_v16 = vadd.f32 %v3838_v33, %v3687_v31  ;;  %v3840_v17 = vpack.c.bf16 %v3838_v33, %v3838_v33  ;;  %v6820_v33 = vsel %vm2868_vm14, %v4124_v12, 0 }
0x3735   : > { %v3935_v19 = vmul.f32 0.25, %v3839_v16  ;;  %5529 = vmatmul.mubr.msk.bf16.vlgmr.msra.gmra.mrb[124].mxu1 %vm521_vm8, %v3840_v17 }
0x3736   : > { %5539 = vmatpush3.bf16.msra.mxu1 %v5716_v41  ;;  %5542 = vmatprep.mubr.msk.bf16.mxu1 %vm5827_vm2, %v6558_v34 }
0x3737   : > { %4718 = vst.msk [vmem:[%s5886_s27 + $0x2] sm:$0x1] %vm3372_vm15, %v3935_v19  ;;  %5540 = vmatprep.subr.bf16.mxu1 %v6558_v34 }
0x373a   : > { %5541 = vmatpush3.bf16.msra.mxu1 %v5717_v62 }
0x373b   : > { %5554 = vmatprep.subr.bf16.mxu1 %v6558_v34 }
0x373d   : > { %5543 = vmatmul.mubr.msk.bf16.vlgmr.msra.gmra.mrb[128].mxu1 %vm406_vm3, %v3942_v36  ;;  %v1682_v36 = vld [vmem:[%s6912_s1 + $0x254] sm:$0xf] }
0x373e   : > { %5556 = vmatprep.mubr.msk.bf16.mxu1 %vm5827_vm2, %v6558_v34 }
0x3808   : > { %v3883_v24 = vpop.f32.mrb[124].mxu1 }
0x3809   : > { %v3889_v27 = vpack.c.bf16 %v3883_v24, %v3883_v24  ;;  %v5530_v28 = vpop.f32.mrb[125].mxu1  ;;  %v4288_v24 = vsel %vm2868_vm14, %v1682_v36, 0 }
0x380a   : > { %v3886_v29 = vpop.f32.mrb[126].mxu1 }
0x380b   : > { %v5531_v61 = vpop.f32.mrb[127].mxu1  ;;  %5535 = vmatmul.mubr.msk.bf16.vlgmr.msra.gmra.mrb[92].mxu0 %vm2638_vm11, %v3889_v27 }
0x380c   : > { %5547 = vmatpush3.bf16.msra.mxu0 %v5718_v22  ;;  %5550 = vmatprep.mubr.msk.bf16.mxu0 %vm5827_vm2, %v6558_v34  ;;  %v1681_v61 = vld [vmem:[%s6912_s1 + $0x250] sm:$0xf] }
0x380d   : > { %5548 = vmatprep.subr.bf16.mxu0 %v6558_v34 }
0x3810   : > { %v3992_v26 = vpop.f32.mrb[128].mxu1  ;;  %5549 = vmatpush3.bf16.msra.mxu0 %v5719_v21 }
0x3811   : > { %v5544_v38 = vpop.f32.mrb[129].mxu1  ;;  %5560 = vmatprep.subr.bf16.mxu0 %v6558_v34  ;;  %v6794_v58 = vpack.c.bf16 %v3992_v26, %v3992_v26 }
0x3812   : > { %v3995_v52 = vpop.f32.mrb[130].mxu1 }
0x3813   : > { %v5545_v18 = vpop.f32.mrb[131].mxu1  ;;  %5551 = vmatmul.mubr.msk.bf16.vlgmr.msra.gmra.mrb[96].mxu0 %vm406_vm3, %v3998_v37  ;;  %v4334_v37 = vsel %vm2868_vm14, %v1681_v61, 0  ;;  %vm4715_vm3 = vcmask 73728  }
0x3814   : > { %5562 = vmatprep.mubr.msk.bf16.mxu0 %vm5827_vm2, %v6558_v34 }
0x38de   : > { %v3927_v40 = vpop.f32.mrb[92].mxu0 }
0x38df   : > { %v3933_v42 = vadd.f32 %v3927_v40, %v3781_v47  ;;  %v5536_v43 = vpop.f32.mrb[93].mxu0 }
0x38e0   : > { %v3930_v3 = vpop.f32.mrb[94].mxu0 }
0x38e1   : > { %v3934_v45 = vadd.f32 %v3933_v42, %v1672_v39  ;;  %v5537_v46 = vpop.f32.mrb[95].mxu0 }
0x38e3   : > { %v6786_v49 = vadd.f32 %v3934_v45, %v3278_v1 }
0x38e6   : > { %v4048_v51 = vpop.f32.mrb[96].mxu0 }
0x38e7   : > { %v6788_v31 = vpack.c.bf16 %v4048_v51, %v4048_v51  ;;  %v5552_v53 = vpop.f32.mrb[97].mxu0 }
0x38e8   : > { %v4051_v54 = vpop.f32.mrb[98].mxu0 }
0x38e9   : > { %4173 = vrot.lane.b32.xlu1 %v6788_v31, %s5835_s25  ;;  %v5553_v55 = vpop.f32.mrb[99].mxu0  ;;  %v4060_v57 = vsel %vm2638_vm11, %v6788_v31, 0 }
0x38ea   : > { %5555 = vmatpush3.bf16.xpose.msra.mxu1 %v4060_v57 }
0x38eb   : > { %5566 = vmatprep.subr.bf16.mxu1 %v6558_v34 }
0x38ed   : > { %4171 = vrot.lane.b32.xlu1 %v6794_v58, %s5835_s25 }
0x38f1   : > { %5557 = vmatmul.mubr.msk.bf16.vlgmr.msra.gmra.mrb[132].mxu1 %vm2638_vm11, %v6794_v58 }
0x38f2   : > { %5568 = vmatprep.mubr.msk.bf16.mxu1 %vm5827_vm2, %v6558_v34 }
0x395b   : > { %v4174_v23 = vpop.permute.xlu1 %4173 }
0x395c   : > { %v4179_v44 = vsel %vm2638_vm11, %v4174_v23, 0 }
0x395d   : > { %5567 = vmatpush3.bf16.xpose.msra.mxu1 %v4179_v44 }
0x395e   : > { %5578 = vmatprep.subr.bf16.mxu1 %v6558_v34 }
0x395f   : > { %v4172_v59 = vpop.permute.xlu1 %4171 }
0x3964   : > { %5569 = vmatmul.mubr.msk.bf16.vlgmr.msra.gmra.mrb[136].mxu1 %vm2638_vm11, %v4172_v59 }
0x3965   : > { %5580 = vmatprep.mubr.msk.bf16.mxu1 %vm5827_vm2, %v6558_v34  ;;  %5579 = vmatpush3.bf16.msra.mxu1 %v4288_v24 }
0x3966   : > { %5590 = vmatprep.subr.bf16.mxu1 %v6558_v34 }
0x39c4   : > { %v4096_v63 = vpop.f32.mrb[132].mxu1 }
0x39c5   : > { %v4102_v0 = vmul.f32 0.35355338, %v4096_v63  ;;  %v5558_v25 = vpop.f32.mrb[133].mxu1 }
0x39c6   : > { %v4099_v2 = vpop.f32.mrb[134].mxu1 }
0x39c7   : > { %v5559_v56 = vpop.f32.mrb[135].mxu1  ;;  %v4104_v4 = vsel %vm4103_vm0, %v4102_v0, -inf }
0x39c8   : > { %4105 = vmax.xlane.f32.xlu0 %v4104_v4 }
0x3a37   : > { %v4215_v5 = vpop.f32.mrb[136].mxu1 }
0x3a38   : > { %v4221_v6 = vmul.f32 0.35355338, %v4215_v5  ;;  %v5570_v7 = vpop.f32.mrb[137].mxu1 }
0x3a39   : > { %v4218_v32 = vpop.f32.mrb[138].mxu1 }
0x3a3a   : > { %v5571_v8 = vpop.f32.mrb[139].mxu1  ;;  %v4222_v9 = vsel %vm4103_vm0, %v4221_v6, -inf }
0x3a3b   : > { %4223 = vmax.xlane.f32.xlu1 %v4222_v9 }
0x3a4c   : > { %4118 = vrot.lane.b32.xlu1 %v6788_v31, %s5829_s19 }
0x3a50   : > { %4378 = vrot.lane.b32.xlu1 %v6788_v31, %s5832_s21 }
0x3a54   : > { %4376 = vrot.lane.b32.xlu1 %v6794_v58, %s5832_s21 }
0x3a55   : > { %v4106_v47 = vpop.xlane.xlu0 %4105 }
0x3a56   : > { %v4107_v30 = vsub.f32 %v4102_v0, %v4106_v47 }
0x3a58   : > { %v4108_v35 = vmul.f32 1.442695, %v4107_v30 }
0x3a5a   : > { %5800 = vpow2.f32 %v4108_v35 }
0x3a64   : > { %v5801_v10 = vpop.eup %5800 }
0x3a65   : > { %v4110_v11 = vsel %vm4103_vm0, %v5801_v10, 0.0 }
0x3a66   : > { %4111 = vadd.xlane.f32.xlu0 %v4110_v11 }
0x3ac8   : > { %v4224_v13 = vpop.xlane.xlu1 %4223 }
0x3ac9   : > { %v4225_v14 = vsub.f32 %v4221_v6, %v4224_v13 }
0x3acb   : > { %v4226_v41 = vmul.f32 1.442695, %v4225_v14 }
0x3acc   : > { %v4119_v15 = vpop.permute.xlu1 %4118 }
0x3acd   : > { %5802 = vpow2.f32 %v4226_v41  ;;  %v4127_v16 = vand.u32 %v6820_v33, %v4119_v15 }
0x3acf   : > { %5561 = vmatpush3.bf16.msra.mxu0 %v4127_v16 }
0x3ad0   : > { %5572 = vmatprep.subr.bf16.mxu0 %v6558_v34  ;;  %v4379_v40 = vpop.permute.xlu1 %4378 }
0x3ad1   : > { %v4384_v45 = vsel %vm2638_vm11, %v4379_v40, 0 }
0x3ad4   : > { %v4377_v51 = vpop.permute.xlu1 %4376 }
0x3ad7   : > { %v5803_v17 = vpop.eup %5802 }
0x3ad8   : > { %v4228_v19 = vsel %vm4103_vm0, %v5803_v17, 0.0 }
0x3ad9   : > { %4229 = vadd.xlane.f32.xlu0 %v4228_v19 }
0x3aef   : > { %4235 = vrot.lane.b32.xlu0 %v6788_v31, %s5836_s26 }
0x3af3   : > { %v4112_v60 = vpop.xlane.xlu0 %4111 }
0x3af4   : > { %5804 = vrcp.f32 %v4112_v60 }
0x3afe   : > { %v5805_v62 = vpop.eup %5804 }
0x3aff   : > { %v6827_v48 = vmul.f32 %v5805_v62, %v5801_v10 }
0x3b01   : > { %v4116_v20 = vpack.c.bf16 %v6827_v48, %v6827_v48 }
0x3b03   : > { %5563 = vmatmul.mubr.msk.bf16.vlgmr.msra.gmra.mrb[100].mxu0 %vm4120_vm1, %v4116_v20 }
0x3b04   : > { %5574 = vmatprep.mubr.msk.bf16.mxu0 %vm5827_vm2, %v6558_v34 }
0x3b66   : > { %v4230_v22 = vpop.xlane.xlu0 %4229 }
0x3b67   : > { %5806 = vrcp.f32 %v4230_v22 }
0x3b6a   : > { %v4236_v27 = vpop.permute.xlu0 %4235 }
0x3b6b   : > { %v4241_v28 = vand.u32 %v4236_v27, %v6820_v33 }
0x3b6d   : > { %5573 = vmatpush3.bf16.msra.mxu0 %v4241_v28 }
0x3b6e   : > { %5584 = vmatprep.subr.bf16.mxu0 %v6558_v34 }
0x3b71   : > { %v5807_v29 = vpop.eup %5806 }
0x3b72   : > { %v4232_v21 = vmul.f32 %v5807_v29, %v5803_v17  ;;  %v1683_v17 = vld [vmem:[%s6912_s1 + $0x258] sm:$0xf] }
0x3b73   : > { %v4493_v19 = vsel %vm2868_vm14, %v1683_v17, 0 }
0x3b74   : > { %v4234_v50 = vpack.c.bf16 %v4232_v21, %v4232_v21  ;;  %v4233_v11 = vadd.f32 %v4232_v21, %v6827_v48 }
0x3b76   : > { %5575 = vmatmul.mubr.msk.bf16.vlgmr.msra.gmra.mrb[104].mxu0 %vm4120_vm1, %v4234_v50 }
0x3b77   : > { %5585 = vmatpush3.bf16.msra.mxu0 %v4334_v37  ;;  %5586 = vmatprep.mubr.msk.bf16.mxu0 %vm5827_vm2, %v6558_v34 }
0x3b78   : > { %5596 = vmatprep.subr.bf16.mxu0 %v6558_v34 }
0x3bd6   : > { %v4163_v26 = vpop.f32.mrb[100].mxu0 }
0x3bd7   : > { %v4169_v38 = vpack.c.bf16 %v4163_v26, %v4163_v26  ;;  %v5564_v52 = vpop.f32.mrb[101].mxu0 }
0x3bd8   : > { %v4166_v18 = vpop.f32.mrb[102].mxu0 }
0x3bd9   : > { %v5565_v39 = vpop.f32.mrb[103].mxu0  ;;  %5587 = vmatmul.mubr.msk.bf16.vlgmr.msra.gmra.mrb[108].mxu0 %vm2638_vm11, %v4169_v38 }
0x3bda   : > { %5598 = vmatprep.mubr.msk.bf16.mxu0 %vm5827_vm2, %v6558_v34 }
0x3c49   : > { %v4277_v42 = vpop.f32.mrb[104].mxu0 }
0x3c4a   : > { %v4283_v43 = vpack.c.bf16 %v4277_v42, %v4277_v42  ;;  %v5576_v3 = vpop.f32.mrb[105].mxu0 }
0x3c4b   : > { %v4280_v1 = vpop.f32.mrb[106].mxu0 }
0x3c4c   : > { %v5577_v46 = vpop.f32.mrb[107].mxu0  ;;  %5581 = vmatmul.mubr.msk.bf16.vlgmr.msra.gmra.mrb[140].mxu1 %vm2638_vm11, %v4283_v43 }
0x3c4d   : > { %5591 = vmatpush3.bf16.xpose.msra.mxu1 %v4384_v45  ;;  %5592 = vmatprep.mubr.msk.bf16.mxu1 %vm5827_vm2, %v6558_v34 }
0x3c4e   : > { %5602 = vmatprep.subr.bf16.mxu1 %v6558_v34 }
0x3c54   : > { %5593 = vmatmul.mubr.msk.bf16.vlgmr.msra.gmra.mrb[144].mxu1 %vm2638_vm11, %v4377_v51 }
0x3c55   : > { %5604 = vmatprep.mubr.msk.bf16.mxu1 %vm5827_vm2, %v6558_v34  ;;  %5603 = vmatpush3.bf16.msra.mxu1 %v4493_v19 }
0x3c56   : > { %5614 = vmatprep.subr.bf16.mxu1 %v6558_v34 }
0x3cac   : > { %v4370_v53 = vpop.f32.mrb[108].mxu0 }
0x3cad   : > { %v5588_v54 = vpop.f32.mrb[109].mxu0 }
0x3cae   : > { %v4373_v55 = vpop.f32.mrb[110].mxu0 }
0x3caf   : > { %v5589_v57 = vpop.f32.mrb[111].mxu0 }
0x3d1f   : > { %v4324_v23 = vpop.f32.mrb[140].mxu1 }
0x3d20   : > { %v6860_v44 = vadd.f32 %v4370_v53, %v4324_v23  ;;  %v5582_v59 = vpop.f32.mrb[141].mxu1 }
0x3d21   : > { %v4327_v63 = vpop.f32.mrb[142].mxu1 }
0x3d22   : > { %v5583_v0 = vpop.f32.mrb[143].mxu1 }
0x3d27   : > { %v4420_v25 = vpop.f32.mrb[144].mxu1 }
0x3d28   : > { %v4426_v2 = vmul.f32 0.35355338, %v4420_v25  ;;  %v5594_v56 = vpop.f32.mrb[145].mxu1 }
0x3d29   : > { %v4423_v4 = vpop.f32.mrb[146].mxu1 }
0x3d2a   : > { %v5595_v5 = vpop.f32.mrb[147].mxu1  ;;  %v4427_v6 = vsel %vm4103_vm0, %v4426_v2, -inf }
0x3d2b   : > { %4428 = vmax.xlane.f32.xlu0 %v4427_v6 }
0x3d41   : > { %4440 = vrot.lane.b32.xlu0 %v6788_v31, %s5831_s20 }
0x3d45   : > { %4536 = vrot.lane.b32.xlu0 %v6794_v58, %s5837_s6 }
0x3db8   : > { %v4429_v7 = vpop.xlane.xlu0 %4428 }
0x3db9   : > { %v4430_v32 = vsub.f32 %v4426_v2, %v4429_v7 }
0x3dbb   : > { %v4431_v8 = vmul.f32 1.442695, %v4430_v32 }
0x3dbc   : > { %v4441_v9 = vpop.permute.xlu0 %4440 }
0x3dbd   : > { %5808 = vpow2.f32 %v4431_v8  ;;  %v4446_v47 = vand.u32 %v4441_v9, %v6820_v33 }
0x3dbf   : > { %5597 = vmatpush3.bf16.msra.mxu0 %v4446_v47 }
0x3dc0   : > { %5608 = vmatprep.subr.bf16.mxu0 %v6558_v34  ;;  %v4537_v16 = vpop.permute.xlu0 %4536 }
0x3dc7   : > { %v5809_v30 = vpop.eup %5808 }
0x3dc8   : > { %v4433_v35 = vsel %vm4103_vm0, %v5809_v30, 0.0 }
0x3dc9   : > { %4434 = vadd.xlane.f32.xlu1 %v4433_v35 }
0x3dda   : > { %4538 = vrot.lane.b32.xlu1 %v6788_v31, %s5837_s6 }
0x3e56   : > { %v4435_v10 = vpop.xlane.xlu1 %4434 }
0x3e57   : > { %5810 = vrcp.f32 %v4435_v10 }
0x3e5a   : > { %v4539_v13 = vpop.permute.xlu1 %4538 }
0x3e5b   : > { %v4544_v15 = vsel %vm2638_vm11, %v4539_v13, 0 }
0x3e61   : > { %v5811_v58 = vpop.eup %5810 }
0x3e62   : > { %v4437_v12 = vmul.f32 %v5811_v58, %v5809_v30 }
0x3e64   : > { %v4438_v14 = vadd.f32 %v4437_v12, %v4233_v11  ;;  %v4439_v41 = vpack.c.bf16 %v4437_v12, %v4437_v12 }
0x3e66   : > { %5599 = vmatmul.mubr.msk.bf16.vlgmr.msra.gmra.mrb[112].mxu0 %vm4120_vm1, %v4439_v41 }
0x3e67   : > { %5609 = vmatpush3.bf16.xpose.msra.mxu0 %v4544_v15  ;;  %5610 = vmatprep.mubr.msk.bf16.mxu0 %vm5827_vm2, %v6558_v34 }
0x3e68   : > { %5620 = vmatprep.subr.bf16.mxu0 %v6558_v34 }
0x3e6e   : > { %5611 = vmatmul.mubr.msk.bf16.vlgmr.msra.gmra.mrb[116].mxu0 %vm2638_vm11, %v4537_v16 }
0x3e6f   : > { %5622 = vmatprep.mubr.msk.bf16.mxu0 %vm5827_vm2, %v6558_v34 }
0x3f39   : > { %v4482_v60 = vpop.f32.mrb[112].mxu0 }
0x3f3a   : > { %v4488_v62 = vpack.c.bf16 %v4482_v60, %v4482_v60  ;;  %v5600_v48 = vpop.f32.mrb[113].mxu0 }
0x3f3b   : > { %v4485_v20 = vpop.f32.mrb[114].mxu0 }
0x3f3c   : > { %v5601_v36 = vpop.f32.mrb[115].mxu0  ;;  %5605 = vmatmul.mubr.msk.bf16.vlgmr.msra.gmra.mrb[148].mxu1 %vm2638_vm11, %v4488_v62 }
0x3f3d   : > { %5616 = vmatprep.mubr.msk.bf16.mxu1 %vm5827_vm2, %v6558_v34  ;;  %v1684_v34 = vld [vmem:[%s6912_s1 + $0x25c] sm:$0xf]  ;;  %vm4703_vm2 = vcmask 76800  }
0x3f3e   : > { %v4653_v52 = vsel %vm2868_vm14, %v1684_v34, 0 }
0x3f3f   : > { %5621 = vmatpush3.bf16.msra.mxu0 %v4653_v52 }
0x3f41   : > { %v4580_v24 = vpop.f32.mrb[116].mxu0 }
0x3f42   : > { %v4586_v22 = vmul.f32 0.35355338, %v4580_v24  ;;  %v5612_v27 = vpop.f32.mrb[117].mxu0 }
0x3f43   : > { %v4583_v28 = vpop.f32.mrb[118].mxu0 }
0x3f44   : > { %v5613_v29 = vpop.f32.mrb[119].mxu0  ;;  %v4587_v61 = vsel %vm4103_vm0, %v4586_v22, -inf }
0x3f45   : > { %4588 = vmax.xlane.f32.xlu1 %v4587_v61 }
0x3fd2   : > { %v4589_v21 = vpop.xlane.xlu1 %4588 }
0x3fd3   : > { %v4590_v50 = vsub.f32 %v4586_v22, %v4589_v21 }
0x3fd5   : > { %v4591_v37 = vmul.f32 1.442695, %v4590_v50 }
0x3fd7   : > { %5812 = vpow2.f32 %v4591_v37 }
0x3fe1   : > { %v5813_v26 = vpop.eup %5812 }
0x3fe2   : > { %v4593_v38 = vsel %vm4103_vm0, %v5813_v26, 0.0 }
0x3fe3   : > { %4594 = vadd.xlane.f32.xlu0 %v4593_v38 }
0x3ff9   : > { %4600 = vrot.lane.b32.xlu0 %v6788_v31, %s5838_s10 }
0x400f   : > { %v4529_v18 = vpop.f32.mrb[148].mxu1 }
0x4010   : > { %v4535_v39 = vadd.f32 %v4529_v18, %v6860_v44  ;;  %v5606_v40 = vpop.f32.mrb[149].mxu1 }
0x4011   : > { %v4532_v42 = vpop.f32.mrb[150].mxu1 }
0x4012   : > { %v5607_v43 = vpop.f32.mrb[151].mxu1 }
0x4070   : > { %v4595_v3 = vpop.xlane.xlu0 %4594 }
0x4071   : > { %5814 = vrcp.f32 %v4595_v3 }
0x4074   : > { %v4601_v1 = vpop.permute.xlu0 %4600 }
0x4075   : > { %v4606_v45 = vand.u32 %v4601_v1, %v6820_v33  ;;  %v4949_v33 = vld [vmem:[%s6913_s2 + $0x150] ss:$0 sm:$0xff] }
0x4077   : > { %5615 = vmatpush3.bf16.msra.mxu1 %v4606_v45 }
0x407b   : > { %v5815_v31 = vpop.eup %5814 }
0x407c   : > { %v4597_v46 = vmul.f32 %v5815_v31, %v5813_v26 }
0x407e   : > { %v4598_v51 = vadd.f32 %v4597_v46, %v4438_v14  ;;  %v4599_v53 = vpack.c.bf16 %v4597_v46, %v4597_v46 }
0x4080   : > { %v4701_v54 = vmul.f32 0.25, %v4598_v51  ;;  %5617 = vmatmul.mubr.msk.bf16.vlgmr.msra.gmra.mrb[152].mxu1 %vm4120_vm1, %v4599_v53 }
0x4082   : > { %4719 = vst.msk [vmem:[%s5886_s27 + $0x4] sm:$0xf] %vm4103_vm0, %v4701_v54 }
0x4153   : > { %v4642_v55 = vpop.f32.mrb[152].mxu1 }
0x4154   : > { %v4648_v57 = vpack.c.bf16 %v4642_v55, %v4642_v55  ;;  %v5618_v23 = vpop.f32.mrb[153].mxu1 }
0x4155   : > { %v4645_v44 = vpop.f32.mrb[154].mxu1 }
0x4156   : > { %v5619_v59 = vpop.f32.mrb[155].mxu1  ;;  %5623 = vmatmul.mubr.msk.bf16.vlgmr.msra.gmra.mrb[120].mxu0 %vm2638_vm11, %v4648_v57 }
0x4229   : > { %v4689_v63 = vpop.f32.mrb[120].mxu0 }
0x422a   : > { %v4695_v0 = vadd.f32 %v4689_v63, %v4535_v39  ;;  %v5624_v25 = vpop.f32.mrb[121].mxu0 }
0x422b   : > { %v4692_v2 = vpop.f32.mrb[122].mxu0 }
0x422c   : > { %v4700_v56 = vadd.f32 %v4949_v33, %v4695_v0  ;;  %v5625_v4 = vpop.f32.mrb[123].mxu0 }
0x422e   : > { %v4704_v5 = vsel %vm4703_vm2, %v4700_v56, 0.0 }
0x422f   : > { %v4705_v6 = vrot.slane %v4704_v5, 4 }
0x4231   : > { %v4706_v7 = vadd.f32 %v4705_v6, %v4704_v5 }
0x4233   : > { %v4707_v32 = vrot.slane %v4706_v7, 2 }
0x4235   : > { %v4708_v8 = vadd.f32 %v4707_v32, %v4706_v7 }
0x4237   : > { %v4709_v9 = vrot.slane %v4708_v8, 1 }
0x4239   : > { %v4710_v47 = vadd.f32 %v4709_v9, %v4708_v8 }
0x423b   : > { %v4712_v30 = vmul.f32 0.25, %v4710_v47 }
0x423d   : > { %v4713_v35 = vadd.f32 %v4712_v30, %v6786_v49 }
0x423f   : > { %4716 = vst.msk [vmem:[%s5886_s27] sm:$0x1] %vm4715_vm3, %v4713_v35 }
0x4240 PF: > { %s13_s12 = sadd.s32 1, %s5824_s12  }
0x4241   : > { %p10_p4 = scmp.ge.s32.totalorder %s13_s12, 4  }
0x4243   :  { %12 = sbr.rel (!%p10_p4) target bundleno = 1 (0x1), region = 62 }

</bundles_post_ra>
